<compile_context>
chip_gen: v7x
topology: tpu7x:2x2x1
jax: 0.10.0
libtpu: 0.0.40
codegen_flags: <defaults>
</compile_context>

<pallas_src>
import jax
import jax.numpy as jnp
import numpy as np
from jax.experimental import pallas as pl
from jax.experimental.pallas import tpu as pltpu

D_IN, D_H1, D_H2, D_OUT = 5000, 750, 400, 1
BN_EPS = 1e-5
LEAKY_SLOPE = 0.01  # PyTorch nn.LeakyReLU default

TK = 2560      # K-tile over D_IN for layer 1 (D0P / TK = 2 grid steps)
TB_MAX = 128   # max batch tile


def _round_up(x, m):
    return (x + m - 1) // m * m


D0P = _round_up(D_IN, 128)   # 5120
D1P = _round_up(D_H1, 128)   # 768
D2P = _round_up(D_H2, 128)   # 512
D3P = _round_up(D_OUT, 128)  # 128


def _pad2(a, rows, cols):
    return jnp.pad(a, ((0, rows - a.shape[0]), (0, cols - a.shape[1])))


def _padrow(v, n):
    return jnp.pad(v, (0, n - v.shape[0])).reshape(1, n)


def prepare_params(params):
    """Fold eval-mode BN into weights/biases, pad, and quantize — done once."""
    (w1, b1, g1, beta1, rm1, rv1,
     w2, b2, g2, beta2, rm2, rv2,
     w3, b3) = params

    s1 = g1 / jnp.sqrt(rv1 + BN_EPS)
    t1 = beta1 - rm1 * s1
    s2 = g2 / jnp.sqrt(rv2 + BN_EPS)
    t2 = beta2 - rm2 * s2

    w1f = w1 * s1[None, :]
    b1f = b1 * s1 + t1
    w2f = w2 * s2[None, :]
    b2f = b2 * s2 + t2

    # Big weights stored as bf16 (halves HBM traffic; kernel is DMA bound).
    # w3 + all biases stay f32 — tiny, and they set the output's accuracy.
    w1p = _pad2(w1f, D0P, D1P).astype(jnp.bfloat16)
    w2p = _pad2(w2f, D1P, D2P).astype(jnp.bfloat16)
    w3p = _pad2(w3, D2P, D3P)
    b1p = _padrow(b1f, D1P)
    b2p = _padrow(b2f, D2P)
    b3p = _padrow(b3, D3P)

    return tuple(jax.device_put(a) for a in (w1p, b1p, w2p, b2p, w3p, b3p))


def _fc_kernel(x_ref, w1_ref, b1_ref, w2_ref, b2_ref, w3_ref, b3_ref,
               o_ref, h1_acc):
    k = pl.program_id(1)

    # ---- layer 1: K-tiled bf16 matmul, f32 accumulation in VMEM scratch ----
    @pl.when(k == 0)
    def _():
        h1_acc[...] = jnp.zeros_like(h1_acc)

    h1_acc[...] += jnp.dot(x_ref[...].astype(jnp.bfloat16), w1_ref[...],
                           preferred_element_type=jnp.float32)

    # ---- last K step: BN(folded)+sigmoid, layer 2 (bf16), layer 3 (f32) ----
    @pl.when(k == pl.num_programs(1) - 1)
    def _():
        h1 = jax.nn.sigmoid(h1_acc[...] + b1_ref[...])
        h2 = jnp.dot(h1.astype(jnp.bfloat16), w2_ref[...],
                     preferred_element_type=jnp.float32) + b2_ref[...]
        h2 = jnp.where(h2 > 0, h2, LEAKY_SLOPE * h2)
        o = jnp.dot(h2, w3_ref[...],
                    preferred_element_type=jnp.float32) + b3_ref[...]
        o_ref[...] = jax.nn.sigmoid(o)


@jax.jit
def fc_forward(x, prepped):
    """x: (B, 5000) float32 -> (B, 1) float32.  `prepped` from prepare_params."""
    w1p, b1p, w2p, b2p, w3p, b3p = prepped

    B = x.shape[0]
    Bp = _round_up(max(B, 8), 8)
    if Bp > TB_MAX:
        Bp = _round_up(Bp, TB_MAX)
        TB = TB_MAX
    else:
        TB = Bp

    xp = jnp.pad(x, ((0, Bp - B), (0, D0P - D_IN)))

    nB = Bp // TB
    nK = D0P // TK

    # Advisory cost estimate: the call is weight-DMA bound (~9 MB of bf16/f32
    # weights), not the ~70 MFLOP of compute.
    weight_bytes = (D0P * D1P * 2 + D1P * D2P * 2 + D2P * D3P * 4
                    + (D1P + D2P + D3P) * 4)
    io_bytes = Bp * D0P * 4 + Bp * D3P * 4
    cost = pl.CostEstimate(
        flops=2 * Bp * (D0P * D1P + D1P * D2P + D2P * D3P),
        transcendentals=Bp * (D1P + D3P),
        bytes_accessed=weight_bytes + io_bytes,
    )

    out_p = pl.pallas_call(
        _fc_kernel,
        out_shape=jax.ShapeDtypeStruct((Bp, D3P), jnp.float32),
        grid=(nB, nK),
        in_specs=[
            pl.BlockSpec((TB, TK), lambda i, k: (i, k)),     # x: batch x K tile
            pl.BlockSpec((TK, D1P), lambda i, k: (k, 0)),    # w1 (bf16, BN folded), K tiled
            pl.BlockSpec((1, D1P), lambda i, k: (0, 0)),     # b1 (BN folded), resident
            pl.BlockSpec((D1P, D2P), lambda i, k: (0, 0)),   # w2 (bf16, BN folded), resident
            pl.BlockSpec((1, D2P), lambda i, k: (0, 0)),     # b2 (BN folded), resident
            pl.BlockSpec((D2P, D3P), lambda i, k: (0, 0)),   # w3 (f32), resident
            pl.BlockSpec((1, D3P), lambda i, k: (0, 0)),     # b3 (f32), resident
        ],
        out_specs=pl.BlockSpec((TB, D3P), lambda i, k: (i, 0)),
        scratch_shapes=[pltpu.VMEM((TB, D1P), jnp.float32)],
        compiler_params=pltpu.CompilerParams(
            dimension_semantics=("parallel", "arbitrary"),
            vmem_limit_bytes=32 * 1024 * 1024),
        cost_estimate=cost,
    )(xp, w1p, b1p, w2p, b2p, w3p, b3p)

    return out_p[:B, :D_OUT]


def init_params(key):
    k1, k2, k3 = jax.random.split(key, 3)
    # linear1: xavier_normal_ on weight (matching the PyTorch module's init).
    std1 = float(np.sqrt(2.0 / (D_IN + D_H1)))
    w1 = jax.random.normal(k1, (D_IN, D_H1), jnp.float32) * std1
    b1 = jnp.zeros((D_H1,), jnp.float32)
    w2 = jax.random.normal(k2, (D_H1, D_H2), jnp.float32) * float(1.0 / np.sqrt(D_H1))
    b2 = jnp.zeros((D_H2,), jnp.float32)
    w3 = jax.random.normal(k3, (D_H2, D_OUT), jnp.float32) * float(1.0 / np.sqrt(D_H2))
    b3 = jnp.zeros((D_OUT,), jnp.float32)
    # BatchNorm1d defaults: gamma=1, beta=0, running_mean=0, running_var=1.
    g1, beta1 = jnp.ones((D_H1,), jnp.float32), jnp.zeros((D_H1,), jnp.float32)
    rm1, rv1 = jnp.zeros((D_H1,), jnp.float32), jnp.ones((D_H1,), jnp.float32)
    g2, beta2 = jnp.ones((D_H2,), jnp.float32), jnp.zeros((D_H2,), jnp.float32)
    rm2, rv2 = jnp.zeros((D_H2,), jnp.float32), jnp.ones((D_H2,), jnp.float32)
    return (w1, b1, g1, beta1, rm1, rv1,
            w2, b2, g2, beta2, rm2, rv2,
            w3, b3)


def _reference(x, params):
    (w1, b1, g1, beta1, rm1, rv1,
     w2, b2, g2, beta2, rm2, rv2,
     w3, b3) = params
    h = x @ w1 + b1
    h = (h - rm1) / jnp.sqrt(rv1 + BN_EPS) * g1 + beta1
    h = jax.nn.sigmoid(h)
    h = h @ w2 + b2
    h = (h - rm2) / jnp.sqrt(rv2 + BN_EPS) * g2 + beta2
    h = jnp.where(h > 0, h, LEAKY_SLOPE * h)
    return jax.nn.sigmoid(h @ w3 + b3)


if __name__ == "__main__":
    key = jax.random.PRNGKey(0)
    pkey, xkey = jax.random.split(key)
    params = init_params(pkey)
    prepped = prepare_params(params)   # BN fold + pad + bf16 cast: once, outside jit

    batch = 8
    x = jax.random.normal(xkey, (batch, D_IN), jnp.float32)

    out = fc_forward(x, prepped)
    out = jax.block_until_ready(out)

    ref = _reference(x, params)
    # bf16 weight storage for layers 1/2 -> loosened tolerance (w3/biases are f32).
    np.testing.assert_allclose(np.asarray(out), np.asarray(ref),
                               rtol=2e-2, atol=5e-3)
    assert out.shape == (batch, 1)
    print("KERNEL_OK")
</pallas_src>

<mosaic_0001>
module attributes {stable_mosaic.version = 11 : i64} {
  func.func @_fc_kernel(%arg0: i32, %arg1: i32, %arg2: memref<8x2560xf32, #tpu.memory_space<vmem>>, %arg3: memref<2560x768xbf16, #tpu.memory_space<vmem>>, %arg4: memref<1x768xf32, #tpu.memory_space<vmem>>, %arg5: memref<768x512xbf16, #tpu.memory_space<vmem>>, %arg6: memref<1x512xf32, #tpu.memory_space<vmem>>, %arg7: memref<512x128xf32, #tpu.memory_space<vmem>>, %arg8: memref<1x128xf32, #tpu.memory_space<vmem>>, %arg9: memref<8x128xf32, #tpu.memory_space<vmem>>, %arg10: memref<8x768xf32, #tpu.memory_space<vmem>>) attributes {dimension_semantics = [#tpu.dimension_semantics<parallel>, #tpu.dimension_semantics<arbitrary>], iteration_bounds = array<i64: 1, 2>, scalar_prefetch = 0 : i64, scratch_operands = 1 : i64, tpu.core_type = #tpu.core_type<tc>, window_params = [{transform_indices = @transform_0, window_bounds = array<i64: 8, 2560>}, {transform_indices = @transform_1, window_bounds = array<i64: 2560, 768>}, {pipeline_mode = #tpu.pipeline_mode<synchronous>, transform_indices = @transform_2, window_bounds = array<i64: 1, 768>}, {pipeline_mode = #tpu.pipeline_mode<synchronous>, transform_indices = @transform_3, window_bounds = array<i64: 768, 512>}, {pipeline_mode = #tpu.pipeline_mode<synchronous>, transform_indices = @transform_4, window_bounds = array<i64: 1, 512>}, {pipeline_mode = #tpu.pipeline_mode<synchronous>, transform_indices = @transform_5, window_bounds = array<i64: 512, 128>}, {pipeline_mode = #tpu.pipeline_mode<synchronous>, transform_indices = @transform_6, window_bounds = array<i64: 1, 128>}, {transform_indices = @transform_7, window_bounds = array<i64: 8, 128>}]} {
    %c0_i32 = arith.constant 0 : i32
    %0 = arith.cmpi eq, %arg1, %c0_i32 : i32
    %1 = arith.extui %0 : i1 to i32
    %c0_i32_0 = arith.constant 0 : i32
    %2 = arith.cmpi ne, %1, %c0_i32_0 : i32
    scf.if %2 {
      %cst_9 = arith.constant 0.000000e+00 : f32
      %13 = vector.broadcast %cst_9 : f32 to vector<8x768xf32>
      %c0_10 = arith.constant 0 : index
      %c0_11 = arith.constant 0 : index
      %14 = vector.load %arg10[%c0_10, %c0_11] : memref<8x768xf32, #tpu.memory_space<vmem>>, vector<8x768xf32>
      tpu.vector_store %arg10[%c0_10, %c0_11], %13 {strides = array<i32>} : memref<8x768xf32, #tpu.memory_space<vmem>>, vector<8x768xf32>,
    } else {
    }
    %c0 = arith.constant 0 : index
    %c0_1 = arith.constant 0 : index
    %3 = vector.load %arg10[%c0, %c0_1] : memref<8x768xf32, #tpu.memory_space<vmem>>, vector<8x768xf32>
    %c0_2 = arith.constant 0 : index
    %c0_3 = arith.constant 0 : index
    %4 = vector.load %arg2[%c0_2, %c0_3] : memref<8x2560xf32, #tpu.memory_space<vmem>>, vector<8x2560xf32>
    %5 = arith.truncf %4 : vector<8x2560xf32> to vector<8x2560xbf16>
    %c0_4 = arith.constant 0 : index
    %c0_5 = arith.constant 0 : index
    %6 = vector.load %arg3[%c0_4, %c0_5] : memref<2560x768xbf16, #tpu.memory_space<vmem>>, vector<2560x768xbf16>
    %cst = arith.constant dense<0.000000e+00> : vector<8x768xf32>
    %7 = tpu.matmul %5, %6, %cst {dimension_numbers = #tpu.dot_dimension_numbers<[1], [0], [0], [1], [0, 0, 1, 1], [], []>} : vector<8x2560xbf16>, vector<2560x768xbf16>, vector<8x768xf32> -> vector<8x768xf32>
    %8 = arith.addf %3, %7 : vector<8x768xf32>
    %c0_6 = arith.constant 0 : index
    %c0_7 = arith.constant 0 : index
    %9 = vector.load %arg10[%c0_6, %c0_7] : memref<8x768xf32, #tpu.memory_space<vmem>>, vector<8x768xf32>
    tpu.vector_store %arg10[%c0_6, %c0_7], %8 {strides = array<i32>} : memref<8x768xf32, #tpu.memory_space<vmem>>, vector<8x768xf32>,
    %c1_i32 = arith.constant 1 : i32
    %10 = arith.cmpi eq, %arg1, %c1_i32 : i32
    %11 = arith.extui %10 : i1 to i32
    %c0_i32_8 = arith.constant 0 : i32
    %12 = arith.cmpi ne, %11, %c0_i32_8 : i32
    scf.if %12 {
      %c0_9 = arith.constant 0 : index
      %c0_10 = arith.constant 0 : index
      %13 = vector.load %arg10[%c0_9, %c0_10] : memref<8x768xf32, #tpu.memory_space<vmem>>, vector<8x768xf32>
      %c0_11 = arith.constant 0 : index
      %c0_12 = arith.constant 0 : index
      %14 = vector.load %arg4[%c0_11, %c0_12] : memref<1x768xf32, #tpu.memory_space<vmem>>, vector<1x768xf32>
      %15 = vector.broadcast %14 : vector<1x768xf32> to vector<8x768xf32>
      %16 = arith.addf %13, %15 : vector<8x768xf32>
      %17 = arith.negf %16 : vector<8x768xf32>
      %18 = math.exp %17 : vector<8x768xf32>
      %cst_13 = arith.constant 1.000000e+00 : f32
      %19 = vector.broadcast %cst_13 : f32 to vector<8x768xf32>
      %20 = arith.addf %19, %18 : vector<8x768xf32>
      %21 = arith.divf %19, %20 : vector<8x768xf32>
      %22 = arith.truncf %21 : vector<8x768xf32> to vector<8x768xbf16>
      %c0_14 = arith.constant 0 : index
      %c0_15 = arith.constant 0 : index
      %23 = vector.load %arg5[%c0_14, %c0_15] : memref<768x512xbf16, #tpu.memory_space<vmem>>, vector<768x512xbf16>
      %cst_16 = arith.constant dense<0.000000e+00> : vector<8x512xf32>
      %24 = tpu.matmul %22, %23, %cst_16 {dimension_numbers = #tpu.dot_dimension_numbers<[1], [0], [0], [1], [0, 0, 1, 1], [], []>} : vector<8x768xbf16>, vector<768x512xbf16>, vector<8x512xf32> -> vector<8x512xf32>
      %c0_17 = arith.constant 0 : index
      %c0_18 = arith.constant 0 : index
      %25 = vector.load %arg6[%c0_17, %c0_18] : memref<1x512xf32, #tpu.memory_space<vmem>>, vector<1x512xf32>
      %26 = vector.broadcast %25 : vector<1x512xf32> to vector<8x512xf32>
      %27 = arith.addf %24, %26 : vector<8x512xf32>
      %cst_19 = arith.constant 0.000000e+00 : f32
      %28 = vector.broadcast %cst_19 : f32 to vector<8x512xf32>
      %29 = arith.cmpf ogt, %27, %28 : vector<8x512xf32>
      %cst_20 = arith.constant 0.00999999977 : f32
      %30 = vector.broadcast %cst_20 : f32 to vector<8x512xf32>
      %31 = arith.mulf %30, %27 : vector<8x512xf32>
      %32 = arith.select %29, %27, %31 : vector<8x512xi1>, vector<8x512xf32>
      %c0_21 = arith.constant 0 : index
      %c0_22 = arith.constant 0 : index
      %33 = vector.load %arg7[%c0_21, %c0_22] : memref<512x128xf32, #tpu.memory_space<vmem>>, vector<512x128xf32>
      %cst_23 = arith.constant dense<0.000000e+00> : vector<8x128xf32>
      %34 = tpu.matmul %32, %33, %cst_23 {dimension_numbers = #tpu.dot_dimension_numbers<[1], [0], [0], [1], [0, 0, 1, 1], [], []>} : vector<8x512xf32>, vector<512x128xf32>, vector<8x128xf32> -> vector<8x128xf32>
      %c0_24 = arith.constant 0 : index
      %c0_25 = arith.constant 0 : index
      %35 = vector.load %arg8[%c0_24, %c0_25] : memref<1x128xf32, #tpu.memory_space<vmem>>, vector<1x128xf32>
      %36 = vector.broadcast %35 : vector<1x128xf32> to vector<8x128xf32>
      %37 = arith.addf %34, %36 : vector<8x128xf32>
      %38 = arith.negf %37 : vector<8x128xf32>
      %39 = math.exp %38 : vector<8x128xf32>
      %cst_26 = arith.constant 1.000000e+00 : f32
      %40 = vector.broadcast %cst_26 : f32 to vector<8x128xf32>
      %41 = arith.addf %40, %39 : vector<8x128xf32>
      %42 = arith.divf %40, %41 : vector<8x128xf32>
      %c0_27 = arith.constant 0 : index
      %c0_28 = arith.constant 0 : index
      %43 = vector.load %arg9[%c0_27, %c0_28] : memref<8x128xf32, #tpu.memory_space<vmem>>, vector<8x128xf32>
      tpu.vector_store %arg9[%c0_27, %c0_28], %42 {strides = array<i32>} : memref<8x128xf32, #tpu.memory_space<vmem>>, vector<8x128xf32>,
    } else {
    }
    return
  }
  func.func @transform_0(%arg0: i32, %arg1: i32) -> (i32, i32) {
    %c0_i32 = arith.constant 0 : i32
    return %arg0, %arg1 : i32, i32
  }
  func.func @transform_1(%arg0: i32, %arg1: i32) -> (i32, i32) {
    %c0_i32 = arith.constant 0 : i32
    %c0_i32_0 = arith.constant 0 : i32
    return %arg1, %c0_i32 : i32, i32
  }
  func.func @transform_2(%arg0: i32, %arg1: i32) -> (i32, i32) {
    %c0_i32 = arith.constant 0 : i32
    %c0_i32_0 = arith.constant 0 : i32
    %c0_i32_1 = arith.constant 0 : i32
    return %c0_i32, %c0_i32_0 : i32, i32
  }
  func.func @transform_3(%arg0: i32, %arg1: i32) -> (i32, i32) {
    %c0_i32 = arith.constant 0 : i32
    %c0_i32_0 = arith.constant 0 : i32
    %c0_i32_1 = arith.constant 0 : i32
    return %c0_i32, %c0_i32_0 : i32, i32
  }
  func.func @transform_4(%arg0: i32, %arg1: i32) -> (i32, i32) {
    %c0_i32 = arith.constant 0 : i32
    %c0_i32_0 = arith.constant 0 : i32
    %c0_i32_1 = arith.constant 0 : i32
    return %c0_i32, %c0_i32_0 : i32, i32
  }
  func.func @transform_5(%arg0: i32, %arg1: i32) -> (i32, i32) {
    %c0_i32 = arith.constant 0 : i32
    %c0_i32_0 = arith.constant 0 : i32
    %c0_i32_1 = arith.constant 0 : i32
    return %c0_i32, %c0_i32_0 : i32, i32
  }
  func.func @transform_6(%arg0: i32, %arg1: i32) -> (i32, i32) {
    %c0_i32 = arith.constant 0 : i32
    %c0_i32_0 = arith.constant 0 : i32
    %c0_i32_1 = arith.constant 0 : i32
    return %c0_i32, %c0_i32_0 : i32, i32
  }
  func.func @transform_7(%arg0: i32, %arg1: i32) -> (i32, i32) {
    %c0_i32 = arith.constant 0 : i32
    %c0_i32_0 = arith.constant 0 : i32
    return %arg0, %c0_i32 : i32, i32
  }
}

</mosaic_0001>

<bundles_post_ra>
// kernel: fc_forward.1
= control target key start
LH: loop header
LB: loop body
LE: loop exit
PB: predicated region body
PF: predicated region fallthrough
CT: control target
= control target key end

     0   :  { %s14286_s0 = inlined_call_operand.vmem [shape: f32[8,5120], index: 0, kind: input, shape index: {}]   ;;  %s14287_s1 = inlined_call_operand.hbm [shape: bf16[5120,768], index: 1, kind: input, shape index: {}]   ;;  %s14288_s2 = inlined_call_operand.hbm [shape: f32[1,768], index: 2, kind: input, shape index: {}]   ;;  %s14289_s3 = inlined_call_operand.hbm [shape: bf16[768,512], index: 3, kind: input, shape index: {}]   ;;  %s14290_s4 = inlined_call_operand.hbm [shape: f32[1,512], index: 4, kind: input, shape index: {}]   ;;  %s14291_s5 = inlined_call_operand.hbm [shape: f32[512,128], index: 5, kind: input, shape index: {}]   ;;  %s14292_s6 = inlined_call_operand.hbm [shape: f32[1,128], index: 6, kind: input, shape index: {}]   ;;  %s14293_s7 = inlined_call_operand.vmem [shape: f32[8,128], index: 7, kind: output, shape index: {}]  }
   0x1   :  { %14297 = sst [smem:[#allocation17_spill]] %s14288_s2 }
   0x2   :  { %12 = vsyncpa [#allocation4], 0 }
   0x3   :  { %14 = vsyncpa [#allocation4 + $0x1], 0 }
   0x4   :  { %15 = vsyncpa [#allocation6], 0 }
   0x5   :  { %16 = vsyncpa [#allocation9], 0 }
   0x6   :  { %17 = vsyncpa [#allocation12], 0  ;;  %s12843_s24 = smov 0   ;;  %s12845_s25 = smov 0  }
   0x7   :  { %s12847_s26 = smov 0   ;;  %s12849_s27 = smov 0  }
   0x8   :  { %s12851_s28 = smov 0   ;;  %s12853_s29 = smov 0  }
   0x9 LB: > { %s9348_s30 = sadd.s32 4294967295, %s12788_s29   ;;  %p9349_p0 = scmp.ge.s32.totalorder %s12788_s29, 1  ;;  %s12788_s29 = sphi %s12853_s29, %s23_s29   ;;  %s12784_s28 = sphi %s12851_s28, %s14312_s28   ;;  %s12780_s27 = sphi %s12849_s27, %s14311_s27   ;;  %s12776_s26 = sphi %s12847_s26, %s14310_s26   ;;  %s12772_s25 = sphi %s12845_s25, %s14309_s25   ;;  %s12768_s24 = sphi %s12843_s24, %s14308_s24  }
   0xa   : > { %p12875_p1 = scmp.eq.s32.totalorder %s9348_s30, 0  ;;  %p225_p2 = scmp.lt.s32.totalorder %s12788_s29, 3 }
   0xb   : > { %s12790_s10 = smov [#allocation5]   ;;  %s12791_s12 = smov [#allocation8]  }
   0xc   : > { %s14298_s8 = scalar_select %p12875_p1, 1, 0 }
   0xd   : > { %p12880_p3 = pnand %p9349_p0, %p225_p2  ;;  %s238_s11 = sshll.u32 %s12790_s10, 4  ;;  %s239_s11 = int_to_ptr.vmem [resolvable:$true] %s238_s11 }
   0xe   : > { %s262_s13 = sshll.u32 %s12791_s12, 4  ;;  %s12792_s15 = smov [#allocation7]   ;;  %s12892_s13 = int_to_ptr.vmem [resolvable:$true] %s262_s13 }
   0xf   : > { %s14299_s9 = scalar_select %p12880_p3, 1, 0 }
  0x10   : > { %p10708_p4 = pneg %p12880_p3  ;;  %s248_s16 = sshll.u32 %s12792_s15, 4  ;;  %s12894_s16 = int_to_ptr.vmem [resolvable:$true] %s248_s16 }
  0x11   : > { %s14301_s2 = sld [smem:[#allocation17_spill]] }
  0x12   : > { %p12888_p5 = pnand %p10708_p4, %p12875_p1 }
  0x14   : > { %p12904_p7 = pneg %p12888_p5 }
  0x17   : > { %s12556_s19 = scalar_lea.hbm %s14301_s2, 96 }
  0x18   : > { %p12557_p6 = scmp.ne.s32.totalorder %s14301_s2, %s12556_s19  ;;  %p12563_p10 = scmp.lt.u32.totalorder %s12556_s19, %s14301_s2 }
  0x1a   : > { %p12559_p8 = pnand %p12904_p7, %p12557_p6 }
  0x1c   : > { %p12560_p9 = pneg %p12559_p8 }
  0x1e   : > { %p12565_p11 = pnand %p12563_p10, %p12560_p9 }
  0x20   : > { %12568 = shalt.err (!%p12565_p11)
}
  0x21   : > { %s12569_s10 = scalar_lea.vmem %s239_s11, 96  ;;  %p12577_p2 = scmp.lt.s32.totalorder %s239_s11, %s239_s11 }
  0x22   : > { %p12570_p12 = scmp.ne.s32.totalorder %s239_s11, %s12569_s10  ;;  %p12578_p4 = scmp.lt.s32.totalorder %s12569_s10, %s12569_s10 }
  0x24   : > { %p12572_p13 = pnand %p12570_p12, %p12904_p7  ;;  %p12579_p3 = por %p12578_p4, %p12577_p2 }
  0x26   : > { %p12573_p0 = pneg %p12572_p13 }
  0x28   : > { %p12580_p1 = pnand %p12579_p3, %p12573_p0 }
  0x2a   : > { %12583 = shalt.err (!%p12580_p1)
}
  0x2b   : > { %10711 = dma.hbm_to_vmem [thread:$0]  (!%p12888_p5), %s14301_s2, 96, %s239_s11, [#allocation6]  }
  0x2c   : > { %s12584_s19 = scalar_lea.hbm %s14290_s4, 64 }
  0x2d   : > { %p12585_p6 = scmp.ne.s32.totalorder %s14290_s4, %s12584_s19  ;;  %p12591_p1 = scmp.lt.u32.totalorder %s12584_s19, %s14290_s4 }
  0x2f   : > { %p12587_p8 = pnand %p12585_p6, %p12904_p7 }
  0x31   : > { %p12588_p9 = pneg %p12587_p8 }
  0x33   : > { %p12593_p3 = pnand %p12591_p1, %p12588_p9 }
  0x35   : > { %12596 = shalt.err (!%p12593_p3)
}
  0x36   : > { %s12597_s11 = scalar_lea.vmem %s12892_s13, 64  ;;  %p12605_p13 = scmp.lt.s32.totalorder %s12892_s13, %s12892_s13 }
  0x37   : > { %p12598_p10 = scmp.ne.s32.totalorder %s12892_s13, %s12597_s11  ;;  %p12606_p0 = scmp.lt.s32.totalorder %s12597_s11, %s12597_s11 }
  0x39   : > { %p12600_p11 = pnand %p12598_p10, %p12904_p7  ;;  %p12607_p2 = por %p12606_p0, %p12605_p13 }
  0x3b   : > { %p12601_p12 = pneg %p12600_p11 }
  0x3d   : > { %p12608_p4 = pnand %p12607_p2, %p12601_p12 }
  0x3f   : > { %12611 = shalt.err (!%p12608_p4)
}
  0x40   : > { %10717 = dma.hbm_to_vmem [thread:$0]  (!%p12888_p5), %s14290_s4, 64, %s12892_s13, [#allocation9]  }
  0x41   : > { %s12612_s18 = scalar_lea.hbm %s14289_s3, 24576 }
  0x42   : > { %p12613_p6 = scmp.ne.s32.totalorder %s14289_s3, %s12612_s18  ;;  %p12619_p1 = scmp.lt.u32.totalorder %s12612_s18, %s14289_s3 }
  0x44   : > { %p12615_p8 = pnand %p12613_p6, %p12904_p7 }
  0x46   : > { %p12616_p9 = pneg %p12615_p8 }
  0x48   : > { %p12621_p3 = pnand %p12619_p1, %p12616_p9 }
  0x4a   : > { %12624 = shalt.err (!%p12621_p3)
}
  0x4b   : > { %s12625_s13 = scalar_lea.vmem %s12894_s16, 24576  ;;  %p12633_p13 = scmp.lt.s32.totalorder %s12894_s16, %s12894_s16 }
  0x4c   : > { %p12626_p10 = scmp.ne.s32.totalorder %s12894_s16, %s12625_s13  ;;  %p12634_p0 = scmp.lt.s32.totalorder %s12625_s13, %s12625_s13 }
  0x4e   : > { %p12628_p11 = pnand %p12626_p10, %p12904_p7  ;;  %p12635_p2 = por %p12634_p0, %p12633_p13 }
  0x50   : > { %p12629_p12 = pneg %p12628_p11 }
  0x52   : > { %p12636_p4 = pnand %p12635_p2, %p12629_p12 }
  0x54   : > { %12639 = shalt.err (!%p12636_p4)
}
  0x55   : > { %s12793_s30 = smov 256   ;;  %s12794_s11 = smov 16  }
  0x56   : > { %10714 = dma.hbm_to_vmem [thread:$0]  (!%p12888_p5), %s14289_s3, 24576, %s12894_s16, [#allocation6], %s12793_s30, %s12793_s30, %s12794_s11  }
  0x57   : > { %s12795_s15 = smov [#allocation10]   ;;  %s12640_s20 = scalar_lea.hbm %s14291_s5, 8192 }
  0x58   : > { %s272_s17 = sshll.u32 %s12795_s15, 4  ;;  %p12641_p6 = scmp.ne.s32.totalorder %s14291_s5, %s12640_s20  ;;  %s273_s17 = int_to_ptr.vmem [resolvable:$true] %s272_s17 }
  0x59   : > { %p12647_p1 = scmp.lt.u32.totalorder %s12640_s20, %s14291_s5 }
  0x5a   : > { %p12643_p8 = pnand %p12641_p6, %p12904_p7 }
  0x5c   : > { %p12644_p9 = pneg %p12643_p8 }
  0x5e   : > { %p12649_p3 = pnand %p12647_p1, %p12644_p9 }
  0x60   : > { %12652 = shalt.err (!%p12649_p3)
}
  0x61   : > { %s12653_s16 = scalar_lea.vmem %s273_s17, 8192  ;;  %p12661_p13 = scmp.lt.s32.totalorder %s273_s17, %s273_s17 }
  0x62   : > { %p12654_p10 = scmp.ne.s32.totalorder %s273_s17, %s12653_s16  ;;  %p12662_p0 = scmp.lt.s32.totalorder %s12653_s16, %s12653_s16 }
  0x64   : > { %p12656_p11 = pnand %p12654_p10, %p12904_p7  ;;  %p12663_p2 = por %p12662_p0, %p12661_p13 }
  0x66   : > { %p12657_p12 = pneg %p12656_p11 }
  0x68   : > { %p12664_p4 = pnand %p12663_p2, %p12657_p12 }
  0x6a   : > { %12667 = shalt.err (!%p12664_p4)
}
  0x6b   : > { %s12796_s30 = smov 128   ;;  %s12797_s11 = smov 8  }
  0x6c   : > { %10720 = dma.hbm_to_vmem [thread:$0]  (!%p12888_p5), %s14291_s5, 8192, %s273_s17, [#allocation9], %s12796_s30, %s12796_s30, %s12797_s11  }
  0x6d   : > { %s12798_s12 = smov [#allocation11]   ;;  %s12668_s20 = scalar_lea.hbm %s14292_s6, 16 }
  0x6e   : > { %s286_s15 = sshll.u32 %s12798_s12, 4  ;;  %p12669_p6 = scmp.ne.s32.totalorder %s14292_s6, %s12668_s20  ;;  %s287_s15 = int_to_ptr.vmem [resolvable:$true] %s286_s15 }
  0x6f   : > { %p12675_p1 = scmp.lt.u32.totalorder %s12668_s20, %s14292_s6 }
  0x70   : > { %p12671_p8 = pnand %p12669_p6, %p12904_p7 }
  0x72   : > { %p12672_p9 = pneg %p12671_p8 }
  0x74   : > { %p12677_p3 = pnand %p12675_p1, %p12672_p9 }
  0x76   : > { %12680 = shalt.err (!%p12677_p3)
}
  0x77   : > { %s12681_s17 = scalar_lea.vmem %s287_s15, 16  ;;  %s12688_s30 = scalar_lea.vmem %s287_s15, 32 }
  0x78   : > { %p12682_p10 = scmp.ne.s32.totalorder %s287_s15, %s12681_s17  ;;  %p12689_p13 = scmp.lt.s32.totalorder %s287_s15, %s287_s15 }
  0x79   : > { %p12690_p0 = scmp.lt.s32.totalorder %s12688_s30, %s12681_s17 }
  0x7a   : > { %p12684_p11 = pnand %p12682_p10, %p12904_p7 }
  0x7b   : > { %p12691_p2 = por %p12690_p0, %p12689_p13 }
  0x7c   : > { %p12685_p12 = pneg %p12684_p11 }
  0x7e   : > { %p12692_p4 = pnand %p12691_p2, %p12685_p12 }
  0x80   : > { %12695 = shalt.err (!%p12692_p4)
}
  0x81   : > { %10723 = dma.hbm_to_vmem [thread:$0]  (!%p12888_p5), %s14292_s6, 16, %s287_s15, [#allocation12]  }
  0x82   : > { %s32_s22 = sadd.s32 1, %s12784_s28  ;;  %s70_s14 = sadd.s32 1, %s12776_s26 }
  0x83   : > { %p33_p7 = scmp.ge.s32.totalorder %s32_s22, 2  ;;  %p77_p6 = scmp.ne.s32.totalorder %s12776_s26, %s12772_s25 }
  0x84   : > { %p78_p8 = scmp.eq.s32.totalorder %s12788_s29, 0  ;;  %p83_p1 = scmp.ne.s32.totalorder %s12772_s25, %s12768_s24 }
  0x85   : > { %s14314_s22 = smov (%p33_p7, %s32_s22), 0  ;;  %p10733_p3 = scmp.lt.s32.totalorder %s12788_s29, 2 }
  0x86   : > { %p79_p9 = por %p78_p8, %p77_p6  ;;  %s67_s10 = ssub.s32 %s12784_s28, %s14314_s22 }
  0x87   : > { %p68_p10 = scmp.eq.s32.totalorder %s67_s10, 0  ;;  %p14303_p11 = scmp.ne.s32.totalorder %s14298_s8, 0 }
  0x88   : > { %s310_s15 = sand.u32 1, %s12776_s26   ;;  %s10734_s20 = smul.u32 122880, %s12784_s28 }
  0x89   : > { %p13016_p12 = por %p14303_p11, %p83_p1  ;;  %s10683_s19 = smul.u32 7680, %s310_s15 }
  0x8a   : > { %s13022_s18 = scalar_select %p68_p10, %s12776_s26, %s70_s14  }
  0x8b   : > { %p13025_p5 = pnand %p10733_p3, %p79_p9  ;;  %s13032_s24 = scalar_lea.hbm %s14287_s1, %s10734_s20 }
  0x8c   : > { %s314_s16 = scalar_lea.vmem [#allocation3], %s10683_s19  ;;  %s13036_s30 = scalar_lea.sflag [#allocation4], %s310_s15 }
  0x8d   : > { %s322_s17 = sshll.u32 %s314_s16, 4  ;;  %s12696_s11 = scalar_lea.hbm %s13032_s24, 122880  ;;  %s13034_s17 = int_to_ptr.vmem [resolvable:$true] %s322_s17 }
  0x8e   : > { %p12697_p13 = scmp.ne.s32.totalorder %s13032_s24, %s12696_s11  ;;  %p12698_p0 = pneg %p13025_p5 }
  0x8f   : > { %s12701_s10 = scalar_lea.hbm %s14287_s1, 245760  ;;  %p12702_p7 = scmp.lt.u32.totalorder %s13032_s24, %s14287_s1 }
  0x90   : > { %p12699_p2 = pnand %p12698_p0, %p12697_p13  ;;  %p12703_p6 = scmp.lt.u32.totalorder %s12701_s10, %s12696_s11 }
  0x91   : > { %p12705_p9 = scmp.lt.u32.totalorder %s12696_s11, %s13032_s24 }
  0x92   : > { %p12700_p4 = pneg %p12699_p2  ;;  %p12704_p8 = por %p12703_p6, %p12702_p7 }
  0x94   : > { %p12706_p1 = por %p12705_p9, %p12704_p8 }
  0x96   : > { %p12707_p3 = pnand %p12706_p1, %p12700_p4 }
  0x98   : > { %12710 = shalt.err (!%p12707_p3)
}
  0x99   : > { %s12711_s15 = scalar_lea.vmem %s13034_s17, 122880  ;;  %s12799_s19 = smov [#allocation3]  }
  0x9a   : > { %p12712_p10 = scmp.ne.s32.totalorder %s13034_s17, %s12711_s15  ;;  %s12716_s13 = sshll.u32 %s12799_s19, 4  ;;  %s12717_s13 = int_to_ptr.vmem [resolvable:$false] %s12716_s13 }
  0x9b   : > { %s12718_s16 = scalar_lea.vmem %s12717_s13, 245760  ;;  %p12719_p2 = scmp.lt.s32.totalorder %s13034_s17, %s12717_s13 }
  0x9c   : > { %p12714_p11 = pnand %p12712_p10, %p12698_p0  ;;  %p12720_p7 = scmp.lt.s32.totalorder %s12718_s16, %s12711_s15 }
  0x9e   : > { %p12715_p13 = pneg %p12714_p11  ;;  %p12721_p6 = por %p12720_p7, %p12719_p2 }
  0xa0   : > { %p12722_p8 = pnand %p12721_p6, %p12715_p13 }
  0xa2   : > { %12725 = shalt.err (!%p12722_p8)
}
  0xa3   : > { %s12800_s11 = smov 384   ;;  %s12801_s2 = smov 24  }
  0xa4   : > { %10727 = dma.hbm_to_vmem [thread:$0]  (!%p13025_p5), %s13032_s24, 122880, %s13034_s17, %s13036_s30, %s12800_s11, %s12800_s11, %s12801_s2  }
  0xa5   : > { %p14306_p0 = scmp.ne.s32.totalorder %s14299_s9, 0 }
  0xa6   : > { %s336_s14 = sand.u32 (!%p14306_p0), 1, %s12772_s25  }
  0xa7   : > { %334 = sbr.rel (%p14306_p0) target bundleno = 1995 (0x7cb), region = 48  ;;  %s337_s20 = scalar_lea.sflag (!%p14306_p0), [#allocation4], %s336_s14 }
  0xa8   : > { %s10685_s10 = smul.u32 (!%p14306_p0), 7680, %s336_s14 }
  0xaa   : > { %s13067_s23 = scalar_lea.vmem (!%p14306_p0), [#allocation3], %s10685_s10 }
  0xae   : > { %12751 = dma.done.wait (%p13016_p12), %s337_s20, 122880  }
  0xaf   : > { %12753 = vsyncadd (%p13016_p12), %s337_s20, 4294844416  ;;  %p14307_p4 = scmp.ne.s32.totalorder %s14298_s8, 0 }
  0xb1   : > { %12755 = dma.done.wait (%p14307_p4), [#allocation6], 24672  }
  0xb2   : > { %12757 = vsyncadd (%p14307_p4), [#allocation6], 4294942624 }
  0xb3   : > { %12759 = dma.done.wait (%p14307_p4), [#allocation9], 8256  }
  0xb4   : > { %12761 = vsyncadd (%p14307_p4), [#allocation9], 4294959040 }
  0xb5   : > { %12763 = dma.done.wait (%p14307_p4), [#allocation12], 16  }
  0xb6   : > { %12765 = vsyncadd (%p14307_p4), [#allocation12], 4294967280  ;;  %s399_s9 = smul.u32 20, %s12780_s27  ;;  %p9364_p5 = scmp.ne.s32.totalorder %s12780_s27, 0 }
  0xb7   : > { %v12802_v0 = vmov (!%p9364_p5), 0.0  }
  0xb8   : > { %p402_p12 = scmp.lt.s32.totalorder %s399_s9, 39  ;;  %417 = sbr.rel (%p9364_p5) target bundleno = 191 (0xbf), region = 76  ;;  %418 = vst [vmem:[#allocation2] sm:$0xff] (!%p9364_p5), %v12802_v0  ;;  %419 = vst [vmem:[#allocation2 + $0x8] sm:$0xff] (!%p9364_p5), %v12802_v0 }
  0xb9   : > { %420 = vst [vmem:[#allocation2 + $0x10] sm:$0xff] (!%p9364_p5), %v12802_v0  ;;  %421 = vst [vmem:[#allocation2 + $0x18] sm:$0xff] (!%p9364_p5), %v12802_v0 }
  0xba   : > { %s14316_s9 = smov (!%p402_p12, %s399_s9), 39  ;;  %422 = vst [vmem:[#allocation2 + $0x20] sm:$0xff] (!%p9364_p5), %v12802_v0  ;;  %423 = vst [vmem:[#allocation2 + $0x28] sm:$0xff] (!%p9364_p5), %v12802_v0 }
  0xbb   : > { %s9363_s12 = sshll.u32 %s14316_s9, 3 }
  0xbc   : > { %s13089_s17 = scalar_lea.vmem %s14286_s0, %s9363_s12 }
  0xbf PF: > { %v10800_v1 = vld [vmem:[%s13067_s23 + $0x4] ss:$24 sps:$4 sm:$0xff]   ;;  %v10804_v3 = vld [vmem:[%s13067_s23] ss:$24 sps:$4 sm:$0xff]   ;;  %v10806_v5 = vld [vmem:[%s13067_s23 + $0x34] ss:$24 sps:$4 sm:$0xff]  }
  0xc0   : > { %v10802_v2 = vld [vmem:[%s13067_s23 + $0x304] ss:$24 sps:$4 sm:$0xff]   ;;  %6230 = vmatprep.subr.bf16.mxu0 %v10800_v1  ;;  %v10805_v4 = vld [vmem:[%s13067_s23 + $0x300] ss:$24 sps:$4 sm:$0xff]   ;;  %v10808_v6 = vld [vmem:[%s13067_s23 + $0x334] ss:$24 sps:$4 sm:$0xff]  }
  0xc1   : > { %6271 = vmatprep.subr.bf16.mxu1 %v10802_v2  ;;  %6231 = vmatpush1.bf16.msra.mxu0 %v10804_v3  ;;  %v10810_v7 = vld [vmem:[%s13067_s23 + $0x30] ss:$24 sps:$4 sm:$0xff]   ;;  %v10812_v9 = vld [vmem:[%s13067_s23 + $0x64] ss:$24 sps:$4 sm:$0xff]   ;;  %v10816_v11 = vld [vmem:[%s13067_s23 + $0x60] ss:$24 sps:$4 sm:$0xff]  }
  0xc2   : > { %6272 = vmatpush1.bf16.msra.mxu1 %v10805_v4  ;;  %6232 = vmatprep.subr.bf16.mxu0 %v10806_v5  ;;  %v10811_v8 = vld [vmem:[%s13067_s23 + $0x330] ss:$24 sps:$4 sm:$0xff]   ;;  %v10814_v10 = vld [vmem:[%s13067_s23 + $0x364] ss:$24 sps:$4 sm:$0xff]   ;;  %v10817_v12 = vld [vmem:[%s13067_s23 + $0x360] ss:$24 sps:$4 sm:$0xff]  }
  0xc3   : > { %6273 = vmatprep.subr.bf16.mxu1 %v10808_v6  ;;  %v10818_v13 = vld [vmem:[%s13067_s23 + $0x94] ss:$24 sps:$4 sm:$0xff]   ;;  %v10822_v15 = vld [vmem:[%s13067_s23 + $0x90] ss:$24 sps:$4 sm:$0xff]   ;;  %v10824_v17 = vld [vmem:[%s13067_s23 + $0xc4] ss:$24 sps:$4 sm:$0xff]  }
  0xc4   : > { %v10820_v14 = vld [vmem:[%s13067_s23 + $0x394] ss:$24 sps:$4 sm:$0xff]   ;;  %v10823_v16 = vld [vmem:[%s13067_s23 + $0x390] ss:$24 sps:$4 sm:$0xff]   ;;  %v10826_v18 = vld [vmem:[%s13067_s23 + $0x3c4] ss:$24 sps:$4 sm:$0xff]  }
  0xc5   : > { %6233 = vmatpush1.bf16.msra.mxu0 %v10810_v7  ;;  %v10828_v19 = vld [vmem:[%s13067_s23 + $0xc0] ss:$24 sps:$4 sm:$0xff]   ;;  %v10830_v21 = vld [vmem:[%s13067_s23 + $0xf4] ss:$24 sps:$4 sm:$0xff]   ;;  %v10834_v23 = vld [vmem:[%s13067_s23 + $0xf0] ss:$24 sps:$4 sm:$0xff]  }
  0xc6   : > { %6274 = vmatpush1.bf16.msra.mxu1 %v10811_v8  ;;  %6234 = vmatprep.subr.bf16.mxu0 %v10812_v9  ;;  %v10829_v20 = vld [vmem:[%s13067_s23 + $0x3c0] ss:$24 sps:$4 sm:$0xff]   ;;  %v10832_v22 = vld [vmem:[%s13067_s23 + $0x3f4] ss:$24 sps:$4 sm:$0xff]   ;;  %v10835_v24 = vld [vmem:[%s13067_s23 + $0x3f0] ss:$24 sps:$4 sm:$0xff]  }
  0xc7   : > { %6275 = vmatprep.subr.bf16.mxu1 %v10814_v10  ;;  %v10836_v25 = vld [vmem:[%s13067_s23 + $0x124] ss:$24 sps:$4 sm:$0xff]   ;;  %v10840_v27 = vld [vmem:[%s13067_s23 + $0x120] ss:$24 sps:$4 sm:$0xff]   ;;  %v10842_v29 = vld [vmem:[%s13067_s23 + $0x154] ss:$24 sps:$4 sm:$0xff]  }
  0xc8   : > { %v10838_v26 = vld [vmem:[%s13067_s23 + $0x424] ss:$24 sps:$4 sm:$0xff]   ;;  %v10841_v28 = vld [vmem:[%s13067_s23 + $0x420] ss:$24 sps:$4 sm:$0xff]   ;;  %v10844_v30 = vld [vmem:[%s13067_s23 + $0x454] ss:$24 sps:$4 sm:$0xff]  }
  0xc9   : > { %6235 = vmatpush1.bf16.msra.mxu0 %v10816_v11  ;;  %v10846_v31 = vld [vmem:[%s13067_s23 + $0x150] ss:$24 sps:$4 sm:$0xff]   ;;  %v10848_v33 = vld [vmem:[%s13067_s23 + $0x184] ss:$24 sps:$4 sm:$0xff]   ;;  %v10852_v35 = vld [vmem:[%s13067_s23 + $0x180] ss:$24 sps:$4 sm:$0xff]  }
  0xca   : > { %6276 = vmatpush1.bf16.msra.mxu1 %v10817_v12  ;;  %6236 = vmatprep.subr.bf16.mxu0 %v10818_v13  ;;  %v10847_v32 = vld [vmem:[%s13067_s23 + $0x450] ss:$24 sps:$4 sm:$0xff]   ;;  %v10850_v34 = vld [vmem:[%s13067_s23 + $0x484] ss:$24 sps:$4 sm:$0xff]   ;;  %v10853_v36 = vld [vmem:[%s13067_s23 + $0x480] ss:$24 sps:$4 sm:$0xff]  }
  0xcb   : > { %6277 = vmatprep.subr.bf16.mxu1 %v10820_v14  ;;  %v10854_v37 = vld [vmem:[%s13067_s23 + $0x1b4] ss:$24 sps:$4 sm:$0xff]   ;;  %v10858_v39 = vld [vmem:[%s13067_s23 + $0x1b0] ss:$24 sps:$4 sm:$0xff]   ;;  %v10860_v41 = vld [vmem:[%s13067_s23 + $0x1e4] ss:$24 sps:$4 sm:$0xff]  }
  0xcc   : > { %v10856_v38 = vld [vmem:[%s13067_s23 + $0x4b4] ss:$24 sps:$4 sm:$0xff]   ;;  %v10859_v40 = vld [vmem:[%s13067_s23 + $0x4b0] ss:$24 sps:$4 sm:$0xff]   ;;  %v10862_v42 = vld [vmem:[%s13067_s23 + $0x4e4] ss:$24 sps:$4 sm:$0xff]  }
  0xcd   : > { %6237 = vmatpush1.bf16.msra.mxu0 %v10822_v15  ;;  %v10864_v43 = vld [vmem:[%s13067_s23 + $0x1e0] ss:$24 sps:$4 sm:$0xff]   ;;  %v10866_v45 = vld [vmem:[%s13067_s23 + $0x214] ss:$24 sps:$4 sm:$0xff]   ;;  %v10870_v48 = vld [vmem:[%s13067_s23 + $0x210] ss:$24 sps:$4 sm:$0xff]  }
  0xce   : > { %6278 = vmatpush1.bf16.msra.mxu1 %v10823_v16  ;;  %6238 = vmatprep.subr.bf16.mxu0 %v10824_v17  ;;  %v10865_v44 = vld [vmem:[%s13067_s23 + $0x4e0] ss:$24 sps:$4 sm:$0xff]   ;;  %v10868_v46 = vld [vmem:[%s13067_s23 + $0x514] ss:$24 sps:$4 sm:$0xff]   ;;  %v10871_v49 = vld [vmem:[%s13067_s23 + $0x510] ss:$24 sps:$4 sm:$0xff]  }
  0xcf   : > { %6279 = vmatprep.subr.bf16.mxu1 %v10826_v18  ;;  %v431_v47 = vld [vmem:[%s13089_s17 + $0x8] sm:$0xff]  ;;  %v433_v51 = vld [vmem:[%s13089_s17 + $0x18] sm:$0xff]  ;;  %v430_v5 = vld [vmem:[%s13089_s17] sm:$0xff]  ;;  %p10325_p9 = scmp.ne.s32.totalorder %s12780_s27, 1 }
  0xd0   : > { %v13141_v50 = vpack.c.bf16 %v431_v47, %v431_v47  ;;  %v10872_v52 = vld [vmem:[%s13067_s23 + $0x244] ss:$24 sps:$4 sm:$0xff]   ;;  %v13145_v53 = vpack.c.bf16 %v433_v51, %v433_v51  ;;  %v10876_v55 = vld [vmem:[%s13067_s23 + $0x240] ss:$24 sps:$4 sm:$0xff]   ;;  %v10878_v57 = vld [vmem:[%s13067_s23 + $0x274] ss:$24 sps:$4 sm:$0xff]   ;;  %v13168_v9 = vpack.c.bf16 %v430_v5, %v430_v5 }
  0xd1   : > { %6239 = vmatpush1.bf16.msra.mxu0 %v10828_v19  ;;  %v10874_v54 = vld [vmem:[%s13067_s23 + $0x544] ss:$24 sps:$4 sm:$0xff]   ;;  %v10877_v56 = vld [vmem:[%s13067_s23 + $0x540] ss:$24 sps:$4 sm:$0xff]   ;;  %v10880_v58 = vld [vmem:[%s13067_s23 + $0x574] ss:$24 sps:$4 sm:$0xff]  }
  0xd2   : > { %6280 = vmatpush1.bf16.msra.mxu1 %v10829_v20  ;;  %6240 = vmatprep.subr.bf16.mxu0 %v10830_v21  ;;  %v10882_v59 = vld [vmem:[%s13067_s23 + $0x270] ss:$24 sps:$4 sm:$0xff]   ;;  %v10884_v61 = vld [vmem:[%s13067_s23 + $0x2a4] ss:$24 sps:$4 sm:$0xff]   ;;  %v10888_v63 = vld [vmem:[%s13067_s23 + $0x2a0] ss:$24 sps:$4 sm:$0xff]  }
  0xd3   : > { %6281 = vmatprep.subr.bf16.mxu1 %v10832_v22  ;;  %6262 = vmatprep.mubr.bf16.mxu0 %v13141_v50  ;;  %v10883_v60 = vld [vmem:[%s13067_s23 + $0x570] ss:$24 sps:$4 sm:$0xff]   ;;  %v10886_v62 = vld [vmem:[%s13067_s23 + $0x5a4] ss:$24 sps:$4 sm:$0xff]   ;;  %v10889_v0 = vld [vmem:[%s13067_s23 + $0x5a0] ss:$24 sps:$4 sm:$0xff]  }
  0xd4   : > { %6303 = vmatprep.mubr.bf16.mxu1 %v13145_v53  ;;  %v10890_v1 = vld [vmem:[%s13067_s23 + $0x2d4] ss:$24 sps:$4 sm:$0xff]   ;;  %v10894_v3 = vld [vmem:[%s13067_s23 + $0x2d0] ss:$24 sps:$4 sm:$0xff]   ;;  %v432_v6 = vld [vmem:[%s13089_s17 + $0x10] sm:$0xff] }
  0xd5   : > { %6241 = vmatpush1.bf16.msra.mxu0 %v10834_v23  ;;  %v10892_v2 = vld [vmem:[%s13067_s23 + $0x5d4] ss:$24 sps:$4 sm:$0xff]   ;;  %v10895_v4 = vld [vmem:[%s13067_s23 + $0x5d0] ss:$24 sps:$4 sm:$0xff]   ;;  %v10898_v7 = vld [vmem:[%s13067_s23 + $0x604] ss:$24 sps:$4 sm:$0xff]   ;;  %v13170_v10 = vpack.c.bf16 %v432_v6, %v432_v6 }
  0xd6   : > { %6282 = vmatpush1.bf16.msra.mxu1 %v10835_v24  ;;  %6242 = vmatprep.subr.bf16.mxu0 %v10836_v25  ;;  %v10901_v8 = vld [vmem:[%s13067_s23 + $0x904] ss:$24 sps:$4 sm:$0xff]   ;;  %v10896_v11 = vld [vmem:[%s13067_s23 + $0x600] ss:$24 sps:$4 sm:$0xff]   ;;  %v10904_v13 = vld [vmem:[%s13067_s23 + $0x634] ss:$24 sps:$4 sm:$0xff]  }
  0xd7   : > { %6283 = vmatprep.subr.bf16.mxu1 %v10838_v26  ;;  %v10899_v12 = vld [vmem:[%s13067_s23 + $0x900] ss:$24 sps:$4 sm:$0xff]   ;;  %v10907_v14 = vld [vmem:[%s13067_s23 + $0x934] ss:$24 sps:$4 sm:$0xff]   ;;  %v10902_v15 = vld [vmem:[%s13067_s23 + $0x630] ss:$24 sps:$4 sm:$0xff]  }
  0xd8   : > { %v10905_v16 = vld [vmem:[%s13067_s23 + $0x930] ss:$24 sps:$4 sm:$0xff]   ;;  %v10910_v17 = vld [vmem:[%s13067_s23 + $0x664] ss:$24 sps:$4 sm:$0xff]   ;;  %v10908_v19 = vld [vmem:[%s13067_s23 + $0x660] ss:$24 sps:$4 sm:$0xff]  }
  0xd9   : > { %6243 = vmatpush1.bf16.msra.mxu0 %v10840_v27  ;;  %v10913_v18 = vld [vmem:[%s13067_s23 + $0x964] ss:$24 sps:$4 sm:$0xff]   ;;  %v10911_v20 = vld [vmem:[%s13067_s23 + $0x960] ss:$24 sps:$4 sm:$0xff]   ;;  %v10916_v21 = vld [vmem:[%s13067_s23 + $0x694] ss:$24 sps:$4 sm:$0xff]  }
  0xda   : > { %6284 = vmatpush1.bf16.msra.mxu1 %v10841_v28  ;;  %6244 = vmatprep.subr.bf16.mxu0 %v10842_v29  ;;  %v10919_v22 = vld [vmem:[%s13067_s23 + $0x994] ss:$24 sps:$4 sm:$0xff]   ;;  %v10914_v23 = vld [vmem:[%s13067_s23 + $0x690] ss:$24 sps:$4 sm:$0xff]   ;;  %v10922_v25 = vld [vmem:[%s13067_s23 + $0x6c4] ss:$24 sps:$4 sm:$0xff]  }
  0xdb   : > { %6285 = vmatprep.subr.bf16.mxu1 %v10844_v30  ;;  %v10917_v24 = vld [vmem:[%s13067_s23 + $0x990] ss:$24 sps:$4 sm:$0xff]   ;;  %v10925_v26 = vld [vmem:[%s13067_s23 + $0x9c4] ss:$24 sps:$4 sm:$0xff]   ;;  %v10920_v27 = vld [vmem:[%s13067_s23 + $0x6c0] ss:$24 sps:$4 sm:$0xff]  }
  0xdc   : > { %v10923_v28 = vld [vmem:[%s13067_s23 + $0x9c0] ss:$24 sps:$4 sm:$0xff]   ;;  %v10928_v29 = vld [vmem:[%s13067_s23 + $0x6f4] ss:$24 sps:$4 sm:$0xff]   ;;  %v10974_v5 = vld [vmem:[%s13067_s23 + $0x870] ss:$24 sps:$4 sm:$0xff]  }
  0xdd   : > { %6245 = vmatpush1.bf16.msra.mxu0 %v10846_v31  ;;  %v10931_v30 = vld [vmem:[%s13067_s23 + $0x9f4] ss:$24 sps:$4 sm:$0xff]   ;;  %v10926_v31 = vld [vmem:[%s13067_s23 + $0x6f0] ss:$24 sps:$4 sm:$0xff]   ;;  %v10944_v47 = vld [vmem:[%s13067_s23 + $0x780] ss:$24 sps:$4 sm:$0xff]  }
  0xde   : > { %6286 = vmatpush1.bf16.msra.mxu1 %v10847_v32  ;;  %6246 = vmatprep.subr.bf16.mxu0 %v10848_v33  ;;  %v10929_v32 = vld [vmem:[%s13067_s23 + $0x9f0] ss:$24 sps:$4 sm:$0xff]   ;;  %v10934_v33 = vld [vmem:[%s13067_s23 + $0x724] ss:$24 sps:$4 sm:$0xff]   ;;  %v10955_v51 = vld [vmem:[%s13067_s23 + $0xab4] ss:$24 sps:$4 sm:$0xff]  }
  0xdf   : > { %6287 = vmatprep.subr.bf16.mxu1 %v10850_v34  ;;  %v10937_v34 = vld [vmem:[%s13067_s23 + $0xa24] ss:$24 sps:$4 sm:$0xff]   ;;  %v10977_v6 = vld [vmem:[%s13067_s23 + $0xb70] ss:$24 sps:$4 sm:$0xff]  }
  0xe1   : > { %6247 = vmatpush1.bf16.msra.mxu0 %v10852_v35  ;;  %v435_v35 = vld [vmem:[%s13089_s17 + $0x28] sm:$0xff] }
  0xe2   : > { %6288 = vmatpush1.bf16.msra.mxu1 %v10853_v36  ;;  %6248 = vmatprep.subr.bf16.mxu0 %v10854_v37  ;;  %v10932_v36 = vld [vmem:[%s13067_s23 + $0x720] ss:$24 sps:$4 sm:$0xff]  }
  0xe3   : > { %6289 = vmatprep.subr.bf16.mxu1 %v10856_v38  ;;  %v10935_v37 = vld [vmem:[%s13067_s23 + $0xa20] ss:$24 sps:$4 sm:$0xff]   ;;  %v13201_v38 = vpack.c.bf16 %v435_v35, %v435_v35 }
  0xe4   : > { %v11004_v35 = vld [vmem:[%s13067_s23 + $0xc60] ss:$24 sps:$4 sm:$0xff]  }
  0xe5   : > { %6249 = vmatpush1.bf16.msra.mxu0 %v10858_v39  ;;  %v437_v39 = vld [vmem:[%s13089_s17 + $0x38] sm:$0xff] }
  0xe6   : > { %6290 = vmatpush1.bf16.msra.mxu1 %v10859_v40  ;;  %6250 = vmatprep.subr.bf16.mxu0 %v10860_v41  ;;  %v10940_v40 = vld [vmem:[%s13067_s23 + $0x754] ss:$24 sps:$4 sm:$0xff]   ;;  %v13205_v41 = vpack.c.bf16 %v437_v39, %v437_v39 }
  0xe7   : > { %6291 = vmatprep.subr.bf16.mxu1 %v10862_v42  ;;  %v10943_v42 = vld [vmem:[%s13067_s23 + $0xa54] ss:$24 sps:$4 sm:$0xff]  }
  0xe8   : > { %v11015_v39 = vld [vmem:[%s13067_s23 + $0xf94] ss:$24 sps:$4 sm:$0xff]  }
  0xe9   : > { %6251 = vmatpush1.bf16.msra.mxu0 %v10864_v43  ;;  %v10938_v43 = vld [vmem:[%s13067_s23 + $0x750] ss:$24 sps:$4 sm:$0xff]  }
  0xea   : > { %6292 = vmatpush1.bf16.msra.mxu1 %v10865_v44  ;;  %6252 = vmatprep.subr.bf16.mxu0 %v10866_v45  ;;  %v10941_v44 = vld [vmem:[%s13067_s23 + $0xa50] ss:$24 sps:$4 sm:$0xff]   ;;  %v10946_v45 = vld [vmem:[%s13067_s23 + $0x784] ss:$24 sps:$4 sm:$0xff]  }
  0xeb   : > { %6293 = vmatprep.subr.bf16.mxu1 %v10868_v46  ;;  %v10949_v46 = vld [vmem:[%s13067_s23 + $0xa84] ss:$24 sps:$4 sm:$0xff]  }
  0xed   : > { %6253 = vmatpush1.bf16.msra.mxu0 %v10870_v48  ;;  %v10947_v48 = vld [vmem:[%s13067_s23 + $0xa80] ss:$24 sps:$4 sm:$0xff]  }
  0xee   : > { %6294 = vmatpush1.bf16.msra.mxu1 %v10871_v49  ;;  %6254 = vmatprep.subr.bf16.mxu0 %v10872_v52  ;;  %v10952_v49 = vld [vmem:[%s13067_s23 + $0x7b4] ss:$24 sps:$4 sm:$0xff]   ;;  %v10950_v52 = vld [vmem:[%s13067_s23 + $0x7b0] ss:$24 sps:$4 sm:$0xff]  }
  0xef   : > { %6295 = vmatprep.subr.bf16.mxu1 %v10874_v54  ;;  %v10953_v54 = vld [vmem:[%s13067_s23 + $0xab0] ss:$24 sps:$4 sm:$0xff]  }
  0xf1   : > { %6255 = vmatpush1.bf16.msra.mxu0 %v10876_v55  ;;  %v10958_v55 = vld [vmem:[%s13067_s23 + $0x7e4] ss:$24 sps:$4 sm:$0xff]  }
  0xf2   : > { %6296 = vmatpush1.bf16.msra.mxu1 %v10877_v56  ;;  %6256 = vmatprep.subr.bf16.mxu0 %v10878_v57  ;;  %v10961_v56 = vld [vmem:[%s13067_s23 + $0xae4] ss:$24 sps:$4 sm:$0xff]   ;;  %v10956_v57 = vld [vmem:[%s13067_s23 + $0x7e0] ss:$24 sps:$4 sm:$0xff]  }
  0xf3   : > { %6297 = vmatprep.subr.bf16.mxu1 %v10880_v58  ;;  %v10959_v58 = vld [vmem:[%s13067_s23 + $0xae0] ss:$24 sps:$4 sm:$0xff]  }
  0xf5   : > { %6257 = vmatpush1.bf16.msra.mxu0 %v10882_v59  ;;  %v10964_v59 = vld [vmem:[%s13067_s23 + $0x814] ss:$24 sps:$4 sm:$0xff]  }
  0xf6   : > { %6298 = vmatpush1.bf16.msra.mxu1 %v10883_v60  ;;  %6258 = vmatprep.subr.bf16.mxu0 %v10884_v61  ;;  %v10967_v60 = vld [vmem:[%s13067_s23 + $0xb14] ss:$24 sps:$4 sm:$0xff]   ;;  %v10962_v61 = vld [vmem:[%s13067_s23 + $0x810] ss:$24 sps:$4 sm:$0xff]  }
  0xf7   : > { %6299 = vmatprep.subr.bf16.mxu1 %v10886_v62  ;;  %v10965_v62 = vld [vmem:[%s13067_s23 + $0xb10] ss:$24 sps:$4 sm:$0xff]  }
  0xf9   : > { %6259 = vmatpush1.bf16.msra.mxu0 %v10888_v63  ;;  %v10970_v63 = vld [vmem:[%s13067_s23 + $0x844] ss:$24 sps:$4 sm:$0xff]  }
  0xfa   : > { %6300 = vmatpush1.bf16.msra.mxu1 %v10889_v0  ;;  %6260 = vmatprep.subr.bf16.mxu0 %v10890_v1  ;;  %v10973_v0 = vld [vmem:[%s13067_s23 + $0xb44] ss:$24 sps:$4 sm:$0xff]   ;;  %v10968_v1 = vld [vmem:[%s13067_s23 + $0x840] ss:$24 sps:$4 sm:$0xff]  }
  0xfb   : > { %6301 = vmatprep.subr.bf16.mxu1 %v10892_v2  ;;  %v10971_v2 = vld [vmem:[%s13067_s23 + $0xb40] ss:$24 sps:$4 sm:$0xff]  }
  0xfd   : > { %6261 = vmatpush1.bf16.msra.mxu0 %v10894_v3  ;;  %v10976_v3 = vld [vmem:[%s13067_s23 + $0x874] ss:$24 sps:$4 sm:$0xff]  }
  0xfe   : > { %6302 = vmatpush1.bf16.msra.mxu1 %v10895_v4  ;;  %6312 = vmatprep.subr.bf16.mxu0 %v10898_v7  ;;  %v10979_v4 = vld [vmem:[%s13067_s23 + $0xb74] ss:$24 sps:$4 sm:$0xff]   ;;  %v10982_v7 = vld [vmem:[%s13067_s23 + $0x8a4] ss:$24 sps:$4 sm:$0xff]  }
  0xff   : > { %6353 = vmatprep.subr.bf16.mxu1 %v10901_v8  ;;  %v10985_v8 = vld [vmem:[%s13067_s23 + $0xba4] ss:$24 sps:$4 sm:$0xff]  }
 0x100   : > { %6263 = vmatmul.mubr.bf16.vlgmr.msra.gmra.mrb[0].mxu0 %v13168_v9 }
 0x101   : > { %6304 = vmatmul.mubr.bf16.vlgmr.msra.gmra.mrb[0].mxu1 %v13170_v10  ;;  %6313 = vmatpush1.bf16.msra.mxu0 %v10896_v11  ;;  %v10980_v11 = vld [vmem:[%s13067_s23 + $0x8a0] ss:$24 sps:$4 sm:$0xff]  }
 0x102   : > { %6354 = vmatpush1.bf16.msra.mxu1 %v10899_v12  ;;  %6314 = vmatprep.subr.bf16.mxu0 %v10904_v13  ;;  %v10983_v12 = vld [vmem:[%s13067_s23 + $0xba0] ss:$24 sps:$4 sm:$0xff]   ;;  %v10988_v13 = vld [vmem:[%s13067_s23 + $0x8d4] ss:$24 sps:$4 sm:$0xff]  }
 0x103   : > { %6355 = vmatprep.subr.bf16.mxu1 %v10907_v14  ;;  %6344 = vmatprep.mubr.bf16.mxu0 %v13201_v38  ;;  %v10991_v14 = vld [vmem:[%s13067_s23 + $0xbd4] ss:$24 sps:$4 sm:$0xff]  }
 0x104   : > { %6385 = vmatprep.mubr.bf16.mxu1 %v13205_v41 }
 0x105   : > { %6315 = vmatpush1.bf16.msra.mxu0 %v10902_v15  ;;  %v10986_v15 = vld [vmem:[%s13067_s23 + $0x8d0] ss:$24 sps:$4 sm:$0xff]  }
 0x106   : > { %6356 = vmatpush1.bf16.msra.mxu1 %v10905_v16  ;;  %6316 = vmatprep.subr.bf16.mxu0 %v10910_v17  ;;  %v10989_v16 = vld [vmem:[%s13067_s23 + $0xbd0] ss:$24 sps:$4 sm:$0xff]  }
 0x107   : > { %6357 = vmatprep.subr.bf16.mxu1 %v10913_v18  ;;  %v434_v17 = vld [vmem:[%s13089_s17 + $0x20] sm:$0xff]  ;;  %v436_v18 = vld [vmem:[%s13089_s17 + $0x30] sm:$0xff] }
 0x109   : > { %6317 = vmatpush1.bf16.msra.mxu0 %v10908_v19  ;;  %v10994_v19 = vld [vmem:[%s13067_s23 + $0xc04] ss:$24 sps:$4 sm:$0xff]  }
 0x10a   : > { %6358 = vmatpush1.bf16.msra.mxu1 %v10911_v20  ;;  %6318 = vmatprep.subr.bf16.mxu0 %v10916_v21  ;;  %v10997_v20 = vld [vmem:[%s13067_s23 + $0xf04] ss:$24 sps:$4 sm:$0xff]   ;;  %v13248_v21 = vpack.c.bf16 %v434_v17, %v434_v17  ;;  %v11064_v17 = vld [vmem:[%s13067_s23 + $0xe40] ss:$24 sps:$4 sm:$0xff]  }
 0x10b   : > { %6359 = vmatprep.subr.bf16.mxu1 %v10919_v22  ;;  %v13250_v22 = vpack.c.bf16 %v436_v18, %v436_v18  ;;  %v11067_v18 = vld [vmem:[%s13067_s23 + $0x1140] ss:$24 sps:$4 sm:$0xff]  }
 0x10d   : > { %6319 = vmatpush1.bf16.msra.mxu0 %v10914_v23  ;;  %v10992_v23 = vld [vmem:[%s13067_s23 + $0xc00] ss:$24 sps:$4 sm:$0xff]  }
 0x10e   : > { %6360 = vmatpush1.bf16.msra.mxu1 %v10917_v24  ;;  %6320 = vmatprep.subr.bf16.mxu0 %v10922_v25  ;;  %v10995_v24 = vld [vmem:[%s13067_s23 + $0xf00] ss:$24 sps:$4 sm:$0xff]   ;;  %v11000_v25 = vld [vmem:[%s13067_s23 + $0xc34] ss:$24 sps:$4 sm:$0xff]  }
 0x10f   : > { %6361 = vmatprep.subr.bf16.mxu1 %v10925_v26  ;;  %v11003_v26 = vld [vmem:[%s13067_s23 + $0xf34] ss:$24 sps:$4 sm:$0xff]  }
 0x111   : > { %6321 = vmatpush1.bf16.msra.mxu0 %v10920_v27  ;;  %v439_v27 = vld [vmem:[%s13089_s17 + $0x48] sm:$0xff] }
 0x112   : > { %6362 = vmatpush1.bf16.msra.mxu1 %v10923_v28  ;;  %6322 = vmatprep.subr.bf16.mxu0 %v10928_v29  ;;  %v10998_v28 = vld [vmem:[%s13067_s23 + $0xc30] ss:$24 sps:$4 sm:$0xff]  }
 0x113   : > { %6363 = vmatprep.subr.bf16.mxu1 %v10931_v30  ;;  %v11001_v29 = vld [vmem:[%s13067_s23 + $0xf30] ss:$24 sps:$4 sm:$0xff]   ;;  %v13261_v30 = vpack.c.bf16 %v439_v27, %v439_v27  ;;  %v11076_v27 = vld [vmem:[%s13067_s23 + $0xea0] ss:$24 sps:$4 sm:$0xff]  }
 0x115   : > { %6323 = vmatpush1.bf16.msra.mxu0 %v10926_v31  ;;  %v441_v31 = vld [vmem:[%s13089_s17 + $0x58] sm:$0xff] }
 0x116   : > { %6364 = vmatpush1.bf16.msra.mxu1 %v10929_v32  ;;  %6324 = vmatprep.subr.bf16.mxu0 %v10934_v33  ;;  %v11006_v32 = vld [vmem:[%s13067_s23 + $0xc64] ss:$24 sps:$4 sm:$0xff]   ;;  %v13265_v33 = vpack.c.bf16 %v441_v31, %v441_v31  ;;  %v11087_v31 = vld [vmem:[%s13067_s23 + $0x11d4] ss:$24 sps:$4 sm:$0xff]  }
 0x117   : > { %6365 = vmatprep.subr.bf16.mxu1 %v10937_v34  ;;  %v11009_v34 = vld [vmem:[%s13067_s23 + $0xf64] ss:$24 sps:$4 sm:$0xff]  }
 0x119   : > { %6325 = vmatpush1.bf16.msra.mxu0 %v10932_v36  ;;  %v11007_v36 = vld [vmem:[%s13067_s23 + $0xf60] ss:$24 sps:$4 sm:$0xff]  }
 0x11a   : > { %6366 = vmatpush1.bf16.msra.mxu1 %v10935_v37  ;;  %6326 = vmatprep.subr.bf16.mxu0 %v10940_v40  ;;  %v11012_v37 = vld [vmem:[%s13067_s23 + $0xc94] ss:$24 sps:$4 sm:$0xff]   ;;  %v11010_v40 = vld [vmem:[%s13067_s23 + $0xc90] ss:$24 sps:$4 sm:$0xff]  }
 0x11b   : > { %6367 = vmatprep.subr.bf16.mxu1 %v10943_v42  ;;  %v11013_v42 = vld [vmem:[%s13067_s23 + $0xf90] ss:$24 sps:$4 sm:$0xff]  }
 0x11d   : > { %6327 = vmatpush1.bf16.msra.mxu0 %v10938_v43  ;;  %v11018_v43 = vld [vmem:[%s13067_s23 + $0xcc4] ss:$24 sps:$4 sm:$0xff]  }
 0x11e   : > { %6368 = vmatpush1.bf16.msra.mxu1 %v10941_v44  ;;  %6328 = vmatprep.subr.bf16.mxu0 %v10946_v45  ;;  %v11021_v44 = vld [vmem:[%s13067_s23 + $0xfc4] ss:$24 sps:$4 sm:$0xff]   ;;  %v11016_v45 = vld [vmem:[%s13067_s23 + $0xcc0] ss:$24 sps:$4 sm:$0xff]  }
 0x11f   : > { %6369 = vmatprep.subr.bf16.mxu1 %v10949_v46  ;;  %v11019_v46 = vld [vmem:[%s13067_s23 + $0xfc0] ss:$24 sps:$4 sm:$0xff]  }
 0x121   : > { %6329 = vmatpush1.bf16.msra.mxu0 %v10944_v47  ;;  %v11024_v47 = vld [vmem:[%s13067_s23 + $0xcf4] ss:$24 sps:$4 sm:$0xff]  }
 0x122   : > { %6370 = vmatpush1.bf16.msra.mxu1 %v10947_v48  ;;  %6330 = vmatprep.subr.bf16.mxu0 %v10952_v49  ;;  %v11027_v48 = vld [vmem:[%s13067_s23 + $0xff4] ss:$24 sps:$4 sm:$0xff]   ;;  %v11022_v49 = vld [vmem:[%s13067_s23 + $0xcf0] ss:$24 sps:$4 sm:$0xff]  }
 0x123   : > { %6371 = vmatprep.subr.bf16.mxu1 %v10955_v51  ;;  %v11025_v51 = vld [vmem:[%s13067_s23 + $0xff0] ss:$24 sps:$4 sm:$0xff]  }
 0x125   : > { %6331 = vmatpush1.bf16.msra.mxu0 %v10950_v52  ;;  %v11030_v52 = vld [vmem:[%s13067_s23 + $0xd24] ss:$24 sps:$4 sm:$0xff]  }
 0x126   : > { %6372 = vmatpush1.bf16.msra.mxu1 %v10953_v54  ;;  %6332 = vmatprep.subr.bf16.mxu0 %v10958_v55  ;;  %v11033_v54 = vld [vmem:[%s13067_s23 + $0x1024] ss:$24 sps:$4 sm:$0xff]   ;;  %v11028_v55 = vld [vmem:[%s13067_s23 + $0xd20] ss:$24 sps:$4 sm:$0xff]  }
 0x127   : > { %6373 = vmatprep.subr.bf16.mxu1 %v10961_v56  ;;  %v11031_v56 = vld [vmem:[%s13067_s23 + $0x1020] ss:$24 sps:$4 sm:$0xff]  }
 0x129   : > { %6333 = vmatpush1.bf16.msra.mxu0 %v10956_v57  ;;  %v11036_v57 = vld [vmem:[%s13067_s23 + $0xd54] ss:$24 sps:$4 sm:$0xff]  }
 0x12a   : > { %6374 = vmatpush1.bf16.msra.mxu1 %v10959_v58  ;;  %6334 = vmatprep.subr.bf16.mxu0 %v10964_v59  ;;  %v11039_v58 = vld [vmem:[%s13067_s23 + $0x1054] ss:$24 sps:$4 sm:$0xff]   ;;  %v11034_v59 = vld [vmem:[%s13067_s23 + $0xd50] ss:$24 sps:$4 sm:$0xff]  }
 0x12b   : > { %6375 = vmatprep.subr.bf16.mxu1 %v10967_v60  ;;  %v11037_v60 = vld [vmem:[%s13067_s23 + $0x1050] ss:$24 sps:$4 sm:$0xff]  }
 0x12d   : > { %6335 = vmatpush1.bf16.msra.mxu0 %v10962_v61  ;;  %v11042_v61 = vld [vmem:[%s13067_s23 + $0xd84] ss:$24 sps:$4 sm:$0xff]  }
 0x12e   : > { %6376 = vmatpush1.bf16.msra.mxu1 %v10965_v62  ;;  %6336 = vmatprep.subr.bf16.mxu0 %v10970_v63  ;;  %v11045_v62 = vld [vmem:[%s13067_s23 + $0x1084] ss:$24 sps:$4 sm:$0xff]   ;;  %v11040_v63 = vld [vmem:[%s13067_s23 + $0xd80] ss:$24 sps:$4 sm:$0xff]  }
 0x12f   : > { %6377 = vmatprep.subr.bf16.mxu1 %v10973_v0  ;;  %v11043_v0 = vld [vmem:[%s13067_s23 + $0x1080] ss:$24 sps:$4 sm:$0xff]  }
 0x131   : > { %6337 = vmatpush1.bf16.msra.mxu0 %v10968_v1  ;;  %v11048_v1 = vld [vmem:[%s13067_s23 + $0xdb4] ss:$24 sps:$4 sm:$0xff]  }
 0x132   : > { %6378 = vmatpush1.bf16.msra.mxu1 %v10971_v2  ;;  %6338 = vmatprep.subr.bf16.mxu0 %v10976_v3  ;;  %v11051_v2 = vld [vmem:[%s13067_s23 + $0x10b4] ss:$24 sps:$4 sm:$0xff]   ;;  %v11046_v3 = vld [vmem:[%s13067_s23 + $0xdb0] ss:$24 sps:$4 sm:$0xff]  }
 0x133   : > { %6379 = vmatprep.subr.bf16.mxu1 %v10979_v4  ;;  %v11049_v4 = vld [vmem:[%s13067_s23 + $0x10b0] ss:$24 sps:$4 sm:$0xff]  }
 0x135   : > { %6339 = vmatpush1.bf16.msra.mxu0 %v10974_v5  ;;  %v11054_v5 = vld [vmem:[%s13067_s23 + $0xde4] ss:$24 sps:$4 sm:$0xff]  }
 0x136   : > { %6380 = vmatpush1.bf16.msra.mxu1 %v10977_v6  ;;  %6340 = vmatprep.subr.bf16.mxu0 %v10982_v7  ;;  %v11057_v6 = vld [vmem:[%s13067_s23 + $0x10e4] ss:$24 sps:$4 sm:$0xff]   ;;  %v11052_v7 = vld [vmem:[%s13067_s23 + $0xde0] ss:$24 sps:$4 sm:$0xff]  }
 0x137   : > { %6381 = vmatprep.subr.bf16.mxu1 %v10985_v8  ;;  %v11055_v8 = vld [vmem:[%s13067_s23 + $0x10e0] ss:$24 sps:$4 sm:$0xff]  }
 0x139   : > { %6341 = vmatpush1.bf16.msra.mxu0 %v10980_v11  ;;  %v11060_v11 = vld [vmem:[%s13067_s23 + $0xe14] ss:$24 sps:$4 sm:$0xff]  }
 0x13a   : > { %6382 = vmatpush1.bf16.msra.mxu1 %v10983_v12  ;;  %6342 = vmatprep.subr.bf16.mxu0 %v10988_v13  ;;  %v11063_v12 = vld [vmem:[%s13067_s23 + $0x1114] ss:$24 sps:$4 sm:$0xff]   ;;  %v11058_v13 = vld [vmem:[%s13067_s23 + $0xe10] ss:$24 sps:$4 sm:$0xff]  }
 0x13b   : > { %6383 = vmatprep.subr.bf16.mxu1 %v10991_v14  ;;  %v11061_v14 = vld [vmem:[%s13067_s23 + $0x1110] ss:$24 sps:$4 sm:$0xff]  }
 0x13d   : > { %6343 = vmatpush1.bf16.msra.mxu0 %v10986_v15  ;;  %v11066_v15 = vld [vmem:[%s13067_s23 + $0xe44] ss:$24 sps:$4 sm:$0xff]  }
 0x13e   : > { %6384 = vmatpush1.bf16.msra.mxu1 %v10989_v16  ;;  %6394 = vmatprep.subr.bf16.mxu0 %v10994_v19  ;;  %v11069_v16 = vld [vmem:[%s13067_s23 + $0x1144] ss:$24 sps:$4 sm:$0xff]   ;;  %v11072_v19 = vld [vmem:[%s13067_s23 + $0xe74] ss:$24 sps:$4 sm:$0xff]  }
 0x13f   : > { %6435 = vmatprep.subr.bf16.mxu1 %v10997_v20  ;;  %v11075_v20 = vld [vmem:[%s13067_s23 + $0x1174] ss:$24 sps:$4 sm:$0xff]  }
 0x140   : > { %6345 = vmatmul.mubr.bf16.vlgmr.msra.gmra.mrb[4].mxu0 %v13248_v21 }
 0x141   : > { %6386 = vmatmul.mubr.bf16.vlgmr.msra.gmra.mrb[4].mxu1 %v13250_v22  ;;  %6395 = vmatpush1.bf16.msra.mxu0 %v10992_v23  ;;  %v11070_v23 = vld [vmem:[%s13067_s23 + $0xe70] ss:$24 sps:$4 sm:$0xff]  }
 0x142   : > { %6436 = vmatpush1.bf16.msra.mxu1 %v10995_v24  ;;  %6396 = vmatprep.subr.bf16.mxu0 %v11000_v25  ;;  %v11073_v24 = vld [vmem:[%s13067_s23 + $0x1170] ss:$24 sps:$4 sm:$0xff]   ;;  %v11078_v25 = vld [vmem:[%s13067_s23 + $0xea4] ss:$24 sps:$4 sm:$0xff]  }
 0x143   : > { %6437 = vmatprep.subr.bf16.mxu1 %v11003_v26  ;;  %6426 = vmatprep.mubr.bf16.mxu0 %v13261_v30  ;;  %v11081_v26 = vld [vmem:[%s13067_s23 + $0x11a4] ss:$24 sps:$4 sm:$0xff]  }
 0x144   : > { %6467 = vmatprep.mubr.bf16.mxu1 %v13265_v33 }
 0x145   : > { %6397 = vmatpush1.bf16.msra.mxu0 %v10998_v28  ;;  %v11079_v28 = vld [vmem:[%s13067_s23 + $0x11a0] ss:$24 sps:$4 sm:$0xff]  }
 0x146   : > { %6438 = vmatpush1.bf16.msra.mxu1 %v11001_v29  ;;  %6398 = vmatprep.subr.bf16.mxu0 %v11006_v32  ;;  %v11084_v29 = vld [vmem:[%s13067_s23 + $0xed4] ss:$24 sps:$4 sm:$0xff]   ;;  %v11082_v32 = vld [vmem:[%s13067_s23 + $0xed0] ss:$24 sps:$4 sm:$0xff]  }
 0x147   : > { %6439 = vmatprep.subr.bf16.mxu1 %v11009_v34  ;;  %v11085_v34 = vld [vmem:[%s13067_s23 + $0x11d0] ss:$24 sps:$4 sm:$0xff]  }
 0x149   : > { %6399 = vmatpush1.bf16.msra.mxu0 %v11004_v35  ;;  %v438_v35 = vld [vmem:[%s13089_s17 + $0x40] sm:$0xff] }
 0x14a   : > { %6440 = vmatpush1.bf16.msra.mxu1 %v11007_v36  ;;  %6400 = vmatprep.subr.bf16.mxu0 %v11012_v37  ;;  %v440_v36 = vld [vmem:[%s13089_s17 + $0x50] sm:$0xff] }
 0x14b   : > { %6441 = vmatprep.subr.bf16.mxu1 %v11015_v39  ;;  %v11090_v37 = vld [vmem:[%s13067_s23 + $0x1204] ss:$24 sps:$4 sm:$0xff]  }
 0x14c   : > { %v11093_v39 = vld [vmem:[%s13067_s23 + $0x1504] ss:$24 sps:$4 sm:$0xff]  }
 0x14d   : > { %6401 = vmatpush1.bf16.msra.mxu0 %v11010_v40  ;;  %v11088_v40 = vld [vmem:[%s13067_s23 + $0x1200] ss:$24 sps:$4 sm:$0xff]  }
 0x14e   : > { %6442 = vmatpush1.bf16.msra.mxu1 %v11013_v42  ;;  %6402 = vmatprep.subr.bf16.mxu0 %v11018_v43  ;;  %v11091_v42 = vld [vmem:[%s13067_s23 + $0x1500] ss:$24 sps:$4 sm:$0xff]   ;;  %v13330_v43 = vpack.c.bf16 %v438_v35, %v438_v35  ;;  %v11154_v35 = vld [vmem:[%s13067_s23 + $0x1410] ss:$24 sps:$4 sm:$0xff]  }
 0x14f   : > { %6443 = vmatprep.subr.bf16.mxu1 %v11021_v44  ;;  %v13332_v44 = vpack.c.bf16 %v440_v36, %v440_v36  ;;  %v11157_v36 = vld [vmem:[%s13067_s23 + $0x1710] ss:$24 sps:$4 sm:$0xff]  }
 0x151   : > { %6403 = vmatpush1.bf16.msra.mxu0 %v11016_v45  ;;  %v443_v45 = vld [vmem:[%s13089_s17 + $0x68] sm:$0xff] }
 0x152   : > { %6444 = vmatpush1.bf16.msra.mxu1 %v11019_v46  ;;  %6404 = vmatprep.subr.bf16.mxu0 %v11024_v47  ;;  %v445_v46 = vld [vmem:[%s13089_s17 + $0x78] sm:$0xff] }
 0x153   : > { %6445 = vmatprep.subr.bf16.mxu1 %v11027_v48  ;;  %v11096_v47 = vld [vmem:[%s13067_s23 + $0x1234] ss:$24 sps:$4 sm:$0xff]  }
 0x154   : > { %v11099_v48 = vld [vmem:[%s13067_s23 + $0x1534] ss:$24 sps:$4 sm:$0xff]  }
 0x155   : > { %6405 = vmatpush1.bf16.msra.mxu0 %v11022_v49  ;;  %v13338_v49 = vpack.c.bf16 %v443_v45, %v443_v45  ;;  %v11168_v45 = vld [vmem:[%s13067_s23 + $0x1474] ss:$24 sps:$4 sm:$0xff]  }
 0x156   : > { %6446 = vmatpush1.bf16.msra.mxu1 %v11025_v51  ;;  %6406 = vmatprep.subr.bf16.mxu0 %v11030_v52  ;;  %v13340_v51 = vpack.c.bf16 %v445_v46, %v445_v46  ;;  %v11094_v52 = vld [vmem:[%s13067_s23 + $0x1230] ss:$24 sps:$4 sm:$0xff]   ;;  %v11171_v46 = vld [vmem:[%s13067_s23 + $0x1774] ss:$24 sps:$4 sm:$0xff]  }
 0x157   : > { %6447 = vmatprep.subr.bf16.mxu1 %v11033_v54  ;;  %v11097_v54 = vld [vmem:[%s13067_s23 + $0x1530] ss:$24 sps:$4 sm:$0xff]  }
 0x159   : > { %6407 = vmatpush1.bf16.msra.mxu0 %v11028_v55  ;;  %v11102_v55 = vld [vmem:[%s13067_s23 + $0x1264] ss:$24 sps:$4 sm:$0xff]  }
 0x15a   : > { %6448 = vmatpush1.bf16.msra.mxu1 %v11031_v56  ;;  %6408 = vmatprep.subr.bf16.mxu0 %v11036_v57  ;;  %v11105_v56 = vld [vmem:[%s13067_s23 + $0x1564] ss:$24 sps:$4 sm:$0xff]   ;;  %v11100_v57 = vld [vmem:[%s13067_s23 + $0x1260] ss:$24 sps:$4 sm:$0xff]  }
 0x15b   : > { %6449 = vmatprep.subr.bf16.mxu1 %v11039_v58  ;;  %v11103_v58 = vld [vmem:[%s13067_s23 + $0x1560] ss:$24 sps:$4 sm:$0xff]  }
 0x15d   : > { %6409 = vmatpush1.bf16.msra.mxu0 %v11034_v59  ;;  %v11108_v59 = vld [vmem:[%s13067_s23 + $0x1294] ss:$24 sps:$4 sm:$0xff]  }
 0x15e   : > { %6450 = vmatpush1.bf16.msra.mxu1 %v11037_v60  ;;  %6410 = vmatprep.subr.bf16.mxu0 %v11042_v61  ;;  %v11111_v60 = vld [vmem:[%s13067_s23 + $0x1594] ss:$24 sps:$4 sm:$0xff]   ;;  %v11106_v61 = vld [vmem:[%s13067_s23 + $0x1290] ss:$24 sps:$4 sm:$0xff]  }
 0x15f   : > { %6451 = vmatprep.subr.bf16.mxu1 %v11045_v62  ;;  %v11109_v62 = vld [vmem:[%s13067_s23 + $0x1590] ss:$24 sps:$4 sm:$0xff]  }
 0x161   : > { %6411 = vmatpush1.bf16.msra.mxu0 %v11040_v63  ;;  %v11114_v63 = vld [vmem:[%s13067_s23 + $0x12c4] ss:$24 sps:$4 sm:$0xff]  }
 0x162   : > { %6452 = vmatpush1.bf16.msra.mxu1 %v11043_v0  ;;  %6412 = vmatprep.subr.bf16.mxu0 %v11048_v1  ;;  %v11117_v0 = vld [vmem:[%s13067_s23 + $0x15c4] ss:$24 sps:$4 sm:$0xff]   ;;  %v11112_v1 = vld [vmem:[%s13067_s23 + $0x12c0] ss:$24 sps:$4 sm:$0xff]  }
 0x163   : > { %6453 = vmatprep.subr.bf16.mxu1 %v11051_v2  ;;  %v11115_v2 = vld [vmem:[%s13067_s23 + $0x15c0] ss:$24 sps:$4 sm:$0xff]  }
 0x165   : > { %6413 = vmatpush1.bf16.msra.mxu0 %v11046_v3  ;;  %v11120_v3 = vld [vmem:[%s13067_s23 + $0x12f4] ss:$24 sps:$4 sm:$0xff]  }
 0x166   : > { %6454 = vmatpush1.bf16.msra.mxu1 %v11049_v4  ;;  %6414 = vmatprep.subr.bf16.mxu0 %v11054_v5  ;;  %v11123_v4 = vld [vmem:[%s13067_s23 + $0x15f4] ss:$24 sps:$4 sm:$0xff]   ;;  %v11118_v5 = vld [vmem:[%s13067_s23 + $0x12f0] ss:$24 sps:$4 sm:$0xff]  }
 0x167   : > { %6455 = vmatprep.subr.bf16.mxu1 %v11057_v6  ;;  %v11121_v6 = vld [vmem:[%s13067_s23 + $0x15f0] ss:$24 sps:$4 sm:$0xff]  }
 0x169   : > { %6415 = vmatpush1.bf16.msra.mxu0 %v11052_v7  ;;  %v11126_v7 = vld [vmem:[%s13067_s23 + $0x1324] ss:$24 sps:$4 sm:$0xff]  }
 0x16a   : > { %6456 = vmatpush1.bf16.msra.mxu1 %v11055_v8  ;;  %6416 = vmatprep.subr.bf16.mxu0 %v11060_v11  ;;  %v11129_v8 = vld [vmem:[%s13067_s23 + $0x1624] ss:$24 sps:$4 sm:$0xff]   ;;  %v11124_v11 = vld [vmem:[%s13067_s23 + $0x1320] ss:$24 sps:$4 sm:$0xff]  }
 0x16b   : > { %6457 = vmatprep.subr.bf16.mxu1 %v11063_v12  ;;  %v11127_v12 = vld [vmem:[%s13067_s23 + $0x1620] ss:$24 sps:$4 sm:$0xff]  }
 0x16d   : > { %6417 = vmatpush1.bf16.msra.mxu0 %v11058_v13  ;;  %v11132_v13 = vld [vmem:[%s13067_s23 + $0x1354] ss:$24 sps:$4 sm:$0xff]  }
 0x16e   : > { %6458 = vmatpush1.bf16.msra.mxu1 %v11061_v14  ;;  %6418 = vmatprep.subr.bf16.mxu0 %v11066_v15  ;;  %v11135_v14 = vld [vmem:[%s13067_s23 + $0x1654] ss:$24 sps:$4 sm:$0xff]   ;;  %v11130_v15 = vld [vmem:[%s13067_s23 + $0x1350] ss:$24 sps:$4 sm:$0xff]  }
 0x16f   : > { %6459 = vmatprep.subr.bf16.mxu1 %v11069_v16  ;;  %v11133_v16 = vld [vmem:[%s13067_s23 + $0x1650] ss:$24 sps:$4 sm:$0xff]  }
 0x171   : > { %6419 = vmatpush1.bf16.msra.mxu0 %v11064_v17  ;;  %v11138_v17 = vld [vmem:[%s13067_s23 + $0x1384] ss:$24 sps:$4 sm:$0xff]  }
 0x172   : > { %6460 = vmatpush1.bf16.msra.mxu1 %v11067_v18  ;;  %6420 = vmatprep.subr.bf16.mxu0 %v11072_v19  ;;  %v11141_v18 = vld [vmem:[%s13067_s23 + $0x1684] ss:$24 sps:$4 sm:$0xff]   ;;  %v11136_v19 = vld [vmem:[%s13067_s23 + $0x1380] ss:$24 sps:$4 sm:$0xff]  }
 0x173   : > { %6461 = vmatprep.subr.bf16.mxu1 %v11075_v20  ;;  %v11139_v20 = vld [vmem:[%s13067_s23 + $0x1680] ss:$24 sps:$4 sm:$0xff]  }
 0x175   : > { %6421 = vmatpush1.bf16.msra.mxu0 %v11070_v23  ;;  %v11144_v23 = vld [vmem:[%s13067_s23 + $0x13b4] ss:$24 sps:$4 sm:$0xff]  }
 0x176   : > { %6462 = vmatpush1.bf16.msra.mxu1 %v11073_v24  ;;  %6422 = vmatprep.subr.bf16.mxu0 %v11078_v25  ;;  %v11147_v24 = vld [vmem:[%s13067_s23 + $0x16b4] ss:$24 sps:$4 sm:$0xff]   ;;  %v11142_v25 = vld [vmem:[%s13067_s23 + $0x13b0] ss:$24 sps:$4 sm:$0xff]  }
 0x177   : > { %6463 = vmatprep.subr.bf16.mxu1 %v11081_v26  ;;  %v11145_v26 = vld [vmem:[%s13067_s23 + $0x16b0] ss:$24 sps:$4 sm:$0xff]  }
 0x179   : > { %6423 = vmatpush1.bf16.msra.mxu0 %v11076_v27  ;;  %v11150_v27 = vld [vmem:[%s13067_s23 + $0x13e4] ss:$24 sps:$4 sm:$0xff]  }
 0x17a   : > { %6464 = vmatpush1.bf16.msra.mxu1 %v11079_v28  ;;  %6424 = vmatprep.subr.bf16.mxu0 %v11084_v29  ;;  %v11153_v28 = vld [vmem:[%s13067_s23 + $0x16e4] ss:$24 sps:$4 sm:$0xff]   ;;  %v11148_v29 = vld [vmem:[%s13067_s23 + $0x13e0] ss:$24 sps:$4 sm:$0xff]  }
 0x17b   : > { %6465 = vmatprep.subr.bf16.mxu1 %v11087_v31  ;;  %v11151_v31 = vld [vmem:[%s13067_s23 + $0x16e0] ss:$24 sps:$4 sm:$0xff]  }
 0x17d   : > { %6425 = vmatpush1.bf16.msra.mxu0 %v11082_v32  ;;  %v11156_v32 = vld [vmem:[%s13067_s23 + $0x1414] ss:$24 sps:$4 sm:$0xff]  }
 0x17e   : > { %6466 = vmatpush1.bf16.msra.mxu1 %v11085_v34  ;;  %6476 = vmatprep.subr.bf16.mxu0 %v11090_v37  ;;  %v11159_v34 = vld [vmem:[%s13067_s23 + $0x1714] ss:$24 sps:$4 sm:$0xff]   ;;  %v11162_v37 = vld [vmem:[%s13067_s23 + $0x1444] ss:$24 sps:$4 sm:$0xff]  }
 0x17f   : > { %6517 = vmatprep.subr.bf16.mxu1 %v11093_v39  ;;  %v11165_v39 = vld [vmem:[%s13067_s23 + $0x1744] ss:$24 sps:$4 sm:$0xff]  }
 0x180   : > { %6427 = vmatmul.mubr.bf16.vlgmr.msra.gmra.mrb[8].mxu0 %v13330_v43 }
 0x181   : > { %6468 = vmatmul.mubr.bf16.vlgmr.msra.gmra.mrb[8].mxu1 %v13332_v44  ;;  %6477 = vmatpush1.bf16.msra.mxu0 %v11088_v40  ;;  %v11160_v40 = vld [vmem:[%s13067_s23 + $0x1440] ss:$24 sps:$4 sm:$0xff]  }
 0x182   : > { %6518 = vmatpush1.bf16.msra.mxu1 %v11091_v42  ;;  %6478 = vmatprep.subr.bf16.mxu0 %v11096_v47  ;;  %v11163_v42 = vld [vmem:[%s13067_s23 + $0x1740] ss:$24 sps:$4 sm:$0xff]   ;;  %v11166_v47 = vld [vmem:[%s13067_s23 + $0x1470] ss:$24 sps:$4 sm:$0xff]  }
 0x183   : > { %6519 = vmatprep.subr.bf16.mxu1 %v11099_v48  ;;  %6508 = vmatprep.mubr.bf16.mxu0 %v13338_v49  ;;  %v11169_v48 = vld [vmem:[%s13067_s23 + $0x1770] ss:$24 sps:$4 sm:$0xff]  }
 0x184   : > { %6549 = vmatprep.mubr.bf16.mxu1 %v13340_v51 }
 0x185   : > { %6479 = vmatpush1.bf16.msra.mxu0 %v11094_v52  ;;  %v11174_v52 = vld [vmem:[%s13067_s23 + $0x14a4] ss:$24 sps:$4 sm:$0xff]  }
 0x186   : > { %6520 = vmatpush1.bf16.msra.mxu1 %v11097_v54  ;;  %6480 = vmatprep.subr.bf16.mxu0 %v11102_v55  ;;  %v11177_v54 = vld [vmem:[%s13067_s23 + $0x17a4] ss:$24 sps:$4 sm:$0xff]   ;;  %v11172_v55 = vld [vmem:[%s13067_s23 + $0x14a0] ss:$24 sps:$4 sm:$0xff]  }
 0x187   : > { %6521 = vmatprep.subr.bf16.mxu1 %v11105_v56  ;;  %v11175_v56 = vld [vmem:[%s13067_s23 + $0x17a0] ss:$24 sps:$4 sm:$0xff]  }
 0x189   : > { %6481 = vmatpush1.bf16.msra.mxu0 %v11100_v57  ;;  %v11180_v57 = vld [vmem:[%s13067_s23 + $0x14d4] ss:$24 sps:$4 sm:$0xff]  }
 0x18a   : > { %6522 = vmatpush1.bf16.msra.mxu1 %v11103_v58  ;;  %6482 = vmatprep.subr.bf16.mxu0 %v11108_v59  ;;  %v11183_v58 = vld [vmem:[%s13067_s23 + $0x17d4] ss:$24 sps:$4 sm:$0xff]   ;;  %v11178_v59 = vld [vmem:[%s13067_s23 + $0x14d0] ss:$24 sps:$4 sm:$0xff]  }
 0x18b   : > { %6523 = vmatprep.subr.bf16.mxu1 %v11111_v60  ;;  %v11181_v60 = vld [vmem:[%s13067_s23 + $0x17d0] ss:$24 sps:$4 sm:$0xff]  }
 0x18d   : > { %6483 = vmatpush1.bf16.msra.mxu0 %v11106_v61  ;;  %v442_v61 = vld [vmem:[%s13089_s17 + $0x60] sm:$0xff] }
 0x18e   : > { %6524 = vmatpush1.bf16.msra.mxu1 %v11109_v62  ;;  %6484 = vmatprep.subr.bf16.mxu0 %v11114_v63  ;;  %v444_v62 = vld [vmem:[%s13089_s17 + $0x70] sm:$0xff] }
 0x18f   : > { %6525 = vmatprep.subr.bf16.mxu1 %v11117_v0  ;;  %v11186_v63 = vld [vmem:[%s13067_s23 + $0x1804] ss:$24 sps:$4 sm:$0xff]  }
 0x190   : > { %v11189_v0 = vld [vmem:[%s13067_s23 + $0x1b04] ss:$24 sps:$4 sm:$0xff]  }
 0x191   : > { %6485 = vmatpush1.bf16.msra.mxu0 %v11112_v1  ;;  %v11184_v1 = vld [vmem:[%s13067_s23 + $0x1800] ss:$24 sps:$4 sm:$0xff]  }
 0x192   : > { %6526 = vmatpush1.bf16.msra.mxu1 %v11115_v2  ;;  %6486 = vmatprep.subr.bf16.mxu0 %v11120_v3  ;;  %v11187_v2 = vld [vmem:[%s13067_s23 + $0x1b00] ss:$24 sps:$4 sm:$0xff]   ;;  %v13410_v3 = vpack.c.bf16 %v442_v61, %v442_v61  ;;  %v11234_v61 = vld [vmem:[%s13067_s23 + $0x1984] ss:$24 sps:$4 sm:$0xff]  }
 0x193   : > { %6527 = vmatprep.subr.bf16.mxu1 %v11123_v4  ;;  %v13412_v4 = vpack.c.bf16 %v444_v62, %v444_v62  ;;  %v11237_v62 = vld [vmem:[%s13067_s23 + $0x1c84] ss:$24 sps:$4 sm:$0xff]  }
 0x195   : > { %6487 = vmatpush1.bf16.msra.mxu0 %v11118_v5  ;;  %v447_v5 = vld [vmem:[%s13089_s17 + $0x88] sm:$0xff] }
 0x196   : > { %6528 = vmatpush1.bf16.msra.mxu1 %v11121_v6  ;;  %6488 = vmatprep.subr.bf16.mxu0 %v11126_v7  ;;  %v449_v6 = vld [vmem:[%s13089_s17 + $0x98] sm:$0xff] }
 0x197   : > { %6529 = vmatprep.subr.bf16.mxu1 %v11129_v8  ;;  %v11192_v7 = vld [vmem:[%s13067_s23 + $0x1834] ss:$24 sps:$4 sm:$0xff]  }
 0x198   : > { %v11195_v8 = vld [vmem:[%s13067_s23 + $0x1b34] ss:$24 sps:$4 sm:$0xff]  }
 0x199   : > { %6489 = vmatpush1.bf16.msra.mxu0 %v11124_v11  ;;  %v13418_v11 = vpack.c.bf16 %v447_v5, %v447_v5  ;;  %v11238_v5 = vld [vmem:[%s13067_s23 + $0x19b0] ss:$24 sps:$4 sm:$0xff]  }
 0x19a   : > { %6530 = vmatpush1.bf16.msra.mxu1 %v11127_v12  ;;  %6490 = vmatprep.subr.bf16.mxu0 %v11132_v13  ;;  %v13420_v12 = vpack.c.bf16 %v449_v6, %v449_v6  ;;  %v11190_v13 = vld [vmem:[%s13067_s23 + $0x1830] ss:$24 sps:$4 sm:$0xff]  }
 0x19b   : > { %6531 = vmatprep.subr.bf16.mxu1 %v11135_v14  ;;  %v11193_v14 = vld [vmem:[%s13067_s23 + $0x1b30] ss:$24 sps:$4 sm:$0xff]  }
 0x19c   : > { %v11241_v6 = vld [vmem:[%s13067_s23 + $0x1cb0] ss:$24 sps:$4 sm:$0xff]  }
 0x19d   : > { %6491 = vmatpush1.bf16.msra.mxu0 %v11130_v15  ;;  %v11198_v15 = vld [vmem:[%s13067_s23 + $0x1864] ss:$24 sps:$4 sm:$0xff]  }
 0x19e   : > { %6532 = vmatpush1.bf16.msra.mxu1 %v11133_v16  ;;  %6492 = vmatprep.subr.bf16.mxu0 %v11138_v17  ;;  %v11201_v16 = vld [vmem:[%s13067_s23 + $0x1b64] ss:$24 sps:$4 sm:$0xff]   ;;  %v11196_v17 = vld [vmem:[%s13067_s23 + $0x1860] ss:$24 sps:$4 sm:$0xff]  }
 0x19f   : > { %6533 = vmatprep.subr.bf16.mxu1 %v11141_v18  ;;  %v11199_v18 = vld [vmem:[%s13067_s23 + $0x1b60] ss:$24 sps:$4 sm:$0xff]  }
 0x1a1   : > { %6493 = vmatpush1.bf16.msra.mxu0 %v11136_v19  ;;  %v11204_v19 = vld [vmem:[%s13067_s23 + $0x1894] ss:$24 sps:$4 sm:$0xff]  }
 0x1a2   : > { %6534 = vmatpush1.bf16.msra.mxu1 %v11139_v20  ;;  %6494 = vmatprep.subr.bf16.mxu0 %v11144_v23  ;;  %v11207_v20 = vld [vmem:[%s13067_s23 + $0x1b94] ss:$24 sps:$4 sm:$0xff]   ;;  %v11202_v23 = vld [vmem:[%s13067_s23 + $0x1890] ss:$24 sps:$4 sm:$0xff]  }
 0x1a3   : > { %6535 = vmatprep.subr.bf16.mxu1 %v11147_v24  ;;  %v11205_v24 = vld [vmem:[%s13067_s23 + $0x1b90] ss:$24 sps:$4 sm:$0xff]  }
 0x1a5   : > { %6495 = vmatpush1.bf16.msra.mxu0 %v11142_v25  ;;  %v11210_v25 = vld [vmem:[%s13067_s23 + $0x18c4] ss:$24 sps:$4 sm:$0xff]  }
 0x1a6   : > { %6536 = vmatpush1.bf16.msra.mxu1 %v11145_v26  ;;  %6496 = vmatprep.subr.bf16.mxu0 %v11150_v27  ;;  %v11213_v26 = vld [vmem:[%s13067_s23 + $0x1bc4] ss:$24 sps:$4 sm:$0xff]   ;;  %v11208_v27 = vld [vmem:[%s13067_s23 + $0x18c0] ss:$24 sps:$4 sm:$0xff]  }
 0x1a7   : > { %6537 = vmatprep.subr.bf16.mxu1 %v11153_v28  ;;  %v11211_v28 = vld [vmem:[%s13067_s23 + $0x1bc0] ss:$24 sps:$4 sm:$0xff]  }
 0x1a9   : > { %6497 = vmatpush1.bf16.msra.mxu0 %v11148_v29  ;;  %v11216_v29 = vld [vmem:[%s13067_s23 + $0x18f4] ss:$24 sps:$4 sm:$0xff]  }
 0x1aa   : > { %6538 = vmatpush1.bf16.msra.mxu1 %v11151_v31  ;;  %6498 = vmatprep.subr.bf16.mxu0 %v11156_v32  ;;  %v11219_v31 = vld [vmem:[%s13067_s23 + $0x1bf4] ss:$24 sps:$4 sm:$0xff]   ;;  %v11214_v32 = vld [vmem:[%s13067_s23 + $0x18f0] ss:$24 sps:$4 sm:$0xff]  }
 0x1ab   : > { %6539 = vmatprep.subr.bf16.mxu1 %v11159_v34  ;;  %v11217_v34 = vld [vmem:[%s13067_s23 + $0x1bf0] ss:$24 sps:$4 sm:$0xff]  }
 0x1ad   : > { %6499 = vmatpush1.bf16.msra.mxu0 %v11154_v35  ;;  %v11222_v35 = vld [vmem:[%s13067_s23 + $0x1924] ss:$24 sps:$4 sm:$0xff]  }
 0x1ae   : > { %6540 = vmatpush1.bf16.msra.mxu1 %v11157_v36  ;;  %6500 = vmatprep.subr.bf16.mxu0 %v11162_v37  ;;  %v11225_v36 = vld [vmem:[%s13067_s23 + $0x1c24] ss:$24 sps:$4 sm:$0xff]  }
 0x1af   : > { %6541 = vmatprep.subr.bf16.mxu1 %v11165_v39 }
 0x1b1   : > { %6501 = vmatpush1.bf16.msra.mxu0 %v11160_v40  ;;  %v11220_v40 = vld [vmem:[%s13067_s23 + $0x1920] ss:$24 sps:$4 sm:$0xff]  }
 0x1b2   : > { %6542 = vmatpush1.bf16.msra.mxu1 %v11163_v42  ;;  %6502 = vmatprep.subr.bf16.mxu0 %v11168_v45  ;;  %v11223_v42 = vld [vmem:[%s13067_s23 + $0x1c20] ss:$24 sps:$4 sm:$0xff]  }
 0x1b3   : > { %6543 = vmatprep.subr.bf16.mxu1 %v11171_v46 }
 0x1b5   : > { %6503 = vmatpush1.bf16.msra.mxu0 %v11166_v47 }
 0x1b6   : > { %6544 = vmatpush1.bf16.msra.mxu1 %v11169_v48  ;;  %6504 = vmatprep.subr.bf16.mxu0 %v11174_v52 }
 0x1b7   : > { %6545 = vmatprep.subr.bf16.mxu1 %v11177_v54 }
 0x1b9   : > { %6505 = vmatpush1.bf16.msra.mxu0 %v11172_v55 }
 0x1ba   : > { %6546 = vmatpush1.bf16.msra.mxu1 %v11175_v56  ;;  %6506 = vmatprep.subr.bf16.mxu0 %v11180_v57  ;;  %v11228_v57 = vld [vmem:[%s13067_s23 + $0x1954] ss:$24 sps:$4 sm:$0xff]  }
 0x1bb   : > { %6547 = vmatprep.subr.bf16.mxu1 %v11183_v58  ;;  %v11231_v58 = vld [vmem:[%s13067_s23 + $0x1c54] ss:$24 sps:$4 sm:$0xff]  }
 0x1bd   : > { %6507 = vmatpush1.bf16.msra.mxu0 %v11178_v59  ;;  %v11226_v59 = vld [vmem:[%s13067_s23 + $0x1950] ss:$24 sps:$4 sm:$0xff]  }
 0x1be   : > { %6548 = vmatpush1.bf16.msra.mxu1 %v11181_v60  ;;  %6558 = vmatprep.subr.bf16.mxu0 %v11186_v63  ;;  %v11229_v60 = vld [vmem:[%s13067_s23 + $0x1c50] ss:$24 sps:$4 sm:$0xff]   ;;  %v11232_v63 = vld [vmem:[%s13067_s23 + $0x1980] ss:$24 sps:$4 sm:$0xff]  }
 0x1bf   : > { %6599 = vmatprep.subr.bf16.mxu1 %v11189_v0  ;;  %v11235_v0 = vld [vmem:[%s13067_s23 + $0x1c80] ss:$24 sps:$4 sm:$0xff]  }
 0x1c0   : > { %6509 = vmatmul.mubr.bf16.vlgmr.msra.gmra.mrb[12].mxu0 %v13410_v3 }
 0x1c1   : > { %6550 = vmatmul.mubr.bf16.vlgmr.msra.gmra.mrb[12].mxu1 %v13412_v4  ;;  %6559 = vmatpush1.bf16.msra.mxu0 %v11184_v1  ;;  %v11240_v1 = vld [vmem:[%s13067_s23 + $0x19b4] ss:$24 sps:$4 sm:$0xff]  }
 0x1c2   : > { %6600 = vmatpush1.bf16.msra.mxu1 %v11187_v2  ;;  %6560 = vmatprep.subr.bf16.mxu0 %v11192_v7  ;;  %v11243_v2 = vld [vmem:[%s13067_s23 + $0x1cb4] ss:$24 sps:$4 sm:$0xff]   ;;  %v11246_v7 = vld [vmem:[%s13067_s23 + $0x19e4] ss:$24 sps:$4 sm:$0xff]  }
 0x1c3   : > { %6601 = vmatprep.subr.bf16.mxu1 %v11195_v8  ;;  %6590 = vmatprep.mubr.bf16.mxu0 %v13418_v11  ;;  %v11249_v8 = vld [vmem:[%s13067_s23 + $0x1ce4] ss:$24 sps:$4 sm:$0xff]  }
 0x1c4   : > { %6631 = vmatprep.mubr.bf16.mxu1 %v13420_v12 }
 0x1c5   : > { %6561 = vmatpush1.bf16.msra.mxu0 %v11190_v13  ;;  %v11244_v13 = vld [vmem:[%s13067_s23 + $0x19e0] ss:$24 sps:$4 sm:$0xff]  }
 0x1c6   : > { %6602 = vmatpush1.bf16.msra.mxu1 %v11193_v14  ;;  %6562 = vmatprep.subr.bf16.mxu0 %v11198_v15  ;;  %v11247_v14 = vld [vmem:[%s13067_s23 + $0x1ce0] ss:$24 sps:$4 sm:$0xff]   ;;  %v11252_v15 = vld [vmem:[%s13067_s23 + $0x1a14] ss:$24 sps:$4 sm:$0xff]  }
 0x1c7   : > { %6603 = vmatprep.subr.bf16.mxu1 %v11201_v16  ;;  %v11255_v16 = vld [vmem:[%s13067_s23 + $0x1d14] ss:$24 sps:$4 sm:$0xff]  }
 0x1c9   : > { %6563 = vmatpush1.bf16.msra.mxu0 %v11196_v17  ;;  %v11250_v17 = vld [vmem:[%s13067_s23 + $0x1a10] ss:$24 sps:$4 sm:$0xff]  }
 0x1ca   : > { %6604 = vmatpush1.bf16.msra.mxu1 %v11199_v18  ;;  %6564 = vmatprep.subr.bf16.mxu0 %v11204_v19  ;;  %v11253_v18 = vld [vmem:[%s13067_s23 + $0x1d10] ss:$24 sps:$4 sm:$0xff]   ;;  %v11258_v19 = vld [vmem:[%s13067_s23 + $0x1a44] ss:$24 sps:$4 sm:$0xff]  }
 0x1cb   : > { %6605 = vmatprep.subr.bf16.mxu1 %v11207_v20  ;;  %v11261_v20 = vld [vmem:[%s13067_s23 + $0x1d44] ss:$24 sps:$4 sm:$0xff]  }
 0x1cd   : > { %6565 = vmatpush1.bf16.msra.mxu0 %v11202_v23  ;;  %v11256_v23 = vld [vmem:[%s13067_s23 + $0x1a40] ss:$24 sps:$4 sm:$0xff]  }
 0x1ce   : > { %6606 = vmatpush1.bf16.msra.mxu1 %v11205_v24  ;;  %6566 = vmatprep.subr.bf16.mxu0 %v11210_v25  ;;  %v11259_v24 = vld [vmem:[%s13067_s23 + $0x1d40] ss:$24 sps:$4 sm:$0xff]   ;;  %v11264_v25 = vld [vmem:[%s13067_s23 + $0x1a74] ss:$24 sps:$4 sm:$0xff]  }
 0x1cf   : > { %6607 = vmatprep.subr.bf16.mxu1 %v11213_v26  ;;  %v11267_v26 = vld [vmem:[%s13067_s23 + $0x1d74] ss:$24 sps:$4 sm:$0xff]  }
 0x1d1   : > { %6567 = vmatpush1.bf16.msra.mxu0 %v11208_v27  ;;  %v11262_v27 = vld [vmem:[%s13067_s23 + $0x1a70] ss:$24 sps:$4 sm:$0xff]  }
 0x1d2   : > { %6608 = vmatpush1.bf16.msra.mxu1 %v11211_v28  ;;  %6568 = vmatprep.subr.bf16.mxu0 %v11216_v29  ;;  %v11265_v28 = vld [vmem:[%s13067_s23 + $0x1d70] ss:$24 sps:$4 sm:$0xff]   ;;  %v11270_v29 = vld [vmem:[%s13067_s23 + $0x1aa4] ss:$24 sps:$4 sm:$0xff]  }
 0x1d3   : > { %6609 = vmatprep.subr.bf16.mxu1 %v11219_v31  ;;  %v6264_v37 = vpop.f32.mrb[0].mxu0  ;;  %v11273_v31 = vld [vmem:[%s13067_s23 + $0x1da4] ss:$24 sps:$4 sm:$0xff]  }
 0x1d4   : > { %v6305_v39 = vpop.f32.mrb[0].mxu1  ;;  %v6266_v46 = vpop.f32.mrb[1].mxu0 }
 0x1d5   : > { %v13448_v45 = vadd.f32 %v6305_v39, %v6264_v37  ;;  %v6307_v47 = vpop.f32.mrb[1].mxu1  ;;  %v6268_v52 = vpop.f32.mrb[2].mxu0  ;;  %6569 = vmatpush1.bf16.msra.mxu0 %v11214_v32  ;;  %v11268_v32 = vld [vmem:[%s13067_s23 + $0x1aa0] ss:$24 sps:$4 sm:$0xff]   ;;  %v11274_v37 = vld [vmem:[%s13067_s23 + $0x1ad0] ss:$24 sps:$4 sm:$0xff]  }
 0x1d6   : > { %v13450_v48 = vadd.f32 %v6307_v47, %v6266_v46  ;;  %v6309_v54 = vpop.f32.mrb[2].mxu1  ;;  %6610 = vmatpush1.bf16.msra.mxu1 %v11217_v34  ;;  %v6269_v55 = vpop.f32.mrb[3].mxu0  ;;  %6570 = vmatprep.subr.bf16.mxu0 %v11222_v35  ;;  %v11271_v34 = vld [vmem:[%s13067_s23 + $0x1da0] ss:$24 sps:$4 sm:$0xff]   ;;  %v11276_v35 = vld [vmem:[%s13067_s23 + $0x1ad4] ss:$24 sps:$4 sm:$0xff]  }
 0x1d7   : > { %v6310_v56 = vpop.f32.mrb[3].mxu1  ;;  %6611 = vmatprep.subr.bf16.mxu1 %v11225_v36  ;;  %v11279_v36 = vld [vmem:[%s13067_s23 + $0x1dd4] ss:$24 sps:$4 sm:$0xff]   ;;  %v11277_v39 = vld [vmem:[%s13067_s23 + $0x1dd0] ss:$24 sps:$4 sm:$0xff]  }
 0x1d8   : > { %v11282_v46 = vld [vmem:[%s13067_s23 + $0xc] ss:$24 sps:$4 sm:$0xff]   ;;  %v11280_v52 = vld [vmem:[%s13067_s23 + $0x8] ss:$24 sps:$4 sm:$0xff]  }
 0x1d9   : > { %6571 = vmatpush1.bf16.msra.mxu0 %v11220_v40  ;;  %v446_v40 = vld [vmem:[%s13089_s17 + $0x80] sm:$0xff]  ;;  %v11285_v47 = vld [vmem:[%s13067_s23 + $0x30c] ss:$24 sps:$4 sm:$0xff]   ;;  %v11283_v54 = vld [vmem:[%s13067_s23 + $0x308] ss:$24 sps:$4 sm:$0xff]  }
 0x1da   : > { %6612 = vmatpush1.bf16.msra.mxu1 %v11223_v42  ;;  %6572 = vmatprep.subr.bf16.mxu0 %v11228_v57  ;;  %v448_v42 = vld [vmem:[%s13089_s17 + $0x90] sm:$0xff]  ;;  %v13494_v55 = vpack.c.bf16 %v446_v40, %v446_v40  ;;  %v11288_v57 = vld [vmem:[%s13067_s23 + $0x3c] ss:$24 sps:$4 sm:$0xff]  }
 0x1db   : > { %6613 = vmatprep.subr.bf16.mxu1 %v11231_v58  ;;  %v13496_v56 = vpack.c.bf16 %v448_v42, %v448_v42  ;;  %v11291_v58 = vld [vmem:[%s13067_s23 + $0x33c] ss:$24 sps:$4 sm:$0xff]   ;;  %v11325_v42 = vld [vmem:[%s13067_s23 + $0x458] ss:$24 sps:$4 sm:$0xff]  }
 0x1dd   : > { %6573 = vmatpush1.bf16.msra.mxu0 %v11226_v59  ;;  %v11286_v59 = vld [vmem:[%s13067_s23 + $0x38] ss:$24 sps:$4 sm:$0xff]  }
 0x1de   : > { %6614 = vmatpush1.bf16.msra.mxu1 %v11229_v60  ;;  %6574 = vmatprep.subr.bf16.mxu0 %v11234_v61  ;;  %v11289_v60 = vld [vmem:[%s13067_s23 + $0x338] ss:$24 sps:$4 sm:$0xff]   ;;  %v11294_v61 = vld [vmem:[%s13067_s23 + $0x6c] ss:$24 sps:$4 sm:$0xff]  }
 0x1df   : > { %6615 = vmatprep.subr.bf16.mxu1 %v11237_v62  ;;  %v11297_v62 = vld [vmem:[%s13067_s23 + $0x36c] ss:$24 sps:$4 sm:$0xff]  }
 0x1e1   : > { %6575 = vmatpush1.bf16.msra.mxu0 %v11232_v63  ;;  %v11292_v63 = vld [vmem:[%s13067_s23 + $0x68] ss:$24 sps:$4 sm:$0xff]  }
 0x1e2   : > { %6616 = vmatpush1.bf16.msra.mxu1 %v11235_v0  ;;  %6576 = vmatprep.subr.bf16.mxu0 %v11240_v1  ;;  %v11295_v0 = vld [vmem:[%s13067_s23 + $0x368] ss:$24 sps:$4 sm:$0xff]   ;;  %v11300_v1 = vld [vmem:[%s13067_s23 + $0x9c] ss:$24 sps:$4 sm:$0xff]  }
 0x1e3   : > { %6617 = vmatprep.subr.bf16.mxu1 %v11243_v2  ;;  %v11303_v2 = vld [vmem:[%s13067_s23 + $0x39c] ss:$24 sps:$4 sm:$0xff]  }
 0x1e5   : > { %6577 = vmatpush1.bf16.msra.mxu0 %v11238_v5  ;;  %v11298_v5 = vld [vmem:[%s13067_s23 + $0x98] ss:$24 sps:$4 sm:$0xff]  }
 0x1e6   : > { %6618 = vmatpush1.bf16.msra.mxu1 %v11241_v6  ;;  %6578 = vmatprep.subr.bf16.mxu0 %v11246_v7  ;;  %v11301_v6 = vld [vmem:[%s13067_s23 + $0x398] ss:$24 sps:$4 sm:$0xff]   ;;  %v11306_v7 = vld [vmem:[%s13067_s23 + $0xcc] ss:$24 sps:$4 sm:$0xff]  }
 0x1e7   : > { %6619 = vmatprep.subr.bf16.mxu1 %v11249_v8  ;;  %v11309_v8 = vld [vmem:[%s13067_s23 + $0x3cc] ss:$24 sps:$4 sm:$0xff]  }
 0x1e9   : > { %6579 = vmatpush1.bf16.msra.mxu0 %v11244_v13  ;;  %v11304_v13 = vld [vmem:[%s13067_s23 + $0xc8] ss:$24 sps:$4 sm:$0xff]  }
 0x1ea   : > { %6620 = vmatpush1.bf16.msra.mxu1 %v11247_v14  ;;  %6580 = vmatprep.subr.bf16.mxu0 %v11252_v15  ;;  %v11307_v14 = vld [vmem:[%s13067_s23 + $0x3c8] ss:$24 sps:$4 sm:$0xff]   ;;  %v11312_v15 = vld [vmem:[%s13067_s23 + $0xfc] ss:$24 sps:$4 sm:$0xff]  }
 0x1eb   : > { %6621 = vmatprep.subr.bf16.mxu1 %v11255_v16  ;;  %v11315_v16 = vld [vmem:[%s13067_s23 + $0x3fc] ss:$24 sps:$4 sm:$0xff]  }
 0x1ed   : > { %6581 = vmatpush1.bf16.msra.mxu0 %v11250_v17  ;;  %v11310_v17 = vld [vmem:[%s13067_s23 + $0xf8] ss:$24 sps:$4 sm:$0xff]  }
 0x1ee   : > { %6622 = vmatpush1.bf16.msra.mxu1 %v11253_v18  ;;  %6582 = vmatprep.subr.bf16.mxu0 %v11258_v19  ;;  %v11313_v18 = vld [vmem:[%s13067_s23 + $0x3f8] ss:$24 sps:$4 sm:$0xff]   ;;  %v11318_v19 = vld [vmem:[%s13067_s23 + $0x12c] ss:$24 sps:$4 sm:$0xff]  }
 0x1ef   : > { %6623 = vmatprep.subr.bf16.mxu1 %v11261_v20  ;;  %v11321_v20 = vld [vmem:[%s13067_s23 + $0x42c] ss:$24 sps:$4 sm:$0xff]  }
 0x1f1   : > { %6583 = vmatpush1.bf16.msra.mxu0 %v11256_v23 }
 0x1f2   : > { %6624 = vmatpush1.bf16.msra.mxu1 %v11259_v24  ;;  %6584 = vmatprep.subr.bf16.mxu0 %v11264_v25  ;;  %v11316_v25 = vld [vmem:[%s13067_s23 + $0x128] ss:$24 sps:$4 sm:$0xff]  }
 0x1f3   : > { %6625 = vmatprep.subr.bf16.mxu1 %v11267_v26  ;;  %v11319_v26 = vld [vmem:[%s13067_s23 + $0x428] ss:$24 sps:$4 sm:$0xff]  }
 0x1f5   : > { %6585 = vmatpush1.bf16.msra.mxu0 %v11262_v27 }
 0x1f6   : > { %6626 = vmatpush1.bf16.msra.mxu1 %v11265_v28  ;;  %6586 = vmatprep.subr.bf16.mxu0 %v11270_v29 }
 0x1f7   : > { %6627 = vmatprep.subr.bf16.mxu1 %v11273_v31 }
 0x1f9   : > { %6587 = vmatpush1.bf16.msra.mxu0 %v11268_v32 }
 0x1fa   : > { %6628 = vmatpush1.bf16.msra.mxu1 %v11271_v34  ;;  %6588 = vmatprep.subr.bf16.mxu0 %v11276_v35 }
 0x1fb   : > { %6629 = vmatprep.subr.bf16.mxu1 %v11279_v36 }
 0x1fd   : > { %6589 = vmatpush1.bf16.msra.mxu0 %v11274_v37 }
 0x1fe   : > { %6630 = vmatpush1.bf16.msra.mxu1 %v11277_v39  ;;  %6640 = vmatprep.subr.bf16.mxu0 %v11282_v46  ;;  %v11327_v39 = vld [vmem:[%s13067_s23 + $0x45c] ss:$24 sps:$4 sm:$0xff]   ;;  %v11330_v46 = vld [vmem:[%s13067_s23 + $0x18c] ss:$24 sps:$4 sm:$0xff]  }
 0x1ff   : > { %6681 = vmatprep.subr.bf16.mxu1 %v11285_v47  ;;  %v11333_v47 = vld [vmem:[%s13067_s23 + $0x48c] ss:$24 sps:$4 sm:$0xff]  }
 0x200   : > { %6591 = vmatmul.mubr.bf16.vlgmr.msra.gmra.mrb[16].mxu0 %v13494_v55 }
 0x201   : > { %6632 = vmatmul.mubr.bf16.vlgmr.msra.gmra.mrb[16].mxu1 %v13496_v56  ;;  %6641 = vmatpush1.bf16.msra.mxu0 %v11280_v52  ;;  %v11328_v52 = vld [vmem:[%s13067_s23 + $0x188] ss:$24 sps:$4 sm:$0xff]  }
 0x202   : > { %6682 = vmatpush1.bf16.msra.mxu1 %v11283_v54  ;;  %6642 = vmatprep.subr.bf16.mxu0 %v11288_v57  ;;  %v11331_v54 = vld [vmem:[%s13067_s23 + $0x488] ss:$24 sps:$4 sm:$0xff]   ;;  %v11336_v57 = vld [vmem:[%s13067_s23 + $0x1bc] ss:$24 sps:$4 sm:$0xff]  }
 0x203   : > { %6683 = vmatprep.subr.bf16.mxu1 %v11291_v58  ;;  %6672 = vmatprep.mubr.bf16.mxu0 %v13141_v50  ;;  %v11339_v58 = vld [vmem:[%s13067_s23 + $0x4bc] ss:$24 sps:$4 sm:$0xff]  }
 0x204   : > { %6713 = vmatprep.mubr.bf16.mxu1 %v13145_v53 }
 0x205   : > { %6643 = vmatpush1.bf16.msra.mxu0 %v11286_v59  ;;  %v11334_v59 = vld [vmem:[%s13067_s23 + $0x1b8] ss:$24 sps:$4 sm:$0xff]  }
 0x206   : > { %6684 = vmatpush1.bf16.msra.mxu1 %v11289_v60  ;;  %6644 = vmatprep.subr.bf16.mxu0 %v11294_v61  ;;  %v11337_v60 = vld [vmem:[%s13067_s23 + $0x4b8] ss:$24 sps:$4 sm:$0xff]   ;;  %v11342_v61 = vld [vmem:[%s13067_s23 + $0x1ec] ss:$24 sps:$4 sm:$0xff]  }
 0x207   : > { %6685 = vmatprep.subr.bf16.mxu1 %v11297_v62  ;;  %v11345_v62 = vld [vmem:[%s13067_s23 + $0x4ec] ss:$24 sps:$4 sm:$0xff]  }
 0x209   : > { %6645 = vmatpush1.bf16.msra.mxu0 %v11292_v63  ;;  %v11340_v63 = vld [vmem:[%s13067_s23 + $0x1e8] ss:$24 sps:$4 sm:$0xff]  }
 0x20a   : > { %6686 = vmatpush1.bf16.msra.mxu1 %v11295_v0  ;;  %6646 = vmatprep.subr.bf16.mxu0 %v11300_v1  ;;  %v11343_v0 = vld [vmem:[%s13067_s23 + $0x4e8] ss:$24 sps:$4 sm:$0xff]   ;;  %v11348_v1 = vld [vmem:[%s13067_s23 + $0x21c] ss:$24 sps:$4 sm:$0xff]  }
 0x20b   : > { %6687 = vmatprep.subr.bf16.mxu1 %v11303_v2  ;;  %v11351_v2 = vld [vmem:[%s13067_s23 + $0x51c] ss:$24 sps:$4 sm:$0xff]  }
 0x20d   : > { %6647 = vmatpush1.bf16.msra.mxu0 %v11298_v5  ;;  %v11346_v5 = vld [vmem:[%s13067_s23 + $0x218] ss:$24 sps:$4 sm:$0xff]  }
 0x20e   : > { %6688 = vmatpush1.bf16.msra.mxu1 %v11301_v6  ;;  %6648 = vmatprep.subr.bf16.mxu0 %v11306_v7  ;;  %v11349_v6 = vld [vmem:[%s13067_s23 + $0x518] ss:$24 sps:$4 sm:$0xff]   ;;  %v11354_v7 = vld [vmem:[%s13067_s23 + $0x24c] ss:$24 sps:$4 sm:$0xff]  }
 0x20f   : > { %6689 = vmatprep.subr.bf16.mxu1 %v11309_v8  ;;  %v11357_v8 = vld [vmem:[%s13067_s23 + $0x54c] ss:$24 sps:$4 sm:$0xff]  }
 0x211   : > { %6649 = vmatpush1.bf16.msra.mxu0 %v11304_v13  ;;  %v11352_v13 = vld [vmem:[%s13067_s23 + $0x248] ss:$24 sps:$4 sm:$0xff]  }
 0x212   : > { %6690 = vmatpush1.bf16.msra.mxu1 %v11307_v14  ;;  %6650 = vmatprep.subr.bf16.mxu0 %v11312_v15  ;;  %v11355_v14 = vld [vmem:[%s13067_s23 + $0x548] ss:$24 sps:$4 sm:$0xff]   ;;  %v11360_v15 = vld [vmem:[%s13067_s23 + $0x27c] ss:$24 sps:$4 sm:$0xff]  }
 0x213   : > { %6691 = vmatprep.subr.bf16.mxu1 %v11315_v16  ;;  %v6346_v23 = vpop.f32.mrb[4].mxu0  ;;  %v11363_v16 = vld [vmem:[%s13067_s23 + $0x57c] ss:$24 sps:$4 sm:$0xff]  }
 0x214   : > { %v6387_v24 = vpop.f32.mrb[4].mxu1  ;;  %v6347_v27 = vadd.f32 %v6346_v23, %v13448_v45  ;;  %v6348_v28 = vpop.f32.mrb[5].mxu0  ;;  %v11324_v45 = vld [vmem:[%s13067_s23 + $0x15c] ss:$24 sps:$4 sm:$0xff]   ;;  %v11364_v23 = vld [vmem:[%s13067_s23 + $0x2a8] ss:$24 sps:$4 sm:$0xff]  }
 0x215   : > { %v6389_v29 = vpop.f32.mrb[5].mxu1  ;;  %v6349_v31 = vadd.f32 %v6348_v28, %v13450_v48  ;;  %v6350_v32 = vpop.f32.mrb[6].mxu0  ;;  %6651 = vmatpush1.bf16.msra.mxu0 %v11310_v17  ;;  %v11322_v48 = vld [vmem:[%s13067_s23 + $0x158] ss:$24 sps:$4 sm:$0xff]  }
 0x216   : > { %v6391_v34 = vpop.f32.mrb[6].mxu1  ;;  %6692 = vmatpush1.bf16.msra.mxu1 %v11313_v18  ;;  %v13528_v35 = vadd.f32 %v6387_v24, %v6347_v27  ;;  %v6351_v36 = vpop.f32.mrb[7].mxu0  ;;  %6652 = vmatprep.subr.bf16.mxu0 %v11318_v19  ;;  %v11358_v17 = vld [vmem:[%s13067_s23 + $0x278] ss:$24 sps:$4 sm:$0xff]   ;;  %v11366_v19 = vld [vmem:[%s13067_s23 + $0x2ac] ss:$24 sps:$4 sm:$0xff]  }
 0x217   : > { %v6392_v37 = vpop.f32.mrb[7].mxu1  ;;  %6693 = vmatprep.subr.bf16.mxu1 %v11321_v20  ;;  %v13532_v40 = vadd.f32 %v6389_v29, %v6349_v31  ;;  %v11361_v18 = vld [vmem:[%s13067_s23 + $0x578] ss:$24 sps:$4 sm:$0xff]   ;;  %v11369_v20 = vld [vmem:[%s13067_s23 + $0x5ac] ss:$24 sps:$4 sm:$0xff]  }
 0x218   : > { %v11367_v24 = vld [vmem:[%s13067_s23 + $0x5a8] ss:$24 sps:$4 sm:$0xff]   ;;  %v11370_v27 = vld [vmem:[%s13067_s23 + $0x2d8] ss:$24 sps:$4 sm:$0xff]   ;;  %v11378_v29 = vld [vmem:[%s13067_s23 + $0x60c] ss:$24 sps:$4 sm:$0xff]  }
 0x219   : > { %6653 = vmatpush1.bf16.msra.mxu0 %v11316_v25  ;;  %v11372_v25 = vld [vmem:[%s13067_s23 + $0x2dc] ss:$24 sps:$4 sm:$0xff]   ;;  %v11373_v28 = vld [vmem:[%s13067_s23 + $0x5d8] ss:$24 sps:$4 sm:$0xff]   ;;  %v11381_v31 = vld [vmem:[%s13067_s23 + $0x90c] ss:$24 sps:$4 sm:$0xff]  }
 0x21a   : > { %6694 = vmatpush1.bf16.msra.mxu1 %v11319_v26  ;;  %6654 = vmatprep.subr.bf16.mxu0 %v11324_v45  ;;  %v11375_v26 = vld [vmem:[%s13067_s23 + $0x5dc] ss:$24 sps:$4 sm:$0xff]   ;;  %v11376_v32 = vld [vmem:[%s13067_s23 + $0x608] ss:$24 sps:$4 sm:$0xff]   ;;  %v11382_v45 = vld [vmem:[%s13067_s23 + $0x638] ss:$24 sps:$4 sm:$0xff]  }
 0x21b   : > { %6695 = vmatprep.subr.bf16.mxu1 %v11327_v39  ;;  %v11379_v34 = vld [vmem:[%s13067_s23 + $0x908] ss:$24 sps:$4 sm:$0xff]   ;;  %v11384_v36 = vld [vmem:[%s13067_s23 + $0x63c] ss:$24 sps:$4 sm:$0xff]   ;;  %v11385_v39 = vld [vmem:[%s13067_s23 + $0x938] ss:$24 sps:$4 sm:$0xff]  }
 0x21c   : > { %v11387_v37 = vld [vmem:[%s13067_s23 + $0x93c] ss:$24 sps:$4 sm:$0xff]  }
 0x21d   : > { %6655 = vmatpush1.bf16.msra.mxu0 %v11322_v48  ;;  %v11390_v48 = vld [vmem:[%s13067_s23 + $0x66c] ss:$24 sps:$4 sm:$0xff]  }
 0x21e   : > { %6696 = vmatpush1.bf16.msra.mxu1 %v11325_v42  ;;  %6656 = vmatprep.subr.bf16.mxu0 %v11330_v46  ;;  %v11393_v42 = vld [vmem:[%s13067_s23 + $0x96c] ss:$24 sps:$4 sm:$0xff]   ;;  %v11388_v46 = vld [vmem:[%s13067_s23 + $0x668] ss:$24 sps:$4 sm:$0xff]  }
 0x21f   : > { %6697 = vmatprep.subr.bf16.mxu1 %v11333_v47  ;;  %v11391_v47 = vld [vmem:[%s13067_s23 + $0x968] ss:$24 sps:$4 sm:$0xff]  }
 0x221   : > { %6657 = vmatpush1.bf16.msra.mxu0 %v11328_v52  ;;  %v11396_v52 = vld [vmem:[%s13067_s23 + $0x69c] ss:$24 sps:$4 sm:$0xff]  }
 0x222   : > { %6698 = vmatpush1.bf16.msra.mxu1 %v11331_v54  ;;  %6658 = vmatprep.subr.bf16.mxu0 %v11336_v57  ;;  %v11399_v54 = vld [vmem:[%s13067_s23 + $0x99c] ss:$24 sps:$4 sm:$0xff]   ;;  %v11394_v57 = vld [vmem:[%s13067_s23 + $0x698] ss:$24 sps:$4 sm:$0xff]  }
 0x223   : > { %6699 = vmatprep.subr.bf16.mxu1 %v11339_v58  ;;  %v11397_v58 = vld [vmem:[%s13067_s23 + $0x998] ss:$24 sps:$4 sm:$0xff]  }
 0x225   : > { %6659 = vmatpush1.bf16.msra.mxu0 %v11334_v59  ;;  %v11402_v59 = vld [vmem:[%s13067_s23 + $0x6cc] ss:$24 sps:$4 sm:$0xff]  }
 0x226   : > { %6700 = vmatpush1.bf16.msra.mxu1 %v11337_v60  ;;  %6660 = vmatprep.subr.bf16.mxu0 %v11342_v61  ;;  %v11405_v60 = vld [vmem:[%s13067_s23 + $0x9cc] ss:$24 sps:$4 sm:$0xff]   ;;  %v11400_v61 = vld [vmem:[%s13067_s23 + $0x6c8] ss:$24 sps:$4 sm:$0xff]  }
 0x227   : > { %6701 = vmatprep.subr.bf16.mxu1 %v11345_v62  ;;  %v11403_v62 = vld [vmem:[%s13067_s23 + $0x9c8] ss:$24 sps:$4 sm:$0xff]  }
 0x229   : > { %6661 = vmatpush1.bf16.msra.mxu0 %v11340_v63  ;;  %v11408_v63 = vld [vmem:[%s13067_s23 + $0x6fc] ss:$24 sps:$4 sm:$0xff]  }
 0x22a   : > { %6702 = vmatpush1.bf16.msra.mxu1 %v11343_v0  ;;  %6662 = vmatprep.subr.bf16.mxu0 %v11348_v1  ;;  %v11411_v0 = vld [vmem:[%s13067_s23 + $0x9fc] ss:$24 sps:$4 sm:$0xff]   ;;  %v11406_v1 = vld [vmem:[%s13067_s23 + $0x6f8] ss:$24 sps:$4 sm:$0xff]  }
 0x22b   : > { %6703 = vmatprep.subr.bf16.mxu1 %v11351_v2  ;;  %v11409_v2 = vld [vmem:[%s13067_s23 + $0x9f8] ss:$24 sps:$4 sm:$0xff]  }
 0x22d   : > { %6663 = vmatpush1.bf16.msra.mxu0 %v11346_v5  ;;  %v11414_v5 = vld [vmem:[%s13067_s23 + $0x72c] ss:$24 sps:$4 sm:$0xff]  }
 0x22e   : > { %6704 = vmatpush1.bf16.msra.mxu1 %v11349_v6  ;;  %6664 = vmatprep.subr.bf16.mxu0 %v11354_v7  ;;  %v11417_v6 = vld [vmem:[%s13067_s23 + $0xa2c] ss:$24 sps:$4 sm:$0xff]  }
 0x22f   : > { %6705 = vmatprep.subr.bf16.mxu1 %v11357_v8 }
 0x231   : > { %6665 = vmatpush1.bf16.msra.mxu0 %v11352_v13  ;;  %v11412_v13 = vld [vmem:[%s13067_s23 + $0x728] ss:$24 sps:$4 sm:$0xff]  }
 0x232   : > { %6706 = vmatpush1.bf16.msra.mxu1 %v11355_v14  ;;  %6666 = vmatprep.subr.bf16.mxu0 %v11360_v15 }
 0x233   : > { %6707 = vmatprep.subr.bf16.mxu1 %v11363_v16 }
 0x235   : > { %6667 = vmatpush1.bf16.msra.mxu0 %v11358_v17  ;;  %v11415_v17 = vld [vmem:[%s13067_s23 + $0xa28] ss:$24 sps:$4 sm:$0xff]  }
 0x236   : > { %6708 = vmatpush1.bf16.msra.mxu1 %v11361_v18  ;;  %6668 = vmatprep.subr.bf16.mxu0 %v11366_v19 }
 0x237   : > { %6709 = vmatprep.subr.bf16.mxu1 %v11369_v20 }
 0x239   : > { %6669 = vmatpush1.bf16.msra.mxu0 %v11364_v23 }
 0x23a   : > { %6710 = vmatpush1.bf16.msra.mxu1 %v11367_v24  ;;  %6670 = vmatprep.subr.bf16.mxu0 %v11372_v25 }
 0x23b   : > { %6711 = vmatprep.subr.bf16.mxu1 %v11375_v26  ;;  %v11423_v26 = vld [vmem:[%s13067_s23 + $0xa5c] ss:$24 sps:$4 sm:$0xff]  }
 0x23d   : > { %6671 = vmatpush1.bf16.msra.mxu0 %v11370_v27 }
 0x23e   : > { %6712 = vmatpush1.bf16.msra.mxu1 %v11373_v28  ;;  %6722 = vmatprep.subr.bf16.mxu0 %v11378_v29  ;;  %v11421_v28 = vld [vmem:[%s13067_s23 + $0xa58] ss:$24 sps:$4 sm:$0xff]   ;;  %v11426_v29 = vld [vmem:[%s13067_s23 + $0x78c] ss:$24 sps:$4 sm:$0xff]  }
 0x23f   : > { %6763 = vmatprep.subr.bf16.mxu1 %v11381_v31  ;;  %v11429_v31 = vld [vmem:[%s13067_s23 + $0xa8c] ss:$24 sps:$4 sm:$0xff]  }
 0x240   : > { %6673 = vmatmul.mubr.bf16.vlgmr.msra.gmra.mrb[20].mxu0 %v13168_v9 }
 0x241   : > { %6714 = vmatmul.mubr.bf16.vlgmr.msra.gmra.mrb[20].mxu1 %v13170_v10  ;;  %6723 = vmatpush1.bf16.msra.mxu0 %v11376_v32  ;;  %v11424_v32 = vld [vmem:[%s13067_s23 + $0x788] ss:$24 sps:$4 sm:$0xff]  }
 0x242   : > { %6764 = vmatpush1.bf16.msra.mxu1 %v11379_v34  ;;  %6724 = vmatprep.subr.bf16.mxu0 %v11384_v36  ;;  %v11427_v34 = vld [vmem:[%s13067_s23 + $0xa88] ss:$24 sps:$4 sm:$0xff]   ;;  %v11432_v36 = vld [vmem:[%s13067_s23 + $0x7bc] ss:$24 sps:$4 sm:$0xff]  }
 0x243   : > { %6765 = vmatprep.subr.bf16.mxu1 %v11387_v37  ;;  %6754 = vmatprep.mubr.bf16.mxu0 %v13201_v38  ;;  %v11435_v37 = vld [vmem:[%s13067_s23 + $0xabc] ss:$24 sps:$4 sm:$0xff]  }
 0x244   : > { %6795 = vmatprep.mubr.bf16.mxu1 %v13205_v41 }
 0x245   : > { %6725 = vmatpush1.bf16.msra.mxu0 %v11382_v45  ;;  %v11430_v45 = vld [vmem:[%s13067_s23 + $0x7b8] ss:$24 sps:$4 sm:$0xff]  }
 0x246   : > { %6766 = vmatpush1.bf16.msra.mxu1 %v11385_v39  ;;  %6726 = vmatprep.subr.bf16.mxu0 %v11390_v48  ;;  %v11433_v39 = vld [vmem:[%s13067_s23 + $0xab8] ss:$24 sps:$4 sm:$0xff]   ;;  %v11438_v48 = vld [vmem:[%s13067_s23 + $0x7ec] ss:$24 sps:$4 sm:$0xff]  }
 0x247   : > { %6767 = vmatprep.subr.bf16.mxu1 %v11393_v42  ;;  %v11441_v42 = vld [vmem:[%s13067_s23 + $0xaec] ss:$24 sps:$4 sm:$0xff]  }
 0x249   : > { %6727 = vmatpush1.bf16.msra.mxu0 %v11388_v46  ;;  %v11436_v46 = vld [vmem:[%s13067_s23 + $0x7e8] ss:$24 sps:$4 sm:$0xff]  }
 0x24a   : > { %6768 = vmatpush1.bf16.msra.mxu1 %v11391_v47  ;;  %6728 = vmatprep.subr.bf16.mxu0 %v11396_v52  ;;  %v11439_v47 = vld [vmem:[%s13067_s23 + $0xae8] ss:$24 sps:$4 sm:$0xff]   ;;  %v11444_v52 = vld [vmem:[%s13067_s23 + $0x81c] ss:$24 sps:$4 sm:$0xff]  }
 0x24b   : > { %6769 = vmatprep.subr.bf16.mxu1 %v11399_v54  ;;  %v11447_v54 = vld [vmem:[%s13067_s23 + $0xb1c] ss:$24 sps:$4 sm:$0xff]  }
 0x24d   : > { %6729 = vmatpush1.bf16.msra.mxu0 %v11394_v57  ;;  %v11442_v57 = vld [vmem:[%s13067_s23 + $0x818] ss:$24 sps:$4 sm:$0xff]  }
 0x24e   : > { %6770 = vmatpush1.bf16.msra.mxu1 %v11397_v58  ;;  %6730 = vmatprep.subr.bf16.mxu0 %v11402_v59  ;;  %v11445_v58 = vld [vmem:[%s13067_s23 + $0xb18] ss:$24 sps:$4 sm:$0xff]   ;;  %v11450_v59 = vld [vmem:[%s13067_s23 + $0x84c] ss:$24 sps:$4 sm:$0xff]  }
 0x24f   : > { %6771 = vmatprep.subr.bf16.mxu1 %v11405_v60  ;;  %v11453_v60 = vld [vmem:[%s13067_s23 + $0xb4c] ss:$24 sps:$4 sm:$0xff]  }
 0x251   : > { %6731 = vmatpush1.bf16.msra.mxu0 %v11400_v61  ;;  %v11448_v61 = vld [vmem:[%s13067_s23 + $0x848] ss:$24 sps:$4 sm:$0xff]  }
 0x252   : > { %6772 = vmatpush1.bf16.msra.mxu1 %v11403_v62  ;;  %6732 = vmatprep.subr.bf16.mxu0 %v11408_v63  ;;  %v11451_v62 = vld [vmem:[%s13067_s23 + $0xb48] ss:$24 sps:$4 sm:$0xff]   ;;  %v11456_v63 = vld [vmem:[%s13067_s23 + $0x87c] ss:$24 sps:$4 sm:$0xff]  }
 0x253   : > { %6773 = vmatprep.subr.bf16.mxu1 %v11411_v0  ;;  %v6428_v7 = vpop.f32.mrb[8].mxu0  ;;  %v11459_v0 = vld [vmem:[%s13067_s23 + $0xb7c] ss:$24 sps:$4 sm:$0xff]  }
 0x254   : > { %v6469_v8 = vpop.f32.mrb[8].mxu1  ;;  %v6429_v14 = vadd.f32 %v6428_v7, %v13528_v35  ;;  %v6430_v15 = vpop.f32.mrb[9].mxu0  ;;  %v11420_v35 = vld [vmem:[%s13067_s23 + $0x75c] ss:$24 sps:$4 sm:$0xff]   ;;  %v11460_v7 = vld [vmem:[%s13067_s23 + $0x8a8] ss:$24 sps:$4 sm:$0xff]  }
 0x255   : > { %v6471_v16 = vpop.f32.mrb[9].mxu1  ;;  %v6431_v18 = vadd.f32 %v6430_v15, %v13532_v40  ;;  %v6432_v19 = vpop.f32.mrb[10].mxu0  ;;  %6733 = vmatpush1.bf16.msra.mxu0 %v11406_v1  ;;  %v11418_v40 = vld [vmem:[%s13067_s23 + $0x758] ss:$24 sps:$4 sm:$0xff]  }
 0x256   : > { %v6473_v20 = vpop.f32.mrb[10].mxu1  ;;  %6774 = vmatpush1.bf16.msra.mxu1 %v11409_v2  ;;  %v13602_v23 = vadd.f32 %v6469_v8, %v6429_v14  ;;  %v6433_v24 = vpop.f32.mrb[11].mxu0  ;;  %6734 = vmatprep.subr.bf16.mxu0 %v11414_v5  ;;  %v11454_v1 = vld [vmem:[%s13067_s23 + $0x878] ss:$24 sps:$4 sm:$0xff]   ;;  %v11462_v5 = vld [vmem:[%s13067_s23 + $0x8ac] ss:$24 sps:$4 sm:$0xff]  }
 0x257   : > { %v6474_v25 = vpop.f32.mrb[11].mxu1  ;;  %6775 = vmatprep.subr.bf16.mxu1 %v11417_v6  ;;  %v13606_v27 = vadd.f32 %v6471_v16, %v6431_v18  ;;  %v11457_v2 = vld [vmem:[%s13067_s23 + $0xb78] ss:$24 sps:$4 sm:$0xff]   ;;  %v11465_v6 = vld [vmem:[%s13067_s23 + $0xbac] ss:$24 sps:$4 sm:$0xff]  }
 0x258   : > { %v11463_v8 = vld [vmem:[%s13067_s23 + $0xba8] ss:$24 sps:$4 sm:$0xff]   ;;  %v11471_v14 = vld [vmem:[%s13067_s23 + $0xbdc] ss:$24 sps:$4 sm:$0xff]   ;;  %v11466_v15 = vld [vmem:[%s13067_s23 + $0x8d8] ss:$24 sps:$4 sm:$0xff]  }
 0x259   : > { %6735 = vmatpush1.bf16.msra.mxu0 %v11412_v13  ;;  %v11468_v13 = vld [vmem:[%s13067_s23 + $0x8dc] ss:$24 sps:$4 sm:$0xff]   ;;  %v11469_v16 = vld [vmem:[%s13067_s23 + $0xbd8] ss:$24 sps:$4 sm:$0xff]   ;;  %v11477_v18 = vld [vmem:[%s13067_s23 + $0xf0c] ss:$24 sps:$4 sm:$0xff]  }
 0x25a   : > { %6776 = vmatpush1.bf16.msra.mxu1 %v11415_v17  ;;  %6736 = vmatprep.subr.bf16.mxu0 %v11420_v35  ;;  %v11474_v17 = vld [vmem:[%s13067_s23 + $0xc0c] ss:$24 sps:$4 sm:$0xff]   ;;  %v11472_v19 = vld [vmem:[%s13067_s23 + $0xc08] ss:$24 sps:$4 sm:$0xff]   ;;  %v11480_v24 = vld [vmem:[%s13067_s23 + $0xc3c] ss:$24 sps:$4 sm:$0xff]  }
 0x25b   : > { %6777 = vmatprep.subr.bf16.mxu1 %v11423_v26  ;;  %v11475_v20 = vld [vmem:[%s13067_s23 + $0xf08] ss:$24 sps:$4 sm:$0xff]   ;;  %v11483_v25 = vld [vmem:[%s13067_s23 + $0xf3c] ss:$24 sps:$4 sm:$0xff]   ;;  %v11478_v35 = vld [vmem:[%s13067_s23 + $0xc38] ss:$24 sps:$4 sm:$0xff]  }
 0x25c   : > { %v11481_v26 = vld [vmem:[%s13067_s23 + $0xf38] ss:$24 sps:$4 sm:$0xff]  }
 0x25d   : > { %6737 = vmatpush1.bf16.msra.mxu0 %v11418_v40  ;;  %v11486_v40 = vld [vmem:[%s13067_s23 + $0xc6c] ss:$24 sps:$4 sm:$0xff]  }
 0x25e   : > { %6778 = vmatpush1.bf16.msra.mxu1 %v11421_v28  ;;  %6738 = vmatprep.subr.bf16.mxu0 %v11426_v29  ;;  %v11489_v28 = vld [vmem:[%s13067_s23 + $0xf6c] ss:$24 sps:$4 sm:$0xff]   ;;  %v11484_v29 = vld [vmem:[%s13067_s23 + $0xc68] ss:$24 sps:$4 sm:$0xff]  }
 0x25f   : > { %6779 = vmatprep.subr.bf16.mxu1 %v11429_v31  ;;  %v11487_v31 = vld [vmem:[%s13067_s23 + $0xf68] ss:$24 sps:$4 sm:$0xff]  }
 0x261   : > { %6739 = vmatpush1.bf16.msra.mxu0 %v11424_v32  ;;  %v11492_v32 = vld [vmem:[%s13067_s23 + $0xc9c] ss:$24 sps:$4 sm:$0xff]  }
 0x262   : > { %6780 = vmatpush1.bf16.msra.mxu1 %v11427_v34  ;;  %6740 = vmatprep.subr.bf16.mxu0 %v11432_v36  ;;  %v11495_v34 = vld [vmem:[%s13067_s23 + $0xf9c] ss:$24 sps:$4 sm:$0xff]   ;;  %v11490_v36 = vld [vmem:[%s13067_s23 + $0xc98] ss:$24 sps:$4 sm:$0xff]  }
 0x263   : > { %6781 = vmatprep.subr.bf16.mxu1 %v11435_v37  ;;  %v11493_v37 = vld [vmem:[%s13067_s23 + $0xf98] ss:$24 sps:$4 sm:$0xff]  }
 0x265   : > { %6741 = vmatpush1.bf16.msra.mxu0 %v11430_v45  ;;  %v11498_v45 = vld [vmem:[%s13067_s23 + $0xccc] ss:$24 sps:$4 sm:$0xff]  }
 0x266   : > { %6782 = vmatpush1.bf16.msra.mxu1 %v11433_v39  ;;  %6742 = vmatprep.subr.bf16.mxu0 %v11438_v48  ;;  %v11501_v39 = vld [vmem:[%s13067_s23 + $0xfcc] ss:$24 sps:$4 sm:$0xff]   ;;  %v11496_v48 = vld [vmem:[%s13067_s23 + $0xcc8] ss:$24 sps:$4 sm:$0xff]  }
 0x267   : > { %6783 = vmatprep.subr.bf16.mxu1 %v11441_v42  ;;  %v11499_v42 = vld [vmem:[%s13067_s23 + $0xfc8] ss:$24 sps:$4 sm:$0xff]  }
 0x269   : > { %6743 = vmatpush1.bf16.msra.mxu0 %v11436_v46  ;;  %v11504_v46 = vld [vmem:[%s13067_s23 + $0xcfc] ss:$24 sps:$4 sm:$0xff]  }
 0x26a   : > { %6784 = vmatpush1.bf16.msra.mxu1 %v11439_v47  ;;  %6744 = vmatprep.subr.bf16.mxu0 %v11444_v52  ;;  %v11507_v47 = vld [vmem:[%s13067_s23 + $0xffc] ss:$24 sps:$4 sm:$0xff]   ;;  %v11502_v52 = vld [vmem:[%s13067_s23 + $0xcf8] ss:$24 sps:$4 sm:$0xff]  }
 0x26b   : > { %6785 = vmatprep.subr.bf16.mxu1 %v11447_v54  ;;  %v11505_v54 = vld [vmem:[%s13067_s23 + $0xff8] ss:$24 sps:$4 sm:$0xff]  }
 0x26d   : > { %6745 = vmatpush1.bf16.msra.mxu0 %v11442_v57  ;;  %v11510_v57 = vld [vmem:[%s13067_s23 + $0xd2c] ss:$24 sps:$4 sm:$0xff]  }
 0x26e   : > { %6786 = vmatpush1.bf16.msra.mxu1 %v11445_v58  ;;  %6746 = vmatprep.subr.bf16.mxu0 %v11450_v59  ;;  %v11513_v58 = vld [vmem:[%s13067_s23 + $0x102c] ss:$24 sps:$4 sm:$0xff]  }
 0x26f   : > { %6787 = vmatprep.subr.bf16.mxu1 %v11453_v60 }
 0x271   : > { %6747 = vmatpush1.bf16.msra.mxu0 %v11448_v61  ;;  %v11508_v61 = vld [vmem:[%s13067_s23 + $0xd28] ss:$24 sps:$4 sm:$0xff]  }
 0x272   : > { %6788 = vmatpush1.bf16.msra.mxu1 %v11451_v62  ;;  %6748 = vmatprep.subr.bf16.mxu0 %v11456_v63  ;;  %v11511_v62 = vld [vmem:[%s13067_s23 + $0x1028] ss:$24 sps:$4 sm:$0xff]  }
 0x273   : > { %6789 = vmatprep.subr.bf16.mxu1 %v11459_v0 }
 0x275   : > { %6749 = vmatpush1.bf16.msra.mxu0 %v11454_v1 }
 0x276   : > { %6790 = vmatpush1.bf16.msra.mxu1 %v11457_v2  ;;  %6750 = vmatprep.subr.bf16.mxu0 %v11462_v5 }
 0x277   : > { %6791 = vmatprep.subr.bf16.mxu1 %v11465_v6 }
 0x279   : > { %6751 = vmatpush1.bf16.msra.mxu0 %v11460_v7 }
 0x27a   : > { %6792 = vmatpush1.bf16.msra.mxu1 %v11463_v8  ;;  %6752 = vmatprep.subr.bf16.mxu0 %v11468_v13 }
 0x27b   : > { %6793 = vmatprep.subr.bf16.mxu1 %v11471_v14  ;;  %v11519_v14 = vld [vmem:[%s13067_s23 + $0x105c] ss:$24 sps:$4 sm:$0xff]  }
 0x27d   : > { %6753 = vmatpush1.bf16.msra.mxu0 %v11466_v15 }
 0x27e   : > { %6794 = vmatpush1.bf16.msra.mxu1 %v11469_v16  ;;  %6804 = vmatprep.subr.bf16.mxu0 %v11474_v17  ;;  %v11517_v16 = vld [vmem:[%s13067_s23 + $0x1058] ss:$24 sps:$4 sm:$0xff]   ;;  %v11522_v17 = vld [vmem:[%s13067_s23 + $0xd8c] ss:$24 sps:$4 sm:$0xff]  }
 0x27f   : > { %6845 = vmatprep.subr.bf16.mxu1 %v11477_v18  ;;  %v11525_v18 = vld [vmem:[%s13067_s23 + $0x108c] ss:$24 sps:$4 sm:$0xff]  }
 0x280   : > { %6755 = vmatmul.mubr.bf16.vlgmr.msra.gmra.mrb[24].mxu0 %v13248_v21 }
 0x281   : > { %6796 = vmatmul.mubr.bf16.vlgmr.msra.gmra.mrb[24].mxu1 %v13250_v22  ;;  %6805 = vmatpush1.bf16.msra.mxu0 %v11472_v19  ;;  %v11520_v19 = vld [vmem:[%s13067_s23 + $0xd88] ss:$24 sps:$4 sm:$0xff]  }
 0x282   : > { %6846 = vmatpush1.bf16.msra.mxu1 %v11475_v20  ;;  %6806 = vmatprep.subr.bf16.mxu0 %v11480_v24  ;;  %v11523_v20 = vld [vmem:[%s13067_s23 + $0x1088] ss:$24 sps:$4 sm:$0xff]   ;;  %v11528_v24 = vld [vmem:[%s13067_s23 + $0xdbc] ss:$24 sps:$4 sm:$0xff]  }
 0x283   : > { %6847 = vmatprep.subr.bf16.mxu1 %v11483_v25  ;;  %6836 = vmatprep.mubr.bf16.mxu0 %v13261_v30  ;;  %v11531_v25 = vld [vmem:[%s13067_s23 + $0x10bc] ss:$24 sps:$4 sm:$0xff]  }
 0x284   : > { %6877 = vmatprep.mubr.bf16.mxu1 %v13265_v33 }
 0x285   : > { %6807 = vmatpush1.bf16.msra.mxu0 %v11478_v35  ;;  %v11526_v35 = vld [vmem:[%s13067_s23 + $0xdb8] ss:$24 sps:$4 sm:$0xff]  }
 0x286   : > { %6848 = vmatpush1.bf16.msra.mxu1 %v11481_v26  ;;  %6808 = vmatprep.subr.bf16.mxu0 %v11486_v40  ;;  %v11529_v26 = vld [vmem:[%s13067_s23 + $0x10b8] ss:$24 sps:$4 sm:$0xff]   ;;  %v11534_v40 = vld [vmem:[%s13067_s23 + $0xdec] ss:$24 sps:$4 sm:$0xff]  }
 0x287   : > { %6849 = vmatprep.subr.bf16.mxu1 %v11489_v28  ;;  %v11537_v28 = vld [vmem:[%s13067_s23 + $0x10ec] ss:$24 sps:$4 sm:$0xff]  }
 0x289   : > { %6809 = vmatpush1.bf16.msra.mxu0 %v11484_v29  ;;  %v11532_v29 = vld [vmem:[%s13067_s23 + $0xde8] ss:$24 sps:$4 sm:$0xff]  }
 0x28a   : > { %6850 = vmatpush1.bf16.msra.mxu1 %v11487_v31  ;;  %6810 = vmatprep.subr.bf16.mxu0 %v11492_v32  ;;  %v11535_v31 = vld [vmem:[%s13067_s23 + $0x10e8] ss:$24 sps:$4 sm:$0xff]   ;;  %v11540_v32 = vld [vmem:[%s13067_s23 + $0xe1c] ss:$24 sps:$4 sm:$0xff]  }
 0x28b   : > { %6851 = vmatprep.subr.bf16.mxu1 %v11495_v34  ;;  %v11543_v34 = vld [vmem:[%s13067_s23 + $0x111c] ss:$24 sps:$4 sm:$0xff]  }
 0x28d   : > { %6811 = vmatpush1.bf16.msra.mxu0 %v11490_v36  ;;  %v11538_v36 = vld [vmem:[%s13067_s23 + $0xe18] ss:$24 sps:$4 sm:$0xff]  }
 0x28e   : > { %6852 = vmatpush1.bf16.msra.mxu1 %v11493_v37  ;;  %6812 = vmatprep.subr.bf16.mxu0 %v11498_v45  ;;  %v11541_v37 = vld [vmem:[%s13067_s23 + $0x1118] ss:$24 sps:$4 sm:$0xff]   ;;  %v11546_v45 = vld [vmem:[%s13067_s23 + $0xe4c] ss:$24 sps:$4 sm:$0xff]  }
 0x28f   : > { %6853 = vmatprep.subr.bf16.mxu1 %v11501_v39  ;;  %v11549_v39 = vld [vmem:[%s13067_s23 + $0x114c] ss:$24 sps:$4 sm:$0xff]  }
 0x291   : > { %6813 = vmatpush1.bf16.msra.mxu0 %v11496_v48  ;;  %v11544_v48 = vld [vmem:[%s13067_s23 + $0xe48] ss:$24 sps:$4 sm:$0xff]  }
 0x292   : > { %6854 = vmatpush1.bf16.msra.mxu1 %v11499_v42  ;;  %6814 = vmatprep.subr.bf16.mxu0 %v11504_v46  ;;  %v11547_v42 = vld [vmem:[%s13067_s23 + $0x1148] ss:$24 sps:$4 sm:$0xff]   ;;  %v11552_v46 = vld [vmem:[%s13067_s23 + $0xe7c] ss:$24 sps:$4 sm:$0xff]  }
 0x293   : > { %6855 = vmatprep.subr.bf16.mxu1 %v11507_v47  ;;  %v6510_v59 = vpop.f32.mrb[12].mxu0  ;;  %v11555_v47 = vld [vmem:[%s13067_s23 + $0x117c] ss:$24 sps:$4 sm:$0xff]  }
 0x294   : > { %v6551_v60 = vpop.f32.mrb[12].mxu1  ;;  %v6511_v63 = vadd.f32 %v6510_v59, %v13602_v23  ;;  %v6512_v0 = vpop.f32.mrb[13].mxu0  ;;  %v11516_v23 = vld [vmem:[%s13067_s23 + $0xd5c] ss:$24 sps:$4 sm:$0xff]   ;;  %v11556_v59 = vld [vmem:[%s13067_s23 + $0xea8] ss:$24 sps:$4 sm:$0xff]  }
 0x295   : > { %v6553_v1 = vpop.f32.mrb[13].mxu1  ;;  %v6513_v2 = vadd.f32 %v6512_v0, %v13606_v27  ;;  %v6514_v5 = vpop.f32.mrb[14].mxu0  ;;  %6815 = vmatpush1.bf16.msra.mxu0 %v11502_v52  ;;  %v11514_v27 = vld [vmem:[%s13067_s23 + $0xd58] ss:$24 sps:$4 sm:$0xff]  }
 0x296   : > { %v6555_v6 = vpop.f32.mrb[14].mxu1  ;;  %6856 = vmatpush1.bf16.msra.mxu1 %v11505_v54  ;;  %v13676_v7 = vadd.f32 %v6551_v60, %v6511_v63  ;;  %v6515_v8 = vpop.f32.mrb[15].mxu0  ;;  %6816 = vmatprep.subr.bf16.mxu0 %v11510_v57  ;;  %v11550_v52 = vld [vmem:[%s13067_s23 + $0xe78] ss:$24 sps:$4 sm:$0xff]   ;;  %v11558_v57 = vld [vmem:[%s13067_s23 + $0xeac] ss:$24 sps:$4 sm:$0xff]  }
 0x297   : > { %v6556_v13 = vpop.f32.mrb[15].mxu1  ;;  %6857 = vmatprep.subr.bf16.mxu1 %v11513_v58  ;;  %v13680_v15 = vadd.f32 %v6553_v1, %v6513_v2  ;;  %v11553_v54 = vld [vmem:[%s13067_s23 + $0x1178] ss:$24 sps:$4 sm:$0xff]   ;;  %v11561_v58 = vld [vmem:[%s13067_s23 + $0x11ac] ss:$24 sps:$4 sm:$0xff]  }
 0x298   : > { %v11559_v60 = vld [vmem:[%s13067_s23 + $0x11a8] ss:$24 sps:$4 sm:$0xff]   ;;  %v11562_v63 = vld [vmem:[%s13067_s23 + $0xed8] ss:$24 sps:$4 sm:$0xff]   ;;  %v11570_v1 = vld [vmem:[%s13067_s23 + $0x120c] ss:$24 sps:$4 sm:$0xff]  }
 0x299   : > { %6817 = vmatpush1.bf16.msra.mxu0 %v11508_v61  ;;  %v11564_v61 = vld [vmem:[%s13067_s23 + $0xedc] ss:$24 sps:$4 sm:$0xff]   ;;  %v11565_v0 = vld [vmem:[%s13067_s23 + $0x11d8] ss:$24 sps:$4 sm:$0xff]   ;;  %v11573_v2 = vld [vmem:[%s13067_s23 + $0x150c] ss:$24 sps:$4 sm:$0xff]  }
 0x29a   : > { %6858 = vmatpush1.bf16.msra.mxu1 %v11511_v62  ;;  %6818 = vmatprep.subr.bf16.mxu0 %v11516_v23  ;;  %v11567_v62 = vld [vmem:[%s13067_s23 + $0x11dc] ss:$24 sps:$4 sm:$0xff]   ;;  %v11568_v5 = vld [vmem:[%s13067_s23 + $0x1208] ss:$24 sps:$4 sm:$0xff]   ;;  %v11574_v23 = vld [vmem:[%s13067_s23 + $0x1238] ss:$24 sps:$4 sm:$0xff]  }
 0x29b   : > { %6859 = vmatprep.subr.bf16.mxu1 %v11519_v14  ;;  %v11571_v6 = vld [vmem:[%s13067_s23 + $0x1508] ss:$24 sps:$4 sm:$0xff]   ;;  %v11576_v8 = vld [vmem:[%s13067_s23 + $0x123c] ss:$24 sps:$4 sm:$0xff]   ;;  %v11577_v14 = vld [vmem:[%s13067_s23 + $0x1538] ss:$24 sps:$4 sm:$0xff]  }
 0x29c   : > { %v11579_v13 = vld [vmem:[%s13067_s23 + $0x153c] ss:$24 sps:$4 sm:$0xff]  }
 0x29d   : > { %6819 = vmatpush1.bf16.msra.mxu0 %v11514_v27  ;;  %v11582_v27 = vld [vmem:[%s13067_s23 + $0x126c] ss:$24 sps:$4 sm:$0xff]  }
 0x29e   : > { %6860 = vmatpush1.bf16.msra.mxu1 %v11517_v16  ;;  %6820 = vmatprep.subr.bf16.mxu0 %v11522_v17  ;;  %v11585_v16 = vld [vmem:[%s13067_s23 + $0x156c] ss:$24 sps:$4 sm:$0xff]   ;;  %v11580_v17 = vld [vmem:[%s13067_s23 + $0x1268] ss:$24 sps:$4 sm:$0xff]  }
 0x29f   : > { %6861 = vmatprep.subr.bf16.mxu1 %v11525_v18  ;;  %v11583_v18 = vld [vmem:[%s13067_s23 + $0x1568] ss:$24 sps:$4 sm:$0xff]  }
 0x2a1   : > { %6821 = vmatpush1.bf16.msra.mxu0 %v11520_v19  ;;  %v11588_v19 = vld [vmem:[%s13067_s23 + $0x129c] ss:$24 sps:$4 sm:$0xff]  }
 0x2a2   : > { %6862 = vmatpush1.bf16.msra.mxu1 %v11523_v20  ;;  %6822 = vmatprep.subr.bf16.mxu0 %v11528_v24  ;;  %v11591_v20 = vld [vmem:[%s13067_s23 + $0x159c] ss:$24 sps:$4 sm:$0xff]   ;;  %v11586_v24 = vld [vmem:[%s13067_s23 + $0x1298] ss:$24 sps:$4 sm:$0xff]  }
 0x2a3   : > { %6863 = vmatprep.subr.bf16.mxu1 %v11531_v25  ;;  %v11589_v25 = vld [vmem:[%s13067_s23 + $0x1598] ss:$24 sps:$4 sm:$0xff]  }
 0x2a5   : > { %6823 = vmatpush1.bf16.msra.mxu0 %v11526_v35  ;;  %v11594_v35 = vld [vmem:[%s13067_s23 + $0x12cc] ss:$24 sps:$4 sm:$0xff]  }
 0x2a6   : > { %6864 = vmatpush1.bf16.msra.mxu1 %v11529_v26  ;;  %6824 = vmatprep.subr.bf16.mxu0 %v11534_v40  ;;  %v11597_v26 = vld [vmem:[%s13067_s23 + $0x15cc] ss:$24 sps:$4 sm:$0xff]   ;;  %v11592_v40 = vld [vmem:[%s13067_s23 + $0x12c8] ss:$24 sps:$4 sm:$0xff]  }
 0x2a7   : > { %6865 = vmatprep.subr.bf16.mxu1 %v11537_v28  ;;  %v11595_v28 = vld [vmem:[%s13067_s23 + $0x15c8] ss:$24 sps:$4 sm:$0xff]  }
 0x2a9   : > { %6825 = vmatpush1.bf16.msra.mxu0 %v11532_v29  ;;  %v11600_v29 = vld [vmem:[%s13067_s23 + $0x12fc] ss:$24 sps:$4 sm:$0xff]  }
 0x2aa   : > { %6866 = vmatpush1.bf16.msra.mxu1 %v11535_v31  ;;  %6826 = vmatprep.subr.bf16.mxu0 %v11540_v32  ;;  %v11603_v31 = vld [vmem:[%s13067_s23 + $0x15fc] ss:$24 sps:$4 sm:$0xff]   ;;  %v11598_v32 = vld [vmem:[%s13067_s23 + $0x12f8] ss:$24 sps:$4 sm:$0xff]  }
 0x2ab   : > { %6867 = vmatprep.subr.bf16.mxu1 %v11543_v34  ;;  %v11601_v34 = vld [vmem:[%s13067_s23 + $0x15f8] ss:$24 sps:$4 sm:$0xff]  }
 0x2ad   : > { %6827 = vmatpush1.bf16.msra.mxu0 %v11538_v36  ;;  %v11606_v36 = vld [vmem:[%s13067_s23 + $0x132c] ss:$24 sps:$4 sm:$0xff]  }
 0x2ae   : > { %6868 = vmatpush1.bf16.msra.mxu1 %v11541_v37  ;;  %6828 = vmatprep.subr.bf16.mxu0 %v11546_v45  ;;  %v11609_v37 = vld [vmem:[%s13067_s23 + $0x162c] ss:$24 sps:$4 sm:$0xff]  }
 0x2af   : > { %6869 = vmatprep.subr.bf16.mxu1 %v11549_v39  ;;  %v424_v39 = vld [vmem:[#allocation2] sm:$0xff] }
 0x2b1   : > { %6829 = vmatpush1.bf16.msra.mxu0 %v11544_v48 }
 0x2b2   : > { %6870 = vmatpush1.bf16.msra.mxu1 %v11547_v42  ;;  %6830 = vmatprep.subr.bf16.mxu0 %v11552_v46  ;;  %v11604_v42 = vld [vmem:[%s13067_s23 + $0x1328] ss:$24 sps:$4 sm:$0xff]  }
 0x2b3   : > { %6871 = vmatprep.subr.bf16.mxu1 %v11555_v47  ;;  %v11607_v46 = vld [vmem:[%s13067_s23 + $0x1628] ss:$24 sps:$4 sm:$0xff]  }
 0x2b5   : > { %6831 = vmatpush1.bf16.msra.mxu0 %v11550_v52 }
 0x2b6   : > { %6872 = vmatpush1.bf16.msra.mxu1 %v11553_v54  ;;  %6832 = vmatprep.subr.bf16.mxu0 %v11558_v57  ;;  %v425_v54 = vld [vmem:[#allocation2 + $0x8] sm:$0xff] }
 0x2b7   : > { %6873 = vmatprep.subr.bf16.mxu1 %v11561_v58 }
 0x2b9   : > { %6833 = vmatpush1.bf16.msra.mxu0 %v11556_v59 }
 0x2ba   : > { %6874 = vmatpush1.bf16.msra.mxu1 %v11559_v60  ;;  %6834 = vmatprep.subr.bf16.mxu0 %v11564_v61 }
 0x2bb   : > { %6875 = vmatprep.subr.bf16.mxu1 %v11567_v62 }
 0x2bd   : > { %6835 = vmatpush1.bf16.msra.mxu0 %v11562_v63 }
 0x2be   : > { %6876 = vmatpush1.bf16.msra.mxu1 %v11565_v0  ;;  %6886 = vmatprep.subr.bf16.mxu0 %v11570_v1  ;;  %v11612_v0 = vld [vmem:[%s13067_s23 + $0x135c] ss:$24 sps:$4 sm:$0xff]  }
 0x2bf   : > { %6927 = vmatprep.subr.bf16.mxu1 %v11573_v2 }
 0x2c0   : > { %6837 = vmatmul.mubr.bf16.vlgmr.msra.gmra.mrb[28].mxu0 %v13330_v43 }
 0x2c1   : > { %6878 = vmatmul.mubr.bf16.vlgmr.msra.gmra.mrb[28].mxu1 %v13332_v44  ;;  %6887 = vmatpush1.bf16.msra.mxu0 %v11568_v5  ;;  %v11610_v5 = vld [vmem:[%s13067_s23 + $0x1358] ss:$24 sps:$4 sm:$0xff]  }
 0x2c2   : > { %6928 = vmatpush1.bf16.msra.mxu1 %v11571_v6  ;;  %6888 = vmatprep.subr.bf16.mxu0 %v11576_v8  ;;  %v11613_v6 = vld [vmem:[%s13067_s23 + $0x1658] ss:$24 sps:$4 sm:$0xff]   ;;  %v11618_v8 = vld [vmem:[%s13067_s23 + $0x138c] ss:$24 sps:$4 sm:$0xff]  }
 0x2c3   : > { %6929 = vmatprep.subr.bf16.mxu1 %v11579_v13  ;;  %6918 = vmatprep.mubr.bf16.mxu0 %v13338_v49  ;;  %v11621_v13 = vld [vmem:[%s13067_s23 + $0x168c] ss:$24 sps:$4 sm:$0xff]  }
 0x2c4   : > { %6959 = vmatprep.mubr.bf16.mxu1 %v13340_v51 }
 0x2c5   : > { %6889 = vmatpush1.bf16.msra.mxu0 %v11574_v23  ;;  %v11616_v23 = vld [vmem:[%s13067_s23 + $0x1388] ss:$24 sps:$4 sm:$0xff]  }
 0x2c6   : > { %6930 = vmatpush1.bf16.msra.mxu1 %v11577_v14  ;;  %6890 = vmatprep.subr.bf16.mxu0 %v11582_v27  ;;  %v11619_v14 = vld [vmem:[%s13067_s23 + $0x1688] ss:$24 sps:$4 sm:$0xff]   ;;  %v11624_v27 = vld [vmem:[%s13067_s23 + $0x13bc] ss:$24 sps:$4 sm:$0xff]  }
 0x2c7   : > { %6931 = vmatprep.subr.bf16.mxu1 %v11585_v16  ;;  %v11627_v16 = vld [vmem:[%s13067_s23 + $0x16bc] ss:$24 sps:$4 sm:$0xff]  }
 0x2c9   : > { %6891 = vmatpush1.bf16.msra.mxu0 %v11580_v17  ;;  %v11622_v17 = vld [vmem:[%s13067_s23 + $0x13b8] ss:$24 sps:$4 sm:$0xff]  }
 0x2ca   : > { %6932 = vmatpush1.bf16.msra.mxu1 %v11583_v18  ;;  %6892 = vmatprep.subr.bf16.mxu0 %v11588_v19  ;;  %v11625_v18 = vld [vmem:[%s13067_s23 + $0x16b8] ss:$24 sps:$4 sm:$0xff]   ;;  %v11630_v19 = vld [vmem:[%s13067_s23 + $0x13ec] ss:$24 sps:$4 sm:$0xff]  }
 0x2cb   : > { %6933 = vmatprep.subr.bf16.mxu1 %v11591_v20  ;;  %v11633_v20 = vld [vmem:[%s13067_s23 + $0x16ec] ss:$24 sps:$4 sm:$0xff]  }
 0x2cd   : > { %6893 = vmatpush1.bf16.msra.mxu0 %v11586_v24  ;;  %v11628_v24 = vld [vmem:[%s13067_s23 + $0x13e8] ss:$24 sps:$4 sm:$0xff]  }
 0x2ce   : > { %6934 = vmatpush1.bf16.msra.mxu1 %v11589_v25  ;;  %6894 = vmatprep.subr.bf16.mxu0 %v11594_v35  ;;  %v11631_v25 = vld [vmem:[%s13067_s23 + $0x16e8] ss:$24 sps:$4 sm:$0xff]   ;;  %v11636_v35 = vld [vmem:[%s13067_s23 + $0x141c] ss:$24 sps:$4 sm:$0xff]  }
 0x2cf   : > { %6935 = vmatprep.subr.bf16.mxu1 %v11597_v26  ;;  %v11639_v26 = vld [vmem:[%s13067_s23 + $0x171c] ss:$24 sps:$4 sm:$0xff]  }
 0x2d1   : > { %6895 = vmatpush1.bf16.msra.mxu0 %v11592_v40  ;;  %v11634_v40 = vld [vmem:[%s13067_s23 + $0x1418] ss:$24 sps:$4 sm:$0xff]  }
 0x2d2   : > { %6936 = vmatpush1.bf16.msra.mxu1 %v11595_v28  ;;  %6896 = vmatprep.subr.bf16.mxu0 %v11600_v29  ;;  %v11637_v28 = vld [vmem:[%s13067_s23 + $0x1718] ss:$24 sps:$4 sm:$0xff]   ;;  %v11642_v29 = vld [vmem:[%s13067_s23 + $0x144c] ss:$24 sps:$4 sm:$0xff]  }
 0x2d3   : > { %6937 = vmatprep.subr.bf16.mxu1 %v11603_v31  ;;  %v6592_v45 = vpop.f32.mrb[16].mxu0  ;;  %v11645_v31 = vld [vmem:[%s13067_s23 + $0x174c] ss:$24 sps:$4 sm:$0xff]  }
 0x2d4   : > { %v6633_v48 = vpop.f32.mrb[16].mxu1  ;;  %v6593_v47 = vadd.f32 %v6592_v45, %v13676_v7  ;;  %v6594_v52 = vpop.f32.mrb[17].mxu0  ;;  %v11615_v7 = vld [vmem:[%s13067_s23 + $0x165c] ss:$24 sps:$4 sm:$0xff]   ;;  %v11646_v45 = vld [vmem:[%s13067_s23 + $0x1478] ss:$24 sps:$4 sm:$0xff]  }
 0x2d5   : > { %v6635_v57 = vpop.f32.mrb[17].mxu1  ;;  %v6595_v58 = vadd.f32 %v6594_v52, %v13680_v15  ;;  %v6596_v59 = vpop.f32.mrb[18].mxu0  ;;  %6897 = vmatpush1.bf16.msra.mxu0 %v11598_v32  ;;  %v11640_v32 = vld [vmem:[%s13067_s23 + $0x1448] ss:$24 sps:$4 sm:$0xff]   ;;  %v11660_v52 = vld [vmem:[%s13067_s23 + $0x14dc] ss:$24 sps:$4 sm:$0xff]  }
 0x2d6   : > { %v6637_v60 = vpop.f32.mrb[18].mxu1  ;;  %6938 = vmatpush1.bf16.msra.mxu1 %v11601_v34  ;;  %v6634_v61 = vadd.f32 %v6633_v48, %v6593_v47  ;;  %v6597_v62 = vpop.f32.mrb[19].mxu0  ;;  %6898 = vmatprep.subr.bf16.mxu0 %v11606_v36  ;;  %v11643_v34 = vld [vmem:[%s13067_s23 + $0x1748] ss:$24 sps:$4 sm:$0xff]   ;;  %v11648_v36 = vld [vmem:[%s13067_s23 + $0x147c] ss:$24 sps:$4 sm:$0xff]  }
 0x2d7   : > { %v6638_v63 = vpop.f32.mrb[19].mxu1  ;;  %6939 = vmatprep.subr.bf16.mxu1 %v11609_v37  ;;  %v6636_v1 = vadd.f32 %v6635_v57, %v6595_v58  ;;  %v11651_v37 = vld [vmem:[%s13067_s23 + $0x177c] ss:$24 sps:$4 sm:$0xff]   ;;  %v11654_v48 = vld [vmem:[%s13067_s23 + $0x14ac] ss:$24 sps:$4 sm:$0xff]  }
 0x2d8   : > { %v7460_v2 = vadd.f32 %v6634_v61, %v424_v39  ;;  %v11649_v39 = vld [vmem:[%s13067_s23 + $0x1778] ss:$24 sps:$4 sm:$0xff]   ;;  %v11655_v47 = vld [vmem:[%s13067_s23 + $0x17a8] ss:$24 sps:$4 sm:$0xff]   ;;  %v11666_v59 = vld [vmem:[%s13067_s23 + $0x180c] ss:$24 sps:$4 sm:$0xff]  }
 0x2d9   : > { %v7461_v15 = vadd.f32 %v6636_v1, %v425_v54  ;;  %6899 = vmatpush1.bf16.msra.mxu0 %v11604_v42  ;;  %v11657_v42 = vld [vmem:[%s13067_s23 + $0x17ac] ss:$24 sps:$4 sm:$0xff]   ;;  %v11663_v54 = vld [vmem:[%s13067_s23 + $0x17dc] ss:$24 sps:$4 sm:$0xff]   ;;  %v11658_v57 = vld [vmem:[%s13067_s23 + $0x14d8] ss:$24 sps:$4 sm:$0xff]  }
 0x2da   : > { %6940 = vmatpush1.bf16.msra.mxu1 %v11607_v46  ;;  %7466 = vst [vmem:[#allocation2] sm:$0xff] %v7460_v2  ;;  %6900 = vmatprep.subr.bf16.mxu0 %v11612_v0  ;;  %v11652_v46 = vld [vmem:[%s13067_s23 + $0x14a8] ss:$24 sps:$4 sm:$0xff]   ;;  %v11661_v58 = vld [vmem:[%s13067_s23 + $0x17d8] ss:$24 sps:$4 sm:$0xff]  }
 0x2db   : > { %6941 = vmatprep.subr.bf16.mxu1 %v11615_v7  ;;  %7467 = vst [vmem:[#allocation2 + $0x8] sm:$0xff] %v7461_v15  ;;  %v11669_v60 = vld [vmem:[%s13067_s23 + $0x1b0c] ss:$24 sps:$4 sm:$0xff]   ;;  %v11664_v61 = vld [vmem:[%s13067_s23 + $0x1808] ss:$24 sps:$4 sm:$0xff]  }
 0x2dc   : > { %v11667_v62 = vld [vmem:[%s13067_s23 + $0x1b08] ss:$24 sps:$4 sm:$0xff]   ;;  %v11672_v63 = vld [vmem:[%s13067_s23 + $0x183c] ss:$24 sps:$4 sm:$0xff]   ;;  %v11670_v7 = vld [vmem:[%s13067_s23 + $0x1838] ss:$24 sps:$4 sm:$0xff]  }
 0x2dd   : > { %6901 = vmatpush1.bf16.msra.mxu0 %v11610_v5  ;;  %v11675_v0 = vld [vmem:[%s13067_s23 + $0x1b3c] ss:$24 sps:$4 sm:$0xff]   ;;  %v11673_v1 = vld [vmem:[%s13067_s23 + $0x1b38] ss:$24 sps:$4 sm:$0xff]   ;;  %v11678_v2 = vld [vmem:[%s13067_s23 + $0x186c] ss:$24 sps:$4 sm:$0xff]  }
 0x2de   : > { %6942 = vmatpush1.bf16.msra.mxu1 %v11613_v6  ;;  %6902 = vmatprep.subr.bf16.mxu0 %v11618_v8  ;;  %v11681_v15 = vld [vmem:[%s13067_s23 + $0x1b6c] ss:$24 sps:$4 sm:$0xff]   ;;  %v11676_v5 = vld [vmem:[%s13067_s23 + $0x1868] ss:$24 sps:$4 sm:$0xff]   ;;  %v11684_v8 = vld [vmem:[%s13067_s23 + $0x189c] ss:$24 sps:$4 sm:$0xff]  }
 0x2df   : > { %6943 = vmatprep.subr.bf16.mxu1 %v11621_v13  ;;  %v11679_v6 = vld [vmem:[%s13067_s23 + $0x1b68] ss:$24 sps:$4 sm:$0xff]   ;;  %v11687_v13 = vld [vmem:[%s13067_s23 + $0x1b9c] ss:$24 sps:$4 sm:$0xff]  }
 0x2e1   : > { %6903 = vmatpush1.bf16.msra.mxu0 %v11616_v23  ;;  %v11682_v23 = vld [vmem:[%s13067_s23 + $0x1898] ss:$24 sps:$4 sm:$0xff]  }
 0x2e2   : > { %6944 = vmatpush1.bf16.msra.mxu1 %v11619_v14  ;;  %6904 = vmatprep.subr.bf16.mxu0 %v11624_v27  ;;  %v11685_v14 = vld [vmem:[%s13067_s23 + $0x1b98] ss:$24 sps:$4 sm:$0xff]   ;;  %v11690_v27 = vld [vmem:[%s13067_s23 + $0x18cc] ss:$24 sps:$4 sm:$0xff]  }
 0x2e3   : > { %6945 = vmatprep.subr.bf16.mxu1 %v11627_v16  ;;  %v11693_v16 = vld [vmem:[%s13067_s23 + $0x1bcc] ss:$24 sps:$4 sm:$0xff]  }
 0x2e5   : > { %6905 = vmatpush1.bf16.msra.mxu0 %v11622_v17  ;;  %v11688_v17 = vld [vmem:[%s13067_s23 + $0x18c8] ss:$24 sps:$4 sm:$0xff]  }
 0x2e6   : > { %6946 = vmatpush1.bf16.msra.mxu1 %v11625_v18  ;;  %6906 = vmatprep.subr.bf16.mxu0 %v11630_v19  ;;  %v11691_v18 = vld [vmem:[%s13067_s23 + $0x1bc8] ss:$24 sps:$4 sm:$0xff]   ;;  %v11696_v19 = vld [vmem:[%s13067_s23 + $0x18fc] ss:$24 sps:$4 sm:$0xff]  }
 0x2e7   : > { %6947 = vmatprep.subr.bf16.mxu1 %v11633_v20  ;;  %v11699_v20 = vld [vmem:[%s13067_s23 + $0x1bfc] ss:$24 sps:$4 sm:$0xff]  }
 0x2e9   : > { %6907 = vmatpush1.bf16.msra.mxu0 %v11628_v24  ;;  %v11694_v24 = vld [vmem:[%s13067_s23 + $0x18f8] ss:$24 sps:$4 sm:$0xff]  }
 0x2ea   : > { %6948 = vmatpush1.bf16.msra.mxu1 %v11631_v25  ;;  %6908 = vmatprep.subr.bf16.mxu0 %v11636_v35  ;;  %v11697_v25 = vld [vmem:[%s13067_s23 + $0x1bf8] ss:$24 sps:$4 sm:$0xff]   ;;  %v11702_v35 = vld [vmem:[%s13067_s23 + $0x192c] ss:$24 sps:$4 sm:$0xff]  }
 0x2eb   : > { %6949 = vmatprep.subr.bf16.mxu1 %v11639_v26  ;;  %v11705_v26 = vld [vmem:[%s13067_s23 + $0x1c2c] ss:$24 sps:$4 sm:$0xff]  }
 0x2ed   : > { %6909 = vmatpush1.bf16.msra.mxu0 %v11634_v40 }
 0x2ee   : > { %6950 = vmatpush1.bf16.msra.mxu1 %v11637_v28  ;;  %6910 = vmatprep.subr.bf16.mxu0 %v11642_v29 }
 0x2ef   : > { %6951 = vmatprep.subr.bf16.mxu1 %v11645_v31 }
 0x2f1   : > { %6911 = vmatpush1.bf16.msra.mxu0 %v11640_v32 }
 0x2f2   : > { %6952 = vmatpush1.bf16.msra.mxu1 %v11643_v34  ;;  %6912 = vmatprep.subr.bf16.mxu0 %v11648_v36 }
 0x2f3   : > { %6953 = vmatprep.subr.bf16.mxu1 %v11651_v37 }
 0x2f5   : > { %6913 = vmatpush1.bf16.msra.mxu0 %v11646_v45  ;;  %v11700_v45 = vld [vmem:[%s13067_s23 + $0x1928] ss:$24 sps:$4 sm:$0xff]  }
 0x2f6   : > { %6954 = vmatpush1.bf16.msra.mxu1 %v11649_v39  ;;  %6914 = vmatprep.subr.bf16.mxu0 %v11654_v48  ;;  %v11703_v39 = vld [vmem:[%s13067_s23 + $0x1c28] ss:$24 sps:$4 sm:$0xff]  }
 0x2f7   : > { %6955 = vmatprep.subr.bf16.mxu1 %v11657_v42 }
 0x2f9   : > { %6915 = vmatpush1.bf16.msra.mxu0 %v11652_v46  ;;  %v11708_v46 = vld [vmem:[%s13067_s23 + $0x195c] ss:$24 sps:$4 sm:$0xff]  }
 0x2fa   : > { %6956 = vmatpush1.bf16.msra.mxu1 %v11655_v47  ;;  %6916 = vmatprep.subr.bf16.mxu0 %v11660_v52  ;;  %v11711_v47 = vld [vmem:[%s13067_s23 + $0x1c5c] ss:$24 sps:$4 sm:$0xff]   ;;  %v11706_v52 = vld [vmem:[%s13067_s23 + $0x1958] ss:$24 sps:$4 sm:$0xff]  }
 0x2fb   : > { %6957 = vmatprep.subr.bf16.mxu1 %v11663_v54  ;;  %v11709_v54 = vld [vmem:[%s13067_s23 + $0x1c58] ss:$24 sps:$4 sm:$0xff]  }
 0x2fd   : > { %6917 = vmatpush1.bf16.msra.mxu0 %v11658_v57  ;;  %v11714_v57 = vld [vmem:[%s13067_s23 + $0x198c] ss:$24 sps:$4 sm:$0xff]  }
 0x2fe   : > { %6958 = vmatpush1.bf16.msra.mxu1 %v11661_v58  ;;  %6968 = vmatprep.subr.bf16.mxu0 %v11666_v59  ;;  %v11717_v58 = vld [vmem:[%s13067_s23 + $0x1c8c] ss:$24 sps:$4 sm:$0xff]   ;;  %v11712_v59 = vld [vmem:[%s13067_s23 + $0x1988] ss:$24 sps:$4 sm:$0xff]  }
 0x2ff   : > { %7009 = vmatprep.subr.bf16.mxu1 %v11669_v60  ;;  %v11715_v60 = vld [vmem:[%s13067_s23 + $0x1c88] ss:$24 sps:$4 sm:$0xff]  }
 0x300   : > { %6919 = vmatmul.mubr.bf16.vlgmr.msra.gmra.mrb[32].mxu0 %v13410_v3 }
 0x301   : > { %6960 = vmatmul.mubr.bf16.vlgmr.msra.gmra.mrb[32].mxu1 %v13412_v4  ;;  %6969 = vmatpush1.bf16.msra.mxu0 %v11664_v61  ;;  %v11720_v61 = vld [vmem:[%s13067_s23 + $0x19bc] ss:$24 sps:$4 sm:$0xff]  }
 0x302   : > { %7010 = vmatpush1.bf16.msra.mxu1 %v11667_v62  ;;  %6970 = vmatprep.subr.bf16.mxu0 %v11672_v63  ;;  %v11723_v62 = vld [vmem:[%s13067_s23 + $0x1cbc] ss:$24 sps:$4 sm:$0xff]   ;;  %v11718_v63 = vld [vmem:[%s13067_s23 + $0x19b8] ss:$24 sps:$4 sm:$0xff]  }
 0x303   : > { %7011 = vmatprep.subr.bf16.mxu1 %v11675_v0  ;;  %7000 = vmatprep.mubr.bf16.mxu0 %v13418_v11  ;;  %v11721_v0 = vld [vmem:[%s13067_s23 + $0x1cb8] ss:$24 sps:$4 sm:$0xff]  }
 0x304   : > { %7041 = vmatprep.mubr.bf16.mxu1 %v13420_v12 }
 0x305   : > { %6971 = vmatpush1.bf16.msra.mxu0 %v11670_v7  ;;  %v11726_v7 = vld [vmem:[%s13067_s23 + $0x19ec] ss:$24 sps:$4 sm:$0xff]  }
 0x306   : > { %7012 = vmatpush1.bf16.msra.mxu1 %v11673_v1  ;;  %6972 = vmatprep.subr.bf16.mxu0 %v11678_v2  ;;  %v11729_v1 = vld [vmem:[%s13067_s23 + $0x1cec] ss:$24 sps:$4 sm:$0xff]   ;;  %v11724_v2 = vld [vmem:[%s13067_s23 + $0x19e8] ss:$24 sps:$4 sm:$0xff]  }
 0x307   : > { %7013 = vmatprep.subr.bf16.mxu1 %v11681_v15  ;;  %v11727_v15 = vld [vmem:[%s13067_s23 + $0x1ce8] ss:$24 sps:$4 sm:$0xff]  }
 0x309   : > { %6973 = vmatpush1.bf16.msra.mxu0 %v11676_v5  ;;  %v11732_v5 = vld [vmem:[%s13067_s23 + $0x1a1c] ss:$24 sps:$4 sm:$0xff]  }
 0x30a   : > { %7014 = vmatpush1.bf16.msra.mxu1 %v11679_v6  ;;  %6974 = vmatprep.subr.bf16.mxu0 %v11684_v8  ;;  %v11735_v6 = vld [vmem:[%s13067_s23 + $0x1d1c] ss:$24 sps:$4 sm:$0xff]   ;;  %v11730_v8 = vld [vmem:[%s13067_s23 + $0x1a18] ss:$24 sps:$4 sm:$0xff]  }
 0x30b   : > { %7015 = vmatprep.subr.bf16.mxu1 %v11687_v13  ;;  %v11733_v13 = vld [vmem:[%s13067_s23 + $0x1d18] ss:$24 sps:$4 sm:$0xff]  }
 0x30d   : > { %6975 = vmatpush1.bf16.msra.mxu0 %v11682_v23  ;;  %v11738_v23 = vld [vmem:[%s13067_s23 + $0x1a4c] ss:$24 sps:$4 sm:$0xff]  }
 0x30e   : > { %7016 = vmatpush1.bf16.msra.mxu1 %v11685_v14  ;;  %6976 = vmatprep.subr.bf16.mxu0 %v11690_v27  ;;  %v11741_v14 = vld [vmem:[%s13067_s23 + $0x1d4c] ss:$24 sps:$4 sm:$0xff]   ;;  %v11736_v27 = vld [vmem:[%s13067_s23 + $0x1a48] ss:$24 sps:$4 sm:$0xff]  }
 0x30f   : > { %7017 = vmatprep.subr.bf16.mxu1 %v11693_v16  ;;  %v11739_v16 = vld [vmem:[%s13067_s23 + $0x1d48] ss:$24 sps:$4 sm:$0xff]  }
 0x311   : > { %6977 = vmatpush1.bf16.msra.mxu0 %v11688_v17  ;;  %v11744_v17 = vld [vmem:[%s13067_s23 + $0x1a7c] ss:$24 sps:$4 sm:$0xff]  }
 0x312   : > { %7018 = vmatpush1.bf16.msra.mxu1 %v11691_v18  ;;  %6978 = vmatprep.subr.bf16.mxu0 %v11696_v19  ;;  %v11747_v18 = vld [vmem:[%s13067_s23 + $0x1d7c] ss:$24 sps:$4 sm:$0xff]   ;;  %v11742_v19 = vld [vmem:[%s13067_s23 + $0x1a78] ss:$24 sps:$4 sm:$0xff]  }
 0x313   : > { %7019 = vmatprep.subr.bf16.mxu1 %v11699_v20  ;;  %v6674_v40 = vpop.f32.mrb[20].mxu0  ;;  %v11745_v20 = vld [vmem:[%s13067_s23 + $0x1d78] ss:$24 sps:$4 sm:$0xff]  }
 0x314   : > { %v6715_v28 = vpop.f32.mrb[20].mxu1  ;;  %v6676_v31 = vpop.f32.mrb[21].mxu0 }
 0x315   : > { %v13816_v29 = vadd.f32 %v6715_v28, %v6674_v40  ;;  %v6717_v32 = vpop.f32.mrb[21].mxu1  ;;  %v6678_v36 = vpop.f32.mrb[22].mxu0  ;;  %6979 = vmatpush1.bf16.msra.mxu0 %v11694_v24  ;;  %v11750_v24 = vld [vmem:[%s13067_s23 + $0x1aac] ss:$24 sps:$4 sm:$0xff]   ;;  %v11756_v40 = vld [vmem:[%s13067_s23 + $0x1adc] ss:$24 sps:$4 sm:$0xff]  }
 0x316   : > { %v13818_v34 = vadd.f32 %v6717_v32, %v6676_v31  ;;  %v6719_v37 = vpop.f32.mrb[22].mxu1  ;;  %7020 = vmatpush1.bf16.msra.mxu1 %v11697_v25  ;;  %v6679_v48 = vpop.f32.mrb[23].mxu0  ;;  %6980 = vmatprep.subr.bf16.mxu0 %v11702_v35  ;;  %v11753_v25 = vld [vmem:[%s13067_s23 + $0x1dac] ss:$24 sps:$4 sm:$0xff]   ;;  %v11748_v35 = vld [vmem:[%s13067_s23 + $0x1aa8] ss:$24 sps:$4 sm:$0xff]  }
 0x317   : > { %v6720_v42 = vpop.f32.mrb[23].mxu1  ;;  %7021 = vmatprep.subr.bf16.mxu1 %v11705_v26  ;;  %v11751_v26 = vld [vmem:[%s13067_s23 + $0x1da8] ss:$24 sps:$4 sm:$0xff]   ;;  %v11759_v28 = vld [vmem:[%s13067_s23 + $0x1ddc] ss:$24 sps:$4 sm:$0xff]  }
 0x318   : > { %v11754_v31 = vld [vmem:[%s13067_s23 + $0x1ad8] ss:$24 sps:$4 sm:$0xff]   ;;  %v11762_v36 = vld [vmem:[%s13067_s23 + $0x14] ss:$24 sps:$4 sm:$0xff]   ;;  %v11768_v48 = vld [vmem:[%s13067_s23 + $0x44] ss:$24 sps:$4 sm:$0xff]  }
 0x319   : > { %6981 = vmatpush1.bf16.msra.mxu0 %v11700_v45  ;;  %v11757_v32 = vld [vmem:[%s13067_s23 + $0x1dd8] ss:$24 sps:$4 sm:$0xff]   ;;  %v11765_v37 = vld [vmem:[%s13067_s23 + $0x314] ss:$24 sps:$4 sm:$0xff]   ;;  %v11771_v42 = vld [vmem:[%s13067_s23 + $0x344] ss:$24 sps:$4 sm:$0xff]  }
 0x31a   : > { %7022 = vmatpush1.bf16.msra.mxu1 %v11703_v39  ;;  %6982 = vmatprep.subr.bf16.mxu0 %v11708_v46  ;;  %v11760_v45 = vld [vmem:[%s13067_s23 + $0x10] ss:$24 sps:$4 sm:$0xff]   ;;  %v11766_v46 = vld [vmem:[%s13067_s23 + $0x40] ss:$24 sps:$4 sm:$0xff]  }
 0x31b   : > { %7023 = vmatprep.subr.bf16.mxu1 %v11711_v47  ;;  %v11763_v39 = vld [vmem:[%s13067_s23 + $0x310] ss:$24 sps:$4 sm:$0xff]   ;;  %v11769_v47 = vld [vmem:[%s13067_s23 + $0x340] ss:$24 sps:$4 sm:$0xff]  }
 0x31d   : > { %6983 = vmatpush1.bf16.msra.mxu0 %v11706_v52  ;;  %v11774_v52 = vld [vmem:[%s13067_s23 + $0x74] ss:$24 sps:$4 sm:$0xff]  }
 0x31e   : > { %7024 = vmatpush1.bf16.msra.mxu1 %v11709_v54  ;;  %6984 = vmatprep.subr.bf16.mxu0 %v11714_v57  ;;  %v11777_v54 = vld [vmem:[%s13067_s23 + $0x374] ss:$24 sps:$4 sm:$0xff]   ;;  %v11772_v57 = vld [vmem:[%s13067_s23 + $0x70] ss:$24 sps:$4 sm:$0xff]  }
 0x31f   : > { %7025 = vmatprep.subr.bf16.mxu1 %v11717_v58  ;;  %v11775_v58 = vld [vmem:[%s13067_s23 + $0x370] ss:$24 sps:$4 sm:$0xff]  }
 0x321   : > { %6985 = vmatpush1.bf16.msra.mxu0 %v11712_v59  ;;  %v11780_v59 = vld [vmem:[%s13067_s23 + $0xa4] ss:$24 sps:$4 sm:$0xff]  }
 0x322   : > { %7026 = vmatpush1.bf16.msra.mxu1 %v11715_v60  ;;  %6986 = vmatprep.subr.bf16.mxu0 %v11720_v61  ;;  %v11783_v60 = vld [vmem:[%s13067_s23 + $0x3a4] ss:$24 sps:$4 sm:$0xff]   ;;  %v11778_v61 = vld [vmem:[%s13067_s23 + $0xa0] ss:$24 sps:$4 sm:$0xff]  }
 0x323   : > { %7027 = vmatprep.subr.bf16.mxu1 %v11723_v62  ;;  %v11789_v62 = vld [vmem:[%s13067_s23 + $0x3d4] ss:$24 sps:$4 sm:$0xff]  }
 0x325   : > { %6987 = vmatpush1.bf16.msra.mxu0 %v11718_v63  ;;  %v11784_v63 = vld [vmem:[%s13067_s23 + $0xd0] ss:$24 sps:$4 sm:$0xff]  }
 0x326   : > { %7028 = vmatpush1.bf16.msra.mxu1 %v11721_v0  ;;  %6988 = vmatprep.subr.bf16.mxu0 %v11726_v7  ;;  %v11787_v0 = vld [vmem:[%s13067_s23 + $0x3d0] ss:$24 sps:$4 sm:$0xff]   ;;  %v11792_v7 = vld [vmem:[%s13067_s23 + $0x104] ss:$24 sps:$4 sm:$0xff]  }
 0x327   : > { %7029 = vmatprep.subr.bf16.mxu1 %v11729_v1  ;;  %v11795_v1 = vld [vmem:[%s13067_s23 + $0x404] ss:$24 sps:$4 sm:$0xff]  }
 0x329   : > { %6989 = vmatpush1.bf16.msra.mxu0 %v11724_v2  ;;  %v11790_v2 = vld [vmem:[%s13067_s23 + $0x100] ss:$24 sps:$4 sm:$0xff]  }
 0x32a   : > { %7030 = vmatpush1.bf16.msra.mxu1 %v11727_v15  ;;  %6990 = vmatprep.subr.bf16.mxu0 %v11732_v5  ;;  %v11793_v15 = vld [vmem:[%s13067_s23 + $0x400] ss:$24 sps:$4 sm:$0xff]   ;;  %v11798_v5 = vld [vmem:[%s13067_s23 + $0x134] ss:$24 sps:$4 sm:$0xff]  }
 0x32b   : > { %7031 = vmatprep.subr.bf16.mxu1 %v11735_v6  ;;  %v11801_v6 = vld [vmem:[%s13067_s23 + $0x434] ss:$24 sps:$4 sm:$0xff]  }
 0x32d   : > { %6991 = vmatpush1.bf16.msra.mxu0 %v11730_v8 }
 0x32e   : > { %7032 = vmatpush1.bf16.msra.mxu1 %v11733_v13  ;;  %6992 = vmatprep.subr.bf16.mxu0 %v11738_v23 }
 0x32f   : > { %7033 = vmatprep.subr.bf16.mxu1 %v11741_v14 }
 0x331   : > { %6993 = vmatpush1.bf16.msra.mxu0 %v11736_v27 }
 0x332   : > { %7034 = vmatpush1.bf16.msra.mxu1 %v11739_v16  ;;  %6994 = vmatprep.subr.bf16.mxu0 %v11744_v17 }
 0x333   : > { %7035 = vmatprep.subr.bf16.mxu1 %v11747_v18 }
 0x335   : > { %6995 = vmatpush1.bf16.msra.mxu0 %v11742_v19  ;;  %v11796_v19 = vld [vmem:[%s13067_s23 + $0x130] ss:$24 sps:$4 sm:$0xff]  }
 0x336   : > { %7036 = vmatpush1.bf16.msra.mxu1 %v11745_v20  ;;  %6996 = vmatprep.subr.bf16.mxu0 %v11750_v24  ;;  %v11799_v20 = vld [vmem:[%s13067_s23 + $0x430] ss:$24 sps:$4 sm:$0xff]  }
 0x337   : > { %7037 = vmatprep.subr.bf16.mxu1 %v11753_v25 }
 0x339   : > { %6997 = vmatpush1.bf16.msra.mxu0 %v11748_v35 }
 0x33a   : > { %7038 = vmatpush1.bf16.msra.mxu1 %v11751_v26  ;;  %6998 = vmatprep.subr.bf16.mxu0 %v11756_v40  ;;  %v11802_v40 = vld [vmem:[%s13067_s23 + $0x160] ss:$24 sps:$4 sm:$0xff]  }
 0x33b   : > { %7039 = vmatprep.subr.bf16.mxu1 %v11759_v28  ;;  %v11805_v28 = vld [vmem:[%s13067_s23 + $0x460] ss:$24 sps:$4 sm:$0xff]  }
 0x33d   : > { %6999 = vmatpush1.bf16.msra.mxu0 %v11754_v31  ;;  %v11810_v31 = vld [vmem:[%s13067_s23 + $0x194] ss:$24 sps:$4 sm:$0xff]  }
 0x33e   : > { %7040 = vmatpush1.bf16.msra.mxu1 %v11757_v32  ;;  %7050 = vmatprep.subr.bf16.mxu0 %v11762_v36  ;;  %v11813_v32 = vld [vmem:[%s13067_s23 + $0x494] ss:$24 sps:$4 sm:$0xff]   ;;  %v11808_v36 = vld [vmem:[%s13067_s23 + $0x190] ss:$24 sps:$4 sm:$0xff]  }
 0x33f   : > { %7091 = vmatprep.subr.bf16.mxu1 %v11765_v37  ;;  %v11811_v37 = vld [vmem:[%s13067_s23 + $0x490] ss:$24 sps:$4 sm:$0xff]  }
 0x340   : > { %7001 = vmatmul.mubr.bf16.vlgmr.msra.gmra.mrb[36].mxu0 %v13494_v55 }
 0x341   : > { %7042 = vmatmul.mubr.bf16.vlgmr.msra.gmra.mrb[36].mxu1 %v13496_v56  ;;  %7051 = vmatpush1.bf16.msra.mxu0 %v11760_v45  ;;  %v11816_v45 = vld [vmem:[%s13067_s23 + $0x1c4] ss:$24 sps:$4 sm:$0xff]  }
 0x342   : > { %7092 = vmatpush1.bf16.msra.mxu1 %v11763_v39  ;;  %7052 = vmatprep.subr.bf16.mxu0 %v11768_v48  ;;  %v11819_v39 = vld [vmem:[%s13067_s23 + $0x4c4] ss:$24 sps:$4 sm:$0xff]   ;;  %v11814_v48 = vld [vmem:[%s13067_s23 + $0x1c0] ss:$24 sps:$4 sm:$0xff]  }
 0x343   : > { %7093 = vmatprep.subr.bf16.mxu1 %v11771_v42  ;;  %7082 = vmatprep.mubr.bf16.mxu0 %v13141_v50  ;;  %v11781_v50 = vld [vmem:[%s13067_s23 + $0x3a0] ss:$24 sps:$4 sm:$0xff]  }
 0x344   : > { %7123 = vmatprep.mubr.bf16.mxu1 %v13145_v53  ;;  %v11786_v53 = vld [vmem:[%s13067_s23 + $0xd4] ss:$24 sps:$4 sm:$0xff]   ;;  %v11817_v42 = vld [vmem:[%s13067_s23 + $0x4c0] ss:$24 sps:$4 sm:$0xff]  }
 0x345   : > { %7053 = vmatpush1.bf16.msra.mxu0 %v11766_v46  ;;  %v11822_v46 = vld [vmem:[%s13067_s23 + $0x1f4] ss:$24 sps:$4 sm:$0xff]  }
 0x346   : > { %7094 = vmatpush1.bf16.msra.mxu1 %v11769_v47  ;;  %7054 = vmatprep.subr.bf16.mxu0 %v11774_v52  ;;  %v11825_v47 = vld [vmem:[%s13067_s23 + $0x4f4] ss:$24 sps:$4 sm:$0xff]   ;;  %v11820_v52 = vld [vmem:[%s13067_s23 + $0x1f0] ss:$24 sps:$4 sm:$0xff]  }
 0x347   : > { %7095 = vmatprep.subr.bf16.mxu1 %v11777_v54  ;;  %v11823_v54 = vld [vmem:[%s13067_s23 + $0x4f0] ss:$24 sps:$4 sm:$0xff]  }
 0x349   : > { %7055 = vmatpush1.bf16.msra.mxu0 %v11772_v57  ;;  %v11828_v57 = vld [vmem:[%s13067_s23 + $0x224] ss:$24 sps:$4 sm:$0xff]  }
 0x34a   : > { %7096 = vmatpush1.bf16.msra.mxu1 %v11775_v58  ;;  %7056 = vmatprep.subr.bf16.mxu0 %v11780_v59  ;;  %v11831_v58 = vld [vmem:[%s13067_s23 + $0x524] ss:$24 sps:$4 sm:$0xff]   ;;  %v11826_v59 = vld [vmem:[%s13067_s23 + $0x220] ss:$24 sps:$4 sm:$0xff]  }
 0x34b   : > { %7097 = vmatprep.subr.bf16.mxu1 %v11783_v60  ;;  %v11829_v60 = vld [vmem:[%s13067_s23 + $0x520] ss:$24 sps:$4 sm:$0xff]  }
 0x34d   : > { %7057 = vmatpush1.bf16.msra.mxu0 %v11778_v61  ;;  %v11834_v61 = vld [vmem:[%s13067_s23 + $0x254] ss:$24 sps:$4 sm:$0xff]  }
 0x34e   : > { %7098 = vmatpush1.bf16.msra.mxu1 %v11781_v50  ;;  %7058 = vmatprep.subr.bf16.mxu0 %v11786_v53  ;;  %v11837_v50 = vld [vmem:[%s13067_s23 + $0x554] ss:$24 sps:$4 sm:$0xff]   ;;  %v11832_v53 = vld [vmem:[%s13067_s23 + $0x250] ss:$24 sps:$4 sm:$0xff]  }
 0x34f   : > { %7099 = vmatprep.subr.bf16.mxu1 %v11789_v62  ;;  %v11835_v62 = vld [vmem:[%s13067_s23 + $0x550] ss:$24 sps:$4 sm:$0xff]  }
 0x351   : > { %7059 = vmatpush1.bf16.msra.mxu0 %v11784_v63  ;;  %v11840_v63 = vld [vmem:[%s13067_s23 + $0x284] ss:$24 sps:$4 sm:$0xff]  }
 0x352   : > { %7100 = vmatpush1.bf16.msra.mxu1 %v11787_v0  ;;  %7060 = vmatprep.subr.bf16.mxu0 %v11792_v7  ;;  %v11843_v0 = vld [vmem:[%s13067_s23 + $0x584] ss:$24 sps:$4 sm:$0xff]   ;;  %v11838_v7 = vld [vmem:[%s13067_s23 + $0x280] ss:$24 sps:$4 sm:$0xff]  }
 0x353   : > { %7101 = vmatprep.subr.bf16.mxu1 %v11795_v1  ;;  %v6756_v8 = vpop.f32.mrb[24].mxu0  ;;  %v11841_v1 = vld [vmem:[%s13067_s23 + $0x580] ss:$24 sps:$4 sm:$0xff]  }
 0x354   : > { %v6797_v13 = vpop.f32.mrb[24].mxu1  ;;  %v6757_v23 = vadd.f32 %v6756_v8, %v13816_v29  ;;  %v6758_v14 = vpop.f32.mrb[25].mxu0  ;;  %v11804_v29 = vld [vmem:[%s13067_s23 + $0x164] ss:$24 sps:$4 sm:$0xff]  }
 0x355   : > { %v6799_v27 = vpop.f32.mrb[25].mxu1  ;;  %v6759_v16 = vadd.f32 %v6758_v14, %v13818_v34  ;;  %v6760_v17 = vpop.f32.mrb[26].mxu0  ;;  %7061 = vmatpush1.bf16.msra.mxu0 %v11790_v2  ;;  %v11807_v34 = vld [vmem:[%s13067_s23 + $0x464] ss:$24 sps:$4 sm:$0xff]   ;;  %v11846_v2 = vld [vmem:[%s13067_s23 + $0x2b4] ss:$24 sps:$4 sm:$0xff]  }
 0x356   : > { %v6801_v18 = vpop.f32.mrb[26].mxu1  ;;  %7102 = vmatpush1.bf16.msra.mxu1 %v11793_v15  ;;  %v13892_v24 = vadd.f32 %v6797_v13, %v6757_v23  ;;  %v6761_v25 = vpop.f32.mrb[27].mxu0  ;;  %7062 = vmatprep.subr.bf16.mxu0 %v11798_v5  ;;  %v11849_v15 = vld [vmem:[%s13067_s23 + $0x5b4] ss:$24 sps:$4 sm:$0xff]   ;;  %v11844_v5 = vld [vmem:[%s13067_s23 + $0x2b0] ss:$24 sps:$4 sm:$0xff]  }
 0x357   : > { %v6802_v35 = vpop.f32.mrb[27].mxu1  ;;  %7103 = vmatprep.subr.bf16.mxu1 %v11801_v6  ;;  %v13896_v26 = vadd.f32 %v6799_v27, %v6759_v16  ;;  %v11847_v6 = vld [vmem:[%s13067_s23 + $0x5b0] ss:$24 sps:$4 sm:$0xff]   ;;  %v11852_v8 = vld [vmem:[%s13067_s23 + $0x2e4] ss:$24 sps:$4 sm:$0xff]  }
 0x358   : > { %v11855_v13 = vld [vmem:[%s13067_s23 + $0x5e4] ss:$24 sps:$4 sm:$0xff]   ;;  %v11850_v23 = vld [vmem:[%s13067_s23 + $0x2e0] ss:$24 sps:$4 sm:$0xff]   ;;  %v11858_v27 = vld [vmem:[%s13067_s23 + $0x614] ss:$24 sps:$4 sm:$0xff]  }
 0x359   : > { %7063 = vmatpush1.bf16.msra.mxu0 %v11796_v19  ;;  %v11853_v14 = vld [vmem:[%s13067_s23 + $0x5e0] ss:$24 sps:$4 sm:$0xff]   ;;  %v11861_v16 = vld [vmem:[%s13067_s23 + $0x914] ss:$24 sps:$4 sm:$0xff]   ;;  %v11856_v17 = vld [vmem:[%s13067_s23 + $0x610] ss:$24 sps:$4 sm:$0xff]  }
 0x35a   : > { %7104 = vmatpush1.bf16.msra.mxu1 %v11799_v20  ;;  %7064 = vmatprep.subr.bf16.mxu0 %v11804_v29  ;;  %v11859_v18 = vld [vmem:[%s13067_s23 + $0x910] ss:$24 sps:$4 sm:$0xff]   ;;  %v11864_v19 = vld [vmem:[%s13067_s23 + $0x644] ss:$24 sps:$4 sm:$0xff]   ;;  %v11862_v25 = vld [vmem:[%s13067_s23 + $0x640] ss:$24 sps:$4 sm:$0xff]  }
 0x35b   : > { %7105 = vmatprep.subr.bf16.mxu1 %v11807_v34  ;;  %v11867_v20 = vld [vmem:[%s13067_s23 + $0x944] ss:$24 sps:$4 sm:$0xff]   ;;  %v11865_v35 = vld [vmem:[%s13067_s23 + $0x940] ss:$24 sps:$4 sm:$0xff]   ;;  %v11870_v29 = vld [vmem:[%s13067_s23 + $0x674] ss:$24 sps:$4 sm:$0xff]  }
 0x35c   : > { %v11873_v34 = vld [vmem:[%s13067_s23 + $0x974] ss:$24 sps:$4 sm:$0xff]  }
 0x35d   : > { %7065 = vmatpush1.bf16.msra.mxu0 %v11802_v40  ;;  %v11876_v40 = vld [vmem:[%s13067_s23 + $0x6a4] ss:$24 sps:$4 sm:$0xff]  }
 0x35e   : > { %7106 = vmatpush1.bf16.msra.mxu1 %v11805_v28  ;;  %7066 = vmatprep.subr.bf16.mxu0 %v11810_v31  ;;  %v11879_v28 = vld [vmem:[%s13067_s23 + $0x9a4] ss:$24 sps:$4 sm:$0xff]   ;;  %v11874_v31 = vld [vmem:[%s13067_s23 + $0x6a0] ss:$24 sps:$4 sm:$0xff]  }
 0x35f   : > { %7107 = vmatprep.subr.bf16.mxu1 %v11813_v32  ;;  %v11885_v32 = vld [vmem:[%s13067_s23 + $0x9d4] ss:$24 sps:$4 sm:$0xff]  }
 0x361   : > { %7067 = vmatpush1.bf16.msra.mxu0 %v11808_v36  ;;  %v11880_v36 = vld [vmem:[%s13067_s23 + $0x6d0] ss:$24 sps:$4 sm:$0xff]  }
 0x362   : > { %7108 = vmatpush1.bf16.msra.mxu1 %v11811_v37  ;;  %7068 = vmatprep.subr.bf16.mxu0 %v11816_v45  ;;  %v11883_v37 = vld [vmem:[%s13067_s23 + $0x9d0] ss:$24 sps:$4 sm:$0xff]   ;;  %v11888_v45 = vld [vmem:[%s13067_s23 + $0x704] ss:$24 sps:$4 sm:$0xff]  }
 0x363   : > { %7109 = vmatprep.subr.bf16.mxu1 %v11819_v39  ;;  %v11891_v39 = vld [vmem:[%s13067_s23 + $0xa04] ss:$24 sps:$4 sm:$0xff]  }
 0x365   : > { %7069 = vmatpush1.bf16.msra.mxu0 %v11814_v48  ;;  %v11886_v48 = vld [vmem:[%s13067_s23 + $0x700] ss:$24 sps:$4 sm:$0xff]  }
 0x366   : > { %7110 = vmatpush1.bf16.msra.mxu1 %v11817_v42  ;;  %7070 = vmatprep.subr.bf16.mxu0 %v11822_v46  ;;  %v11889_v42 = vld [vmem:[%s13067_s23 + $0xa00] ss:$24 sps:$4 sm:$0xff]   ;;  %v11894_v46 = vld [vmem:[%s13067_s23 + $0x734] ss:$24 sps:$4 sm:$0xff]  }
 0x367   : > { %7111 = vmatprep.subr.bf16.mxu1 %v11825_v47  ;;  %v11897_v47 = vld [vmem:[%s13067_s23 + $0xa34] ss:$24 sps:$4 sm:$0xff]  }
 0x369   : > { %7071 = vmatpush1.bf16.msra.mxu0 %v11820_v52 }
 0x36a   : > { %7112 = vmatpush1.bf16.msra.mxu1 %v11823_v54  ;;  %7072 = vmatprep.subr.bf16.mxu0 %v11828_v57 }
 0x36b   : > { %7113 = vmatprep.subr.bf16.mxu1 %v11831_v58 }
 0x36d   : > { %7073 = vmatpush1.bf16.msra.mxu0 %v11826_v59 }
 0x36e   : > { %7114 = vmatpush1.bf16.msra.mxu1 %v11829_v60  ;;  %7074 = vmatprep.subr.bf16.mxu0 %v11834_v61 }
 0x36f   : > { %7115 = vmatprep.subr.bf16.mxu1 %v11837_v50 }
 0x371   : > { %7075 = vmatpush1.bf16.msra.mxu0 %v11832_v53  ;;  %v11892_v53 = vld [vmem:[%s13067_s23 + $0x730] ss:$24 sps:$4 sm:$0xff]  }
 0x372   : > { %7116 = vmatpush1.bf16.msra.mxu1 %v11835_v62  ;;  %7076 = vmatprep.subr.bf16.mxu0 %v11840_v63  ;;  %v11895_v62 = vld [vmem:[%s13067_s23 + $0xa30] ss:$24 sps:$4 sm:$0xff]  }
 0x373   : > { %7117 = vmatprep.subr.bf16.mxu1 %v11843_v0 }
 0x375   : > { %7077 = vmatpush1.bf16.msra.mxu0 %v11838_v7 }
 0x376   : > { %7118 = vmatpush1.bf16.msra.mxu1 %v11841_v1  ;;  %7078 = vmatprep.subr.bf16.mxu0 %v11846_v2  ;;  %v11898_v2 = vld [vmem:[%s13067_s23 + $0x760] ss:$24 sps:$4 sm:$0xff]  }
 0x377   : > { %7119 = vmatprep.subr.bf16.mxu1 %v11849_v15  ;;  %v11901_v15 = vld [vmem:[%s13067_s23 + $0xa60] ss:$24 sps:$4 sm:$0xff]  }
 0x379   : > { %7079 = vmatpush1.bf16.msra.mxu0 %v11844_v5  ;;  %v11906_v5 = vld [vmem:[%s13067_s23 + $0x794] ss:$24 sps:$4 sm:$0xff]  }
 0x37a   : > { %7120 = vmatpush1.bf16.msra.mxu1 %v11847_v6  ;;  %7080 = vmatprep.subr.bf16.mxu0 %v11852_v8  ;;  %v11909_v6 = vld [vmem:[%s13067_s23 + $0xa94] ss:$24 sps:$4 sm:$0xff]   ;;  %v11904_v8 = vld [vmem:[%s13067_s23 + $0x790] ss:$24 sps:$4 sm:$0xff]  }
 0x37b   : > { %7121 = vmatprep.subr.bf16.mxu1 %v11855_v13  ;;  %v11907_v13 = vld [vmem:[%s13067_s23 + $0xa90] ss:$24 sps:$4 sm:$0xff]  }
 0x37d   : > { %7081 = vmatpush1.bf16.msra.mxu0 %v11850_v23  ;;  %v11912_v23 = vld [vmem:[%s13067_s23 + $0x7c4] ss:$24 sps:$4 sm:$0xff]  }
 0x37e   : > { %7122 = vmatpush1.bf16.msra.mxu1 %v11853_v14  ;;  %7132 = vmatprep.subr.bf16.mxu0 %v11858_v27  ;;  %v11915_v14 = vld [vmem:[%s13067_s23 + $0xac4] ss:$24 sps:$4 sm:$0xff]   ;;  %v11910_v27 = vld [vmem:[%s13067_s23 + $0x7c0] ss:$24 sps:$4 sm:$0xff]  }
 0x37f   : > { %7173 = vmatprep.subr.bf16.mxu1 %v11861_v16  ;;  %v11913_v16 = vld [vmem:[%s13067_s23 + $0xac0] ss:$24 sps:$4 sm:$0xff]  }
 0x380   : > { %7083 = vmatmul.mubr.bf16.vlgmr.msra.gmra.mrb[40].mxu0 %v13168_v9  ;;  %v11868_v9 = vld [vmem:[%s13067_s23 + $0x670] ss:$24 sps:$4 sm:$0xff]  }
 0x381   : > { %7124 = vmatmul.mubr.bf16.vlgmr.msra.gmra.mrb[40].mxu1 %v13170_v10  ;;  %7133 = vmatpush1.bf16.msra.mxu0 %v11856_v17  ;;  %v11871_v10 = vld [vmem:[%s13067_s23 + $0x970] ss:$24 sps:$4 sm:$0xff]   ;;  %v11918_v17 = vld [vmem:[%s13067_s23 + $0x7f4] ss:$24 sps:$4 sm:$0xff]  }
 0x382   : > { %7174 = vmatpush1.bf16.msra.mxu1 %v11859_v18  ;;  %7134 = vmatprep.subr.bf16.mxu0 %v11864_v19  ;;  %v11921_v18 = vld [vmem:[%s13067_s23 + $0xaf4] ss:$24 sps:$4 sm:$0xff]   ;;  %v11916_v19 = vld [vmem:[%s13067_s23 + $0x7f0] ss:$24 sps:$4 sm:$0xff]  }
 0x383   : > { %7175 = vmatprep.subr.bf16.mxu1 %v11867_v20  ;;  %7164 = vmatprep.mubr.bf16.mxu0 %v13201_v38  ;;  %v11877_v38 = vld [vmem:[%s13067_s23 + $0x9a0] ss:$24 sps:$4 sm:$0xff]   ;;  %v11919_v20 = vld [vmem:[%s13067_s23 + $0xaf0] ss:$24 sps:$4 sm:$0xff]  }
 0x384   : > { %7205 = vmatprep.mubr.bf16.mxu1 %v13205_v41  ;;  %v11882_v41 = vld [vmem:[%s13067_s23 + $0x6d4] ss:$24 sps:$4 sm:$0xff]  }
 0x385   : > { %7135 = vmatpush1.bf16.msra.mxu0 %v11862_v25  ;;  %v11924_v25 = vld [vmem:[%s13067_s23 + $0x824] ss:$24 sps:$4 sm:$0xff]  }
 0x386   : > { %7176 = vmatpush1.bf16.msra.mxu1 %v11865_v35  ;;  %7136 = vmatprep.subr.bf16.mxu0 %v11870_v29  ;;  %v11927_v35 = vld [vmem:[%s13067_s23 + $0xb24] ss:$24 sps:$4 sm:$0xff]   ;;  %v11922_v29 = vld [vmem:[%s13067_s23 + $0x820] ss:$24 sps:$4 sm:$0xff]  }
 0x387   : > { %7177 = vmatprep.subr.bf16.mxu1 %v11873_v34  ;;  %v11925_v34 = vld [vmem:[%s13067_s23 + $0xb20] ss:$24 sps:$4 sm:$0xff]  }
 0x389   : > { %7137 = vmatpush1.bf16.msra.mxu0 %v11868_v9  ;;  %v11930_v9 = vld [vmem:[%s13067_s23 + $0x854] ss:$24 sps:$4 sm:$0xff]  }
 0x38a   : > { %7178 = vmatpush1.bf16.msra.mxu1 %v11871_v10  ;;  %7138 = vmatprep.subr.bf16.mxu0 %v11876_v40  ;;  %v11933_v10 = vld [vmem:[%s13067_s23 + $0xb54] ss:$24 sps:$4 sm:$0xff]   ;;  %v11928_v40 = vld [vmem:[%s13067_s23 + $0x850] ss:$24 sps:$4 sm:$0xff]  }
 0x38b   : > { %7179 = vmatprep.subr.bf16.mxu1 %v11879_v28  ;;  %v11931_v28 = vld [vmem:[%s13067_s23 + $0xb50] ss:$24 sps:$4 sm:$0xff]  }
 0x38d   : > { %7139 = vmatpush1.bf16.msra.mxu0 %v11874_v31  ;;  %v11936_v31 = vld [vmem:[%s13067_s23 + $0x884] ss:$24 sps:$4 sm:$0xff]  }
 0x38e   : > { %7180 = vmatpush1.bf16.msra.mxu1 %v11877_v38  ;;  %7140 = vmatprep.subr.bf16.mxu0 %v11882_v41  ;;  %v11939_v38 = vld [vmem:[%s13067_s23 + $0xb84] ss:$24 sps:$4 sm:$0xff]   ;;  %v11934_v41 = vld [vmem:[%s13067_s23 + $0x880] ss:$24 sps:$4 sm:$0xff]  }
 0x38f   : > { %7181 = vmatprep.subr.bf16.mxu1 %v11885_v32  ;;  %v11937_v32 = vld [vmem:[%s13067_s23 + $0xb80] ss:$24 sps:$4 sm:$0xff]  }
 0x391   : > { %7141 = vmatpush1.bf16.msra.mxu0 %v11880_v36  ;;  %v11942_v36 = vld [vmem:[%s13067_s23 + $0x8b4] ss:$24 sps:$4 sm:$0xff]  }
 0x392   : > { %7182 = vmatpush1.bf16.msra.mxu1 %v11883_v37  ;;  %7142 = vmatprep.subr.bf16.mxu0 %v11888_v45  ;;  %v11945_v37 = vld [vmem:[%s13067_s23 + $0xbb4] ss:$24 sps:$4 sm:$0xff]   ;;  %v11940_v45 = vld [vmem:[%s13067_s23 + $0x8b0] ss:$24 sps:$4 sm:$0xff]  }
 0x393   : > { %7183 = vmatprep.subr.bf16.mxu1 %v11891_v39  ;;  %v6838_v52 = vpop.f32.mrb[28].mxu0  ;;  %v11943_v39 = vld [vmem:[%s13067_s23 + $0xbb0] ss:$24 sps:$4 sm:$0xff]  }
 0x394   : > { %v6879_v54 = vpop.f32.mrb[28].mxu1  ;;  %v6839_v57 = vadd.f32 %v6838_v52, %v13892_v24  ;;  %v6840_v58 = vpop.f32.mrb[29].mxu0  ;;  %v11900_v24 = vld [vmem:[%s13067_s23 + $0x764] ss:$24 sps:$4 sm:$0xff]   ;;  %v11954_v52 = vld [vmem:[%s13067_s23 + $0xc14] ss:$24 sps:$4 sm:$0xff]  }
 0x395   : > { %v6881_v59 = vpop.f32.mrb[29].mxu1  ;;  %v6841_v60 = vadd.f32 %v6840_v58, %v13896_v26  ;;  %v6842_v61 = vpop.f32.mrb[30].mxu0  ;;  %7143 = vmatpush1.bf16.msra.mxu0 %v11886_v48  ;;  %v11903_v26 = vld [vmem:[%s13067_s23 + $0xa64] ss:$24 sps:$4 sm:$0xff]   ;;  %v11955_v58 = vld [vmem:[%s13067_s23 + $0xf10] ss:$24 sps:$4 sm:$0xff]  }
 0x396   : > { %v6883_v50 = vpop.f32.mrb[30].mxu1  ;;  %7184 = vmatpush1.bf16.msra.mxu1 %v11889_v42  ;;  %v13966_v63 = vadd.f32 %v6879_v54, %v6839_v57  ;;  %v6843_v0 = vpop.f32.mrb[31].mxu0  ;;  %7144 = vmatprep.subr.bf16.mxu0 %v11894_v46  ;;  %v11948_v48 = vld [vmem:[%s13067_s23 + $0x8e4] ss:$24 sps:$4 sm:$0xff]   ;;  %v11946_v46 = vld [vmem:[%s13067_s23 + $0x8e0] ss:$24 sps:$4 sm:$0xff]  }
 0x397   : > { %v6884_v7 = vpop.f32.mrb[31].mxu1  ;;  %7185 = vmatprep.subr.bf16.mxu1 %v11897_v47  ;;  %v13970_v1 = vadd.f32 %v6881_v59, %v6841_v60  ;;  %v11951_v42 = vld [vmem:[%s13067_s23 + $0xbe4] ss:$24 sps:$4 sm:$0xff]   ;;  %v11949_v47 = vld [vmem:[%s13067_s23 + $0xbe0] ss:$24 sps:$4 sm:$0xff]  }
 0x398   : > { %v11957_v54 = vld [vmem:[%s13067_s23 + $0xf14] ss:$24 sps:$4 sm:$0xff]   ;;  %v11952_v57 = vld [vmem:[%s13067_s23 + $0xc10] ss:$24 sps:$4 sm:$0xff]   ;;  %v11960_v59 = vld [vmem:[%s13067_s23 + $0xc44] ss:$24 sps:$4 sm:$0xff]  }
 0x399   : > { %7145 = vmatpush1.bf16.msra.mxu0 %v11892_v53  ;;  %v11963_v60 = vld [vmem:[%s13067_s23 + $0xf44] ss:$24 sps:$4 sm:$0xff]   ;;  %v11958_v61 = vld [vmem:[%s13067_s23 + $0xc40] ss:$24 sps:$4 sm:$0xff]   ;;  %v11966_v53 = vld [vmem:[%s13067_s23 + $0xc74] ss:$24 sps:$4 sm:$0xff]  }
 0x39a   : > { %7186 = vmatpush1.bf16.msra.mxu1 %v11895_v62  ;;  %7146 = vmatprep.subr.bf16.mxu0 %v11900_v24  ;;  %v11961_v50 = vld [vmem:[%s13067_s23 + $0xf40] ss:$24 sps:$4 sm:$0xff]   ;;  %v11969_v62 = vld [vmem:[%s13067_s23 + $0xf74] ss:$24 sps:$4 sm:$0xff]   ;;  %v11972_v0 = vld [vmem:[%s13067_s23 + $0xca4] ss:$24 sps:$4 sm:$0xff]  }
 0x39b   : > { %7187 = vmatprep.subr.bf16.mxu1 %v11903_v26  ;;  %v11975_v7 = vld [vmem:[%s13067_s23 + $0xfa4] ss:$24 sps:$4 sm:$0xff]   ;;  %v11970_v24 = vld [vmem:[%s13067_s23 + $0xca0] ss:$24 sps:$4 sm:$0xff]   ;;  %v11981_v26 = vld [vmem:[%s13067_s23 + $0xfd4] ss:$24 sps:$4 sm:$0xff]  }
 0x39d   : > { %7147 = vmatpush1.bf16.msra.mxu0 %v11898_v2  ;;  %v11976_v2 = vld [vmem:[%s13067_s23 + $0xcd0] ss:$24 sps:$4 sm:$0xff]  }
 0x39e   : > { %7188 = vmatpush1.bf16.msra.mxu1 %v11901_v15  ;;  %7148 = vmatprep.subr.bf16.mxu0 %v11906_v5  ;;  %v11979_v15 = vld [vmem:[%s13067_s23 + $0xfd0] ss:$24 sps:$4 sm:$0xff]   ;;  %v11984_v5 = vld [vmem:[%s13067_s23 + $0xd04] ss:$24 sps:$4 sm:$0xff]  }
 0x39f   : > { %7189 = vmatprep.subr.bf16.mxu1 %v11909_v6  ;;  %v11987_v6 = vld [vmem:[%s13067_s23 + $0x1004] ss:$24 sps:$4 sm:$0xff]  }
 0x3a1   : > { %7149 = vmatpush1.bf16.msra.mxu0 %v11904_v8  ;;  %v11982_v8 = vld [vmem:[%s13067_s23 + $0xd00] ss:$24 sps:$4 sm:$0xff]  }
 0x3a2   : > { %7190 = vmatpush1.bf16.msra.mxu1 %v11907_v13  ;;  %7150 = vmatprep.subr.bf16.mxu0 %v11912_v23  ;;  %v11985_v13 = vld [vmem:[%s13067_s23 + $0x1000] ss:$24 sps:$4 sm:$0xff]   ;;  %v11990_v23 = vld [vmem:[%s13067_s23 + $0xd34] ss:$24 sps:$4 sm:$0xff]  }
 0x3a3   : > { %7191 = vmatprep.subr.bf16.mxu1 %v11915_v14  ;;  %v11993_v14 = vld [vmem:[%s13067_s23 + $0x1034] ss:$24 sps:$4 sm:$0xff]  }
 0x3a5   : > { %7151 = vmatpush1.bf16.msra.mxu0 %v11910_v27 }
 0x3a6   : > { %7192 = vmatpush1.bf16.msra.mxu1 %v11913_v16  ;;  %7152 = vmatprep.subr.bf16.mxu0 %v11918_v17 }
 0x3a7   : > { %7193 = vmatprep.subr.bf16.mxu1 %v11921_v18 }
 0x3a9   : > { %7153 = vmatpush1.bf16.msra.mxu0 %v11916_v19 }
 0x3aa   : > { %7194 = vmatpush1.bf16.msra.mxu1 %v11919_v20  ;;  %7154 = vmatprep.subr.bf16.mxu0 %v11924_v25 }
 0x3ab   : > { %7195 = vmatprep.subr.bf16.mxu1 %v11927_v35 }
 0x3ad   : > { %7155 = vmatpush1.bf16.msra.mxu0 %v11922_v29  ;;  %v11988_v29 = vld [vmem:[%s13067_s23 + $0xd30] ss:$24 sps:$4 sm:$0xff]  }
 0x3ae   : > { %7196 = vmatpush1.bf16.msra.mxu1 %v11925_v34  ;;  %7156 = vmatprep.subr.bf16.mxu0 %v11930_v9  ;;  %v11991_v34 = vld [vmem:[%s13067_s23 + $0x1030] ss:$24 sps:$4 sm:$0xff]  }
 0x3af   : > { %7197 = vmatprep.subr.bf16.mxu1 %v11933_v10 }
 0x3b1   : > { %7157 = vmatpush1.bf16.msra.mxu0 %v11928_v40 }
 0x3b2   : > { %7198 = vmatpush1.bf16.msra.mxu1 %v11931_v28  ;;  %7158 = vmatprep.subr.bf16.mxu0 %v11936_v31  ;;  %v11994_v31 = vld [vmem:[%s13067_s23 + $0xd60] ss:$24 sps:$4 sm:$0xff]  }
 0x3b3   : > { %7199 = vmatprep.subr.bf16.mxu1 %v11939_v38  ;;  %v11997_v38 = vld [vmem:[%s13067_s23 + $0x1060] ss:$24 sps:$4 sm:$0xff]  }
 0x3b5   : > { %7159 = vmatpush1.bf16.msra.mxu0 %v11934_v41  ;;  %v12002_v41 = vld [vmem:[%s13067_s23 + $0xd94] ss:$24 sps:$4 sm:$0xff]  }
 0x3b6   : > { %7200 = vmatpush1.bf16.msra.mxu1 %v11937_v32  ;;  %7160 = vmatprep.subr.bf16.mxu0 %v11942_v36  ;;  %v12005_v32 = vld [vmem:[%s13067_s23 + $0x1094] ss:$24 sps:$4 sm:$0xff]   ;;  %v12000_v36 = vld [vmem:[%s13067_s23 + $0xd90] ss:$24 sps:$4 sm:$0xff]  }
 0x3b7   : > { %7201 = vmatprep.subr.bf16.mxu1 %v11945_v37  ;;  %v12003_v37 = vld [vmem:[%s13067_s23 + $0x1090] ss:$24 sps:$4 sm:$0xff]  }
 0x3b9   : > { %7161 = vmatpush1.bf16.msra.mxu0 %v11940_v45  ;;  %v12008_v45 = vld [vmem:[%s13067_s23 + $0xdc4] ss:$24 sps:$4 sm:$0xff]  }
 0x3ba   : > { %7202 = vmatpush1.bf16.msra.mxu1 %v11943_v39  ;;  %7162 = vmatprep.subr.bf16.mxu0 %v11948_v48  ;;  %v12011_v39 = vld [vmem:[%s13067_s23 + $0x10c4] ss:$24 sps:$4 sm:$0xff]   ;;  %v12006_v48 = vld [vmem:[%s13067_s23 + $0xdc0] ss:$24 sps:$4 sm:$0xff]  }
 0x3bb   : > { %7203 = vmatprep.subr.bf16.mxu1 %v11951_v42  ;;  %v12009_v42 = vld [vmem:[%s13067_s23 + $0x10c0] ss:$24 sps:$4 sm:$0xff]  }
 0x3bd   : > { %7163 = vmatpush1.bf16.msra.mxu0 %v11946_v46  ;;  %v12014_v46 = vld [vmem:[%s13067_s23 + $0xdf4] ss:$24 sps:$4 sm:$0xff]  }
 0x3be   : > { %7204 = vmatpush1.bf16.msra.mxu1 %v11949_v47  ;;  %7214 = vmatprep.subr.bf16.mxu0 %v11954_v52  ;;  %v12017_v47 = vld [vmem:[%s13067_s23 + $0x10f4] ss:$24 sps:$4 sm:$0xff]   ;;  %v12012_v52 = vld [vmem:[%s13067_s23 + $0xdf0] ss:$24 sps:$4 sm:$0xff]  }
 0x3bf   : > { %7255 = vmatprep.subr.bf16.mxu1 %v11957_v54  ;;  %v12015_v54 = vld [vmem:[%s13067_s23 + $0x10f0] ss:$24 sps:$4 sm:$0xff]  }
 0x3c0   : > { %7165 = vmatmul.mubr.bf16.vlgmr.msra.gmra.mrb[44].mxu0 %v13248_v21  ;;  %v11964_v21 = vld [vmem:[%s13067_s23 + $0xc70] ss:$24 sps:$4 sm:$0xff]  }
 0x3c1   : > { %7206 = vmatmul.mubr.bf16.vlgmr.msra.gmra.mrb[44].mxu1 %v13250_v22  ;;  %7215 = vmatpush1.bf16.msra.mxu0 %v11952_v57  ;;  %v11967_v22 = vld [vmem:[%s13067_s23 + $0xf70] ss:$24 sps:$4 sm:$0xff]   ;;  %v12020_v57 = vld [vmem:[%s13067_s23 + $0xe24] ss:$24 sps:$4 sm:$0xff]  }
 0x3c2   : > { %7256 = vmatpush1.bf16.msra.mxu1 %v11955_v58  ;;  %7216 = vmatprep.subr.bf16.mxu0 %v11960_v59  ;;  %v12023_v58 = vld [vmem:[%s13067_s23 + $0x1124] ss:$24 sps:$4 sm:$0xff]   ;;  %v12018_v59 = vld [vmem:[%s13067_s23 + $0xe20] ss:$24 sps:$4 sm:$0xff]  }
 0x3c3   : > { %7257 = vmatprep.subr.bf16.mxu1 %v11963_v60  ;;  %7246 = vmatprep.mubr.bf16.mxu0 %v13261_v30  ;;  %v11973_v30 = vld [vmem:[%s13067_s23 + $0xfa0] ss:$24 sps:$4 sm:$0xff]  }
 0x3c4   : > { %7287 = vmatprep.mubr.bf16.mxu1 %v13265_v33  ;;  %v11978_v33 = vld [vmem:[%s13067_s23 + $0xcd4] ss:$24 sps:$4 sm:$0xff]   ;;  %v12021_v60 = vld [vmem:[%s13067_s23 + $0x1120] ss:$24 sps:$4 sm:$0xff]  }
 0x3c5   : > { %7217 = vmatpush1.bf16.msra.mxu0 %v11958_v61  ;;  %v12026_v61 = vld [vmem:[%s13067_s23 + $0xe54] ss:$24 sps:$4 sm:$0xff]  }
 0x3c6   : > { %7258 = vmatpush1.bf16.msra.mxu1 %v11961_v50  ;;  %7218 = vmatprep.subr.bf16.mxu0 %v11966_v53  ;;  %v12029_v50 = vld [vmem:[%s13067_s23 + $0x1154] ss:$24 sps:$4 sm:$0xff]   ;;  %v12024_v53 = vld [vmem:[%s13067_s23 + $0xe50] ss:$24 sps:$4 sm:$0xff]  }
 0x3c7   : > { %7259 = vmatprep.subr.bf16.mxu1 %v11969_v62  ;;  %v12027_v62 = vld [vmem:[%s13067_s23 + $0x1150] ss:$24 sps:$4 sm:$0xff]  }
 0x3c9   : > { %7219 = vmatpush1.bf16.msra.mxu0 %v11964_v21  ;;  %v12032_v21 = vld [vmem:[%s13067_s23 + $0xe84] ss:$24 sps:$4 sm:$0xff]  }
 0x3ca   : > { %7260 = vmatpush1.bf16.msra.mxu1 %v11967_v22  ;;  %7220 = vmatprep.subr.bf16.mxu0 %v11972_v0  ;;  %v12035_v22 = vld [vmem:[%s13067_s23 + $0x1184] ss:$24 sps:$4 sm:$0xff]   ;;  %v12030_v0 = vld [vmem:[%s13067_s23 + $0xe80] ss:$24 sps:$4 sm:$0xff]  }
 0x3cb   : > { %7261 = vmatprep.subr.bf16.mxu1 %v11975_v7  ;;  %v12033_v7 = vld [vmem:[%s13067_s23 + $0x1180] ss:$24 sps:$4 sm:$0xff]  }
 0x3cd   : > { %7221 = vmatpush1.bf16.msra.mxu0 %v11970_v24  ;;  %v12038_v24 = vld [vmem:[%s13067_s23 + $0xeb4] ss:$24 sps:$4 sm:$0xff]  }
 0x3ce   : > { %7262 = vmatpush1.bf16.msra.mxu1 %v11973_v30  ;;  %7222 = vmatprep.subr.bf16.mxu0 %v11978_v33  ;;  %v12041_v30 = vld [vmem:[%s13067_s23 + $0x11b4] ss:$24 sps:$4 sm:$0xff]   ;;  %v12036_v33 = vld [vmem:[%s13067_s23 + $0xeb0] ss:$24 sps:$4 sm:$0xff]  }
 0x3cf   : > { %7263 = vmatprep.subr.bf16.mxu1 %v11981_v26  ;;  %v12039_v26 = vld [vmem:[%s13067_s23 + $0x11b0] ss:$24 sps:$4 sm:$0xff]  }
 0x3d1   : > { %7223 = vmatpush1.bf16.msra.mxu0 %v11976_v2  ;;  %v12044_v2 = vld [vmem:[%s13067_s23 + $0xee4] ss:$24 sps:$4 sm:$0xff]  }
 0x3d2   : > { %7264 = vmatpush1.bf16.msra.mxu1 %v11979_v15  ;;  %7224 = vmatprep.subr.bf16.mxu0 %v11984_v5  ;;  %v12047_v15 = vld [vmem:[%s13067_s23 + $0x11e4] ss:$24 sps:$4 sm:$0xff]   ;;  %v12042_v5 = vld [vmem:[%s13067_s23 + $0xee0] ss:$24 sps:$4 sm:$0xff]  }
 0x3d3   : > { %7265 = vmatprep.subr.bf16.mxu1 %v11987_v6  ;;  %v6920_v27 = vpop.f32.mrb[32].mxu0  ;;  %v12045_v6 = vld [vmem:[%s13067_s23 + $0x11e0] ss:$24 sps:$4 sm:$0xff]  }
 0x3d4   : > { %v6961_v16 = vpop.f32.mrb[32].mxu1  ;;  %v6921_v17 = vadd.f32 %v6920_v27, %v13966_v63  ;;  %v6922_v18 = vpop.f32.mrb[33].mxu0  ;;  %v11996_v63 = vld [vmem:[%s13067_s23 + $0xd64] ss:$24 sps:$4 sm:$0xff]  }
 0x3d5   : > { %v6963_v19 = vpop.f32.mrb[33].mxu1  ;;  %v6923_v20 = vadd.f32 %v6922_v18, %v13970_v1  ;;  %v6924_v25 = vpop.f32.mrb[34].mxu0  ;;  %7225 = vmatpush1.bf16.msra.mxu0 %v11982_v8  ;;  %v11999_v1 = vld [vmem:[%s13067_s23 + $0x1064] ss:$24 sps:$4 sm:$0xff]   ;;  %v12050_v8 = vld [vmem:[%s13067_s23 + $0x1214] ss:$24 sps:$4 sm:$0xff]  }
 0x3d6   : > { %v6965_v35 = vpop.f32.mrb[34].mxu1  ;;  %7266 = vmatpush1.bf16.msra.mxu1 %v11985_v13  ;;  %v14040_v9 = vadd.f32 %v6961_v16, %v6921_v17  ;;  %v6925_v10 = vpop.f32.mrb[35].mxu0  ;;  %7226 = vmatprep.subr.bf16.mxu0 %v11990_v23  ;;  %v12053_v13 = vld [vmem:[%s13067_s23 + $0x1514] ss:$24 sps:$4 sm:$0xff]   ;;  %v12048_v23 = vld [vmem:[%s13067_s23 + $0x1210] ss:$24 sps:$4 sm:$0xff]  }
 0x3d7   : > { %v6966_v40 = vpop.f32.mrb[35].mxu1  ;;  %7267 = vmatprep.subr.bf16.mxu1 %v11993_v14  ;;  %v14044_v28 = vadd.f32 %v6963_v19, %v6923_v20  ;;  %v12051_v14 = vld [vmem:[%s13067_s23 + $0x1510] ss:$24 sps:$4 sm:$0xff]   ;;  %v12056_v27 = vld [vmem:[%s13067_s23 + $0x1244] ss:$24 sps:$4 sm:$0xff]  }
 0x3d8   : > { %v12059_v16 = vld [vmem:[%s13067_s23 + $0x1544] ss:$24 sps:$4 sm:$0xff]   ;;  %v12054_v17 = vld [vmem:[%s13067_s23 + $0x1240] ss:$24 sps:$4 sm:$0xff]   ;;  %v12062_v19 = vld [vmem:[%s13067_s23 + $0x1274] ss:$24 sps:$4 sm:$0xff]  }
 0x3d9   : > { %7227 = vmatpush1.bf16.msra.mxu0 %v11988_v29  ;;  %v12057_v18 = vld [vmem:[%s13067_s23 + $0x1540] ss:$24 sps:$4 sm:$0xff]   ;;  %v12065_v20 = vld [vmem:[%s13067_s23 + $0x1574] ss:$24 sps:$4 sm:$0xff]   ;;  %v12068_v25 = vld [vmem:[%s13067_s23 + $0x12a4] ss:$24 sps:$4 sm:$0xff]  }
 0x3da   : > { %7268 = vmatpush1.bf16.msra.mxu1 %v11991_v34  ;;  %7228 = vmatprep.subr.bf16.mxu0 %v11996_v63  ;;  %v12071_v35 = vld [vmem:[%s13067_s23 + $0x15a4] ss:$24 sps:$4 sm:$0xff]   ;;  %v12066_v29 = vld [vmem:[%s13067_s23 + $0x12a0] ss:$24 sps:$4 sm:$0xff]   ;;  %v12077_v34 = vld [vmem:[%s13067_s23 + $0x15d4] ss:$24 sps:$4 sm:$0xff]  }
 0x3db   : > { %7269 = vmatprep.subr.bf16.mxu1 %v11999_v1  ;;  %v12072_v10 = vld [vmem:[%s13067_s23 + $0x12d0] ss:$24 sps:$4 sm:$0xff]   ;;  %v12080_v63 = vld [vmem:[%s13067_s23 + $0x1304] ss:$24 sps:$4 sm:$0xff]  }
 0x3dc   : > { %v12075_v40 = vld [vmem:[%s13067_s23 + $0x15d0] ss:$24 sps:$4 sm:$0xff]   ;;  %v12083_v1 = vld [vmem:[%s13067_s23 + $0x1604] ss:$24 sps:$4 sm:$0xff]  }
 0x3dd   : > { %7229 = vmatpush1.bf16.msra.mxu0 %v11994_v31  ;;  %v12078_v31 = vld [vmem:[%s13067_s23 + $0x1300] ss:$24 sps:$4 sm:$0xff]  }
 0x3de   : > { %7270 = vmatpush1.bf16.msra.mxu1 %v11997_v38  ;;  %7230 = vmatprep.subr.bf16.mxu0 %v12002_v41  ;;  %v12081_v38 = vld [vmem:[%s13067_s23 + $0x1600] ss:$24 sps:$4 sm:$0xff]   ;;  %v12086_v41 = vld [vmem:[%s13067_s23 + $0x1334] ss:$24 sps:$4 sm:$0xff]  }
 0x3df   : > { %7271 = vmatprep.subr.bf16.mxu1 %v12005_v32  ;;  %v12089_v32 = vld [vmem:[%s13067_s23 + $0x1634] ss:$24 sps:$4 sm:$0xff]  }
 0x3e1   : > { %7231 = vmatpush1.bf16.msra.mxu0 %v12000_v36 }
 0x3e2   : > { %7272 = vmatpush1.bf16.msra.mxu1 %v12003_v37  ;;  %7232 = vmatprep.subr.bf16.mxu0 %v12008_v45 }
 0x3e3   : > { %7273 = vmatprep.subr.bf16.mxu1 %v12011_v39 }
 0x3e5   : > { %7233 = vmatpush1.bf16.msra.mxu0 %v12006_v48 }
 0x3e6   : > { %7274 = vmatpush1.bf16.msra.mxu1 %v12009_v42  ;;  %7234 = vmatprep.subr.bf16.mxu0 %v12014_v46  ;;  %v12084_v42 = vld [vmem:[%s13067_s23 + $0x1330] ss:$24 sps:$4 sm:$0xff]   ;;  %v426_v46 = vld [vmem:[#allocation2 + $0x10] sm:$0xff] }
 0x3e7   : > { %7275 = vmatprep.subr.bf16.mxu1 %v12017_v47 }
 0x3e9   : > { %7235 = vmatpush1.bf16.msra.mxu0 %v12012_v52  ;;  %v427_v52 = vld [vmem:[#allocation2 + $0x18] sm:$0xff] }
 0x3ea   : > { %7276 = vmatpush1.bf16.msra.mxu1 %v12015_v54  ;;  %7236 = vmatprep.subr.bf16.mxu0 %v12020_v57 }
 0x3eb   : > { %7277 = vmatprep.subr.bf16.mxu1 %v12023_v58  ;;  %v12087_v58 = vld [vmem:[%s13067_s23 + $0x1630] ss:$24 sps:$4 sm:$0xff]  }
 0x3ed   : > { %7237 = vmatpush1.bf16.msra.mxu0 %v12018_v59 }
 0x3ee   : > { %7278 = vmatpush1.bf16.msra.mxu1 %v12021_v60  ;;  %7238 = vmatprep.subr.bf16.mxu0 %v12026_v61  ;;  %v12092_v61 = vld [vmem:[%s13067_s23 + $0x1364] ss:$24 sps:$4 sm:$0xff]  }
 0x3ef   : > { %7279 = vmatprep.subr.bf16.mxu1 %v12029_v50  ;;  %v12095_v50 = vld [vmem:[%s13067_s23 + $0x1664] ss:$24 sps:$4 sm:$0xff]  }
 0x3f1   : > { %7239 = vmatpush1.bf16.msra.mxu0 %v12024_v53 }
 0x3f2   : > { %7280 = vmatpush1.bf16.msra.mxu1 %v12027_v62  ;;  %7240 = vmatprep.subr.bf16.mxu0 %v12032_v21  ;;  %v12090_v21 = vld [vmem:[%s13067_s23 + $0x1360] ss:$24 sps:$4 sm:$0xff]  }
 0x3f3   : > { %7281 = vmatprep.subr.bf16.mxu1 %v12035_v22  ;;  %v12093_v22 = vld [vmem:[%s13067_s23 + $0x1660] ss:$24 sps:$4 sm:$0xff]  }
 0x3f5   : > { %7241 = vmatpush1.bf16.msra.mxu0 %v12030_v0  ;;  %v12098_v0 = vld [vmem:[%s13067_s23 + $0x1394] ss:$24 sps:$4 sm:$0xff]  }
 0x3f6   : > { %7282 = vmatpush1.bf16.msra.mxu1 %v12033_v7  ;;  %7242 = vmatprep.subr.bf16.mxu0 %v12038_v24  ;;  %v12101_v7 = vld [vmem:[%s13067_s23 + $0x1694] ss:$24 sps:$4 sm:$0xff]   ;;  %v12096_v24 = vld [vmem:[%s13067_s23 + $0x1390] ss:$24 sps:$4 sm:$0xff]  }
 0x3f7   : > { %7283 = vmatprep.subr.bf16.mxu1 %v12041_v30  ;;  %v12099_v30 = vld [vmem:[%s13067_s23 + $0x1690] ss:$24 sps:$4 sm:$0xff]  }
 0x3f9   : > { %7243 = vmatpush1.bf16.msra.mxu0 %v12036_v33  ;;  %v12104_v33 = vld [vmem:[%s13067_s23 + $0x13c4] ss:$24 sps:$4 sm:$0xff]  }
 0x3fa   : > { %7284 = vmatpush1.bf16.msra.mxu1 %v12039_v26  ;;  %7244 = vmatprep.subr.bf16.mxu0 %v12044_v2  ;;  %v12107_v26 = vld [vmem:[%s13067_s23 + $0x16c4] ss:$24 sps:$4 sm:$0xff]   ;;  %v12102_v2 = vld [vmem:[%s13067_s23 + $0x13c0] ss:$24 sps:$4 sm:$0xff]  }
 0x3fb   : > { %7285 = vmatprep.subr.bf16.mxu1 %v12047_v15  ;;  %v12105_v15 = vld [vmem:[%s13067_s23 + $0x16c0] ss:$24 sps:$4 sm:$0xff]  }
 0x3fd   : > { %7245 = vmatpush1.bf16.msra.mxu0 %v12042_v5  ;;  %v12110_v5 = vld [vmem:[%s13067_s23 + $0x13f4] ss:$24 sps:$4 sm:$0xff]  }
 0x3fe   : > { %7286 = vmatpush1.bf16.msra.mxu1 %v12045_v6  ;;  %7296 = vmatprep.subr.bf16.mxu0 %v12050_v8  ;;  %v12113_v6 = vld [vmem:[%s13067_s23 + $0x16f4] ss:$24 sps:$4 sm:$0xff]   ;;  %v12108_v8 = vld [vmem:[%s13067_s23 + $0x13f0] ss:$24 sps:$4 sm:$0xff]  }
 0x3ff   : > { %7337 = vmatprep.subr.bf16.mxu1 %v12053_v13  ;;  %v12111_v13 = vld [vmem:[%s13067_s23 + $0x16f0] ss:$24 sps:$4 sm:$0xff]  }
 0x400   : > { %7247 = vmatmul.mubr.bf16.vlgmr.msra.gmra.mrb[48].mxu0 %v13330_v43  ;;  %v12060_v43 = vld [vmem:[%s13067_s23 + $0x1270] ss:$24 sps:$4 sm:$0xff]  }
 0x401   : > { %7288 = vmatmul.mubr.bf16.vlgmr.msra.gmra.mrb[48].mxu1 %v13332_v44  ;;  %7297 = vmatpush1.bf16.msra.mxu0 %v12048_v23  ;;  %v12063_v44 = vld [vmem:[%s13067_s23 + $0x1570] ss:$24 sps:$4 sm:$0xff]   ;;  %v12116_v23 = vld [vmem:[%s13067_s23 + $0x1424] ss:$24 sps:$4 sm:$0xff]  }
 0x402   : > { %7338 = vmatpush1.bf16.msra.mxu1 %v12051_v14  ;;  %7298 = vmatprep.subr.bf16.mxu0 %v12056_v27  ;;  %v12119_v14 = vld [vmem:[%s13067_s23 + $0x1724] ss:$24 sps:$4 sm:$0xff]   ;;  %v12114_v27 = vld [vmem:[%s13067_s23 + $0x1420] ss:$24 sps:$4 sm:$0xff]  }
 0x403   : > { %7339 = vmatprep.subr.bf16.mxu1 %v12059_v16  ;;  %7328 = vmatprep.mubr.bf16.mxu0 %v13338_v49  ;;  %v12069_v49 = vld [vmem:[%s13067_s23 + $0x15a0] ss:$24 sps:$4 sm:$0xff]  }
 0x404   : > { %7369 = vmatprep.mubr.bf16.mxu1 %v13340_v51  ;;  %v12074_v51 = vld [vmem:[%s13067_s23 + $0x12d4] ss:$24 sps:$4 sm:$0xff]   ;;  %v12117_v16 = vld [vmem:[%s13067_s23 + $0x1720] ss:$24 sps:$4 sm:$0xff]  }
 0x405   : > { %7299 = vmatpush1.bf16.msra.mxu0 %v12054_v17  ;;  %v12122_v17 = vld [vmem:[%s13067_s23 + $0x1454] ss:$24 sps:$4 sm:$0xff]  }
 0x406   : > { %7340 = vmatpush1.bf16.msra.mxu1 %v12057_v18  ;;  %7300 = vmatprep.subr.bf16.mxu0 %v12062_v19  ;;  %v12125_v18 = vld [vmem:[%s13067_s23 + $0x1754] ss:$24 sps:$4 sm:$0xff]   ;;  %v12120_v19 = vld [vmem:[%s13067_s23 + $0x1450] ss:$24 sps:$4 sm:$0xff]  }
 0x407   : > { %7341 = vmatprep.subr.bf16.mxu1 %v12065_v20  ;;  %v12123_v20 = vld [vmem:[%s13067_s23 + $0x1750] ss:$24 sps:$4 sm:$0xff]  }
 0x409   : > { %7301 = vmatpush1.bf16.msra.mxu0 %v12060_v43  ;;  %v12128_v43 = vld [vmem:[%s13067_s23 + $0x1484] ss:$24 sps:$4 sm:$0xff]  }
 0x40a   : > { %7342 = vmatpush1.bf16.msra.mxu1 %v12063_v44  ;;  %7302 = vmatprep.subr.bf16.mxu0 %v12068_v25  ;;  %v12131_v44 = vld [vmem:[%s13067_s23 + $0x1784] ss:$24 sps:$4 sm:$0xff]   ;;  %v12126_v25 = vld [vmem:[%s13067_s23 + $0x1480] ss:$24 sps:$4 sm:$0xff]  }
 0x40b   : > { %7343 = vmatprep.subr.bf16.mxu1 %v12071_v35  ;;  %v12129_v35 = vld [vmem:[%s13067_s23 + $0x1780] ss:$24 sps:$4 sm:$0xff]  }
 0x40d   : > { %7303 = vmatpush1.bf16.msra.mxu0 %v12066_v29  ;;  %v12134_v29 = vld [vmem:[%s13067_s23 + $0x14b4] ss:$24 sps:$4 sm:$0xff]  }
 0x40e   : > { %7344 = vmatpush1.bf16.msra.mxu1 %v12069_v49  ;;  %7304 = vmatprep.subr.bf16.mxu0 %v12074_v51  ;;  %v12137_v49 = vld [vmem:[%s13067_s23 + $0x17b4] ss:$24 sps:$4 sm:$0xff]   ;;  %v12132_v51 = vld [vmem:[%s13067_s23 + $0x14b0] ss:$24 sps:$4 sm:$0xff]  }
 0x40f   : > { %7345 = vmatprep.subr.bf16.mxu1 %v12077_v34  ;;  %v12135_v34 = vld [vmem:[%s13067_s23 + $0x17b0] ss:$24 sps:$4 sm:$0xff]  }
 0x411   : > { %7305 = vmatpush1.bf16.msra.mxu0 %v12072_v10  ;;  %v12140_v10 = vld [vmem:[%s13067_s23 + $0x14e4] ss:$24 sps:$4 sm:$0xff]  }
 0x412   : > { %7346 = vmatpush1.bf16.msra.mxu1 %v12075_v40  ;;  %7306 = vmatprep.subr.bf16.mxu0 %v12080_v63  ;;  %v12143_v40 = vld [vmem:[%s13067_s23 + $0x17e4] ss:$24 sps:$4 sm:$0xff]   ;;  %v12138_v63 = vld [vmem:[%s13067_s23 + $0x14e0] ss:$24 sps:$4 sm:$0xff]  }
 0x413   : > { %7347 = vmatprep.subr.bf16.mxu1 %v12083_v1  ;;  %v7002_v36 = vpop.f32.mrb[36].mxu0  ;;  %v12141_v1 = vld [vmem:[%s13067_s23 + $0x17e0] ss:$24 sps:$4 sm:$0xff]  }
 0x414   : > { %v7043_v37 = vpop.f32.mrb[36].mxu1  ;;  %v7003_v45 = vadd.f32 %v7002_v36, %v14040_v9  ;;  %v7004_v39 = vpop.f32.mrb[37].mxu0  ;;  %v12152_v36 = vld [vmem:[%s13067_s23 + $0x1844] ss:$24 sps:$4 sm:$0xff]  }
 0x415   : > { %v7045_v48 = vpop.f32.mrb[37].mxu1  ;;  %v7005_v47 = vadd.f32 %v7004_v39, %v14044_v28  ;;  %v7006_v54 = vpop.f32.mrb[38].mxu0  ;;  %7307 = vmatpush1.bf16.msra.mxu0 %v12078_v31  ;;  %v12146_v31 = vld [vmem:[%s13067_s23 + $0x1814] ss:$24 sps:$4 sm:$0xff]   ;;  %v12153_v39 = vld [vmem:[%s13067_s23 + $0x1b40] ss:$24 sps:$4 sm:$0xff]  }
 0x416   : > { %v7047_v57 = vpop.f32.mrb[38].mxu1  ;;  %7348 = vmatpush1.bf16.msra.mxu1 %v12081_v38  ;;  %v7044_v59 = vadd.f32 %v7043_v37, %v7003_v45  ;;  %v7007_v60 = vpop.f32.mrb[39].mxu0  ;;  %7308 = vmatprep.subr.bf16.mxu0 %v12086_v41  ;;  %v12149_v38 = vld [vmem:[%s13067_s23 + $0x1b14] ss:$24 sps:$4 sm:$0xff]   ;;  %v12144_v41 = vld [vmem:[%s13067_s23 + $0x1810] ss:$24 sps:$4 sm:$0xff]  }
 0x417   : > { %v7048_v9 = vpop.f32.mrb[39].mxu1  ;;  %7349 = vmatprep.subr.bf16.mxu1 %v12089_v32  ;;  %v7046_v53 = vadd.f32 %v7045_v48, %v7005_v47  ;;  %v12147_v32 = vld [vmem:[%s13067_s23 + $0x1b10] ss:$24 sps:$4 sm:$0xff]   ;;  %v12155_v37 = vld [vmem:[%s13067_s23 + $0x1b44] ss:$24 sps:$4 sm:$0xff]  }
 0x418   : > { %v7462_v28 = vadd.f32 %v7044_v59, %v426_v46  ;;  %v12150_v45 = vld [vmem:[%s13067_s23 + $0x1840] ss:$24 sps:$4 sm:$0xff]   ;;  %v12158_v48 = vld [vmem:[%s13067_s23 + $0x1874] ss:$24 sps:$4 sm:$0xff]   ;;  %v12164_v46 = vld [vmem:[%s13067_s23 + $0x18a4] ss:$24 sps:$4 sm:$0xff]  }
 0x419   : > { %v7463_v62 = vadd.f32 %v7046_v53, %v427_v52  ;;  %7309 = vmatpush1.bf16.msra.mxu0 %v12084_v42  ;;  %v12161_v42 = vld [vmem:[%s13067_s23 + $0x1b74] ss:$24 sps:$4 sm:$0xff]   ;;  %v12167_v47 = vld [vmem:[%s13067_s23 + $0x1ba4] ss:$24 sps:$4 sm:$0xff]   ;;  %v12162_v52 = vld [vmem:[%s13067_s23 + $0x18a0] ss:$24 sps:$4 sm:$0xff]  }
 0x41a   : > { %7350 = vmatpush1.bf16.msra.mxu1 %v12087_v58  ;;  %7468 = vst [vmem:[#allocation2 + $0x10] sm:$0xff] %v7462_v28  ;;  %7310 = vmatprep.subr.bf16.mxu0 %v12092_v61  ;;  %v12173_v54 = vld [vmem:[%s13067_s23 + $0x1bd4] ss:$24 sps:$4 sm:$0xff]   ;;  %v12168_v57 = vld [vmem:[%s13067_s23 + $0x18d0] ss:$24 sps:$4 sm:$0xff]  }
 0x41b   : > { %7351 = vmatprep.subr.bf16.mxu1 %v12095_v50  ;;  %7469 = vst [vmem:[#allocation2 + $0x18] sm:$0xff] %v7463_v62  ;;  %v12171_v58 = vld [vmem:[%s13067_s23 + $0x1bd0] ss:$24 sps:$4 sm:$0xff]   ;;  %v12176_v59 = vld [vmem:[%s13067_s23 + $0x1904] ss:$24 sps:$4 sm:$0xff]  }
 0x41c   : > { %v12179_v60 = vld [vmem:[%s13067_s23 + $0x1c04] ss:$24 sps:$4 sm:$0xff]   ;;  %v12174_v9 = vld [vmem:[%s13067_s23 + $0x1900] ss:$24 sps:$4 sm:$0xff]   ;;  %v12182_v50 = vld [vmem:[%s13067_s23 + $0x1934] ss:$24 sps:$4 sm:$0xff]  }
 0x41d   : > { %7311 = vmatpush1.bf16.msra.mxu0 %v12090_v21  ;;  %v12177_v61 = vld [vmem:[%s13067_s23 + $0x1c00] ss:$24 sps:$4 sm:$0xff]   ;;  %v12185_v53 = vld [vmem:[%s13067_s23 + $0x1c34] ss:$24 sps:$4 sm:$0xff]  }
 0x41e   : > { %7352 = vmatpush1.bf16.msra.mxu1 %v12093_v22  ;;  %7312 = vmatprep.subr.bf16.mxu0 %v12098_v0 }
 0x41f   : > { %7353 = vmatprep.subr.bf16.mxu1 %v12101_v7 }
 0x421   : > { %7313 = vmatpush1.bf16.msra.mxu0 %v12096_v24 }
 0x422   : > { %7354 = vmatpush1.bf16.msra.mxu1 %v12099_v30  ;;  %7314 = vmatprep.subr.bf16.mxu0 %v12104_v33  ;;  %v12180_v33 = vld [vmem:[%s13067_s23 + $0x1930] ss:$24 sps:$4 sm:$0xff]  }
 0x423   : > { %7355 = vmatprep.subr.bf16.mxu1 %v12107_v26  ;;  %v12183_v26 = vld [vmem:[%s13067_s23 + $0x1c30] ss:$24 sps:$4 sm:$0xff]  }
 0x425   : > { %7315 = vmatpush1.bf16.msra.mxu0 %v12102_v2 }
 0x426   : > { %7356 = vmatpush1.bf16.msra.mxu1 %v12105_v15  ;;  %7316 = vmatprep.subr.bf16.mxu0 %v12110_v5  ;;  %v12188_v5 = vld [vmem:[%s13067_s23 + $0x1964] ss:$24 sps:$4 sm:$0xff]  }
 0x427   : > { %7357 = vmatprep.subr.bf16.mxu1 %v12113_v6  ;;  %v12191_v6 = vld [vmem:[%s13067_s23 + $0x1c64] ss:$24 sps:$4 sm:$0xff]  }
 0x429   : > { %7317 = vmatpush1.bf16.msra.mxu0 %v12108_v8  ;;  %v12186_v8 = vld [vmem:[%s13067_s23 + $0x1960] ss:$24 sps:$4 sm:$0xff]  }
 0x42a   : > { %7358 = vmatpush1.bf16.msra.mxu1 %v12111_v13  ;;  %7318 = vmatprep.subr.bf16.mxu0 %v12116_v23  ;;  %v12189_v13 = vld [vmem:[%s13067_s23 + $0x1c60] ss:$24 sps:$4 sm:$0xff]   ;;  %v12194_v23 = vld [vmem:[%s13067_s23 + $0x1994] ss:$24 sps:$4 sm:$0xff]  }
 0x42b   : > { %7359 = vmatprep.subr.bf16.mxu1 %v12119_v14  ;;  %v12197_v14 = vld [vmem:[%s13067_s23 + $0x1c94] ss:$24 sps:$4 sm:$0xff]  }
 0x42d   : > { %7319 = vmatpush1.bf16.msra.mxu0 %v12114_v27  ;;  %v12192_v27 = vld [vmem:[%s13067_s23 + $0x1990] ss:$24 sps:$4 sm:$0xff]  }
 0x42e   : > { %7360 = vmatpush1.bf16.msra.mxu1 %v12117_v16  ;;  %7320 = vmatprep.subr.bf16.mxu0 %v12122_v17  ;;  %v12195_v16 = vld [vmem:[%s13067_s23 + $0x1c90] ss:$24 sps:$4 sm:$0xff]   ;;  %v12200_v17 = vld [vmem:[%s13067_s23 + $0x19c4] ss:$24 sps:$4 sm:$0xff]  }
 0x42f   : > { %7361 = vmatprep.subr.bf16.mxu1 %v12125_v18  ;;  %v12203_v18 = vld [vmem:[%s13067_s23 + $0x1cc4] ss:$24 sps:$4 sm:$0xff]  }
 0x431   : > { %7321 = vmatpush1.bf16.msra.mxu0 %v12120_v19  ;;  %v12198_v19 = vld [vmem:[%s13067_s23 + $0x19c0] ss:$24 sps:$4 sm:$0xff]  }
 0x432   : > { %7362 = vmatpush1.bf16.msra.mxu1 %v12123_v20  ;;  %7322 = vmatprep.subr.bf16.mxu0 %v12128_v43  ;;  %v12201_v20 = vld [vmem:[%s13067_s23 + $0x1cc0] ss:$24 sps:$4 sm:$0xff]   ;;  %v12206_v43 = vld [vmem:[%s13067_s23 + $0x19f4] ss:$24 sps:$4 sm:$0xff]  }
 0x433   : > { %7363 = vmatprep.subr.bf16.mxu1 %v12131_v44  ;;  %v12209_v44 = vld [vmem:[%s13067_s23 + $0x1cf4] ss:$24 sps:$4 sm:$0xff]  }
 0x435   : > { %7323 = vmatpush1.bf16.msra.mxu0 %v12126_v25  ;;  %v12204_v25 = vld [vmem:[%s13067_s23 + $0x19f0] ss:$24 sps:$4 sm:$0xff]  }
 0x436   : > { %7364 = vmatpush1.bf16.msra.mxu1 %v12129_v35  ;;  %7324 = vmatprep.subr.bf16.mxu0 %v12134_v29  ;;  %v12207_v35 = vld [vmem:[%s13067_s23 + $0x1cf0] ss:$24 sps:$4 sm:$0xff]   ;;  %v12212_v29 = vld [vmem:[%s13067_s23 + $0x1a24] ss:$24 sps:$4 sm:$0xff]  }
 0x437   : > { %7365 = vmatprep.subr.bf16.mxu1 %v12137_v49  ;;  %v12215_v49 = vld [vmem:[%s13067_s23 + $0x1d24] ss:$24 sps:$4 sm:$0xff]  }
 0x439   : > { %7325 = vmatpush1.bf16.msra.mxu0 %v12132_v51  ;;  %v12210_v51 = vld [vmem:[%s13067_s23 + $0x1a20] ss:$24 sps:$4 sm:$0xff]  }
 0x43a   : > { %7366 = vmatpush1.bf16.msra.mxu1 %v12135_v34  ;;  %7326 = vmatprep.subr.bf16.mxu0 %v12140_v10  ;;  %v12213_v34 = vld [vmem:[%s13067_s23 + $0x1d20] ss:$24 sps:$4 sm:$0xff]   ;;  %v12218_v10 = vld [vmem:[%s13067_s23 + $0x1a54] ss:$24 sps:$4 sm:$0xff]  }
 0x43b   : > { %7367 = vmatprep.subr.bf16.mxu1 %v12143_v40  ;;  %v12221_v40 = vld [vmem:[%s13067_s23 + $0x1d54] ss:$24 sps:$4 sm:$0xff]  }
 0x43d   : > { %7327 = vmatpush1.bf16.msra.mxu0 %v12138_v63  ;;  %v12216_v63 = vld [vmem:[%s13067_s23 + $0x1a50] ss:$24 sps:$4 sm:$0xff]  }
 0x43e   : > { %7368 = vmatpush1.bf16.msra.mxu1 %v12141_v1  ;;  %7378 = vmatprep.subr.bf16.mxu0 %v12146_v31  ;;  %v12219_v1 = vld [vmem:[%s13067_s23 + $0x1d50] ss:$24 sps:$4 sm:$0xff]   ;;  %v12224_v31 = vld [vmem:[%s13067_s23 + $0x1a84] ss:$24 sps:$4 sm:$0xff]  }
 0x43f   : > { %7419 = vmatprep.subr.bf16.mxu1 %v12149_v38  ;;  %v12227_v38 = vld [vmem:[%s13067_s23 + $0x1d84] ss:$24 sps:$4 sm:$0xff]  }
 0x440   : > { %7329 = vmatmul.mubr.bf16.vlgmr.msra.gmra.mrb[52].mxu0 %v13410_v3  ;;  %v12156_v3 = vld [vmem:[%s13067_s23 + $0x1870] ss:$24 sps:$4 sm:$0xff]  }
 0x441   : > { %7370 = vmatmul.mubr.bf16.vlgmr.msra.gmra.mrb[52].mxu1 %v13412_v4  ;;  %7379 = vmatpush1.bf16.msra.mxu0 %v12144_v41  ;;  %v12159_v4 = vld [vmem:[%s13067_s23 + $0x1b70] ss:$24 sps:$4 sm:$0xff]   ;;  %v12222_v41 = vld [vmem:[%s13067_s23 + $0x1a80] ss:$24 sps:$4 sm:$0xff]  }
 0x442   : > { %7420 = vmatpush1.bf16.msra.mxu1 %v12147_v32  ;;  %7380 = vmatprep.subr.bf16.mxu0 %v12152_v36  ;;  %v12225_v32 = vld [vmem:[%s13067_s23 + $0x1d80] ss:$24 sps:$4 sm:$0xff]   ;;  %v12230_v36 = vld [vmem:[%s13067_s23 + $0x1ab4] ss:$24 sps:$4 sm:$0xff]  }
 0x443   : > { %7421 = vmatprep.subr.bf16.mxu1 %v12155_v37  ;;  %7410 = vmatprep.mubr.bf16.mxu0 %v13418_v11  ;;  %v12165_v11 = vld [vmem:[%s13067_s23 + $0x1ba0] ss:$24 sps:$4 sm:$0xff]   ;;  %v12233_v37 = vld [vmem:[%s13067_s23 + $0x1db4] ss:$24 sps:$4 sm:$0xff]  }
 0x444   : > { %7451 = vmatprep.mubr.bf16.mxu1 %v13420_v12  ;;  %v12170_v12 = vld [vmem:[%s13067_s23 + $0x18d4] ss:$24 sps:$4 sm:$0xff]  }
 0x445   : > { %7381 = vmatpush1.bf16.msra.mxu0 %v12150_v45  ;;  %v12228_v45 = vld [vmem:[%s13067_s23 + $0x1ab0] ss:$24 sps:$4 sm:$0xff]  }
 0x446   : > { %7422 = vmatpush1.bf16.msra.mxu1 %v12153_v39  ;;  %7382 = vmatprep.subr.bf16.mxu0 %v12158_v48  ;;  %v12231_v39 = vld [vmem:[%s13067_s23 + $0x1db0] ss:$24 sps:$4 sm:$0xff]   ;;  %v12236_v48 = vld [vmem:[%s13067_s23 + $0x1ae4] ss:$24 sps:$4 sm:$0xff]  }
 0x447   : > { %7423 = vmatprep.subr.bf16.mxu1 %v12161_v42  ;;  %v12239_v42 = vld [vmem:[%s13067_s23 + $0x1de4] ss:$24 sps:$4 sm:$0xff]  }
 0x449   : > { %7383 = vmatpush1.bf16.msra.mxu0 %v12156_v3  ;;  %v12234_v3 = vld [vmem:[%s13067_s23 + $0x1ae0] ss:$24 sps:$4 sm:$0xff]  }
 0x44a   : > { %7424 = vmatpush1.bf16.msra.mxu1 %v12159_v4  ;;  %7384 = vmatprep.subr.bf16.mxu0 %v12164_v46  ;;  %v12237_v4 = vld [vmem:[%s13067_s23 + $0x1de0] ss:$24 sps:$4 sm:$0xff]  }
 0x44b   : > { %7425 = vmatprep.subr.bf16.mxu1 %v12167_v47 }
 0x44d   : > { %7385 = vmatpush1.bf16.msra.mxu0 %v12162_v52 }
 0x44e   : > { %7426 = vmatpush1.bf16.msra.mxu1 %v12165_v11  ;;  %7386 = vmatprep.subr.bf16.mxu0 %v12170_v12 }
 0x44f   : > { %7427 = vmatprep.subr.bf16.mxu1 %v12173_v54 }
 0x451   : > { %7387 = vmatpush1.bf16.msra.mxu0 %v12168_v57 }
 0x452   : > { %7428 = vmatpush1.bf16.msra.mxu1 %v12171_v58  ;;  %7388 = vmatprep.subr.bf16.mxu0 %v12176_v59 }
 0x453   : > { %7429 = vmatprep.subr.bf16.mxu1 %v12179_v60  ;;  %v7084_v28 = vpop.f32.mrb[40].mxu0 }
 0x454   : > { %v7125_v62 = vpop.f32.mrb[40].mxu1  ;;  %v7086_v22 = vpop.f32.mrb[41].mxu0 }
 0x455   : > { %v14180_v21 = vadd.f32 %v7125_v62, %v7084_v28  ;;  %v7127_v0 = vpop.f32.mrb[41].mxu1  ;;  %v7088_v24 = vpop.f32.mrb[42].mxu0  ;;  %7389 = vmatpush1.bf16.msra.mxu0 %v12174_v9 }
 0x456   : > { %v14182_v7 = vadd.f32 %v7127_v0, %v7086_v22  ;;  %v7129_v30 = vpop.f32.mrb[42].mxu1  ;;  %7430 = vmatpush1.bf16.msra.mxu1 %v12177_v61  ;;  %v7089_v2 = vpop.f32.mrb[43].mxu0  ;;  %7390 = vmatprep.subr.bf16.mxu0 %v12182_v50 }
 0x457   : > { %v7130_v15 = vpop.f32.mrb[43].mxu1  ;;  %7431 = vmatprep.subr.bf16.mxu1 %v12185_v53 }
 0x459   : > { %7391 = vmatpush1.bf16.msra.mxu0 %v12180_v33 }
 0x45a   : > { %7432 = vmatpush1.bf16.msra.mxu1 %v12183_v26  ;;  %7392 = vmatprep.subr.bf16.mxu0 %v12188_v5 }
 0x45b   : > { %7433 = vmatprep.subr.bf16.mxu1 %v12191_v6 }
 0x45d   : > { %7393 = vmatpush1.bf16.msra.mxu0 %v12186_v8 }
 0x45e   : > { %7434 = vmatpush1.bf16.msra.mxu1 %v12189_v13  ;;  %7394 = vmatprep.subr.bf16.mxu0 %v12194_v23 }
 0x45f   : > { %7435 = vmatprep.subr.bf16.mxu1 %v12197_v14 }
 0x461   : > { %7395 = vmatpush1.bf16.msra.mxu0 %v12192_v27 }
 0x462   : > { %7436 = vmatpush1.bf16.msra.mxu1 %v12195_v16  ;;  %7396 = vmatprep.subr.bf16.mxu0 %v12200_v17 }
 0x463   : > { %7437 = vmatprep.subr.bf16.mxu1 %v12203_v18 }
 0x465   : > { %7397 = vmatpush1.bf16.msra.mxu0 %v12198_v19 }
 0x466   : > { %7438 = vmatpush1.bf16.msra.mxu1 %v12201_v20  ;;  %7398 = vmatprep.subr.bf16.mxu0 %v12206_v43 }
 0x467   : > { %7439 = vmatprep.subr.bf16.mxu1 %v12209_v44  ;;  %v428_v44 = vld [vmem:[#allocation2 + $0x20] sm:$0xff] }
 0x469   : > { %7399 = vmatpush1.bf16.msra.mxu0 %v12204_v25 }
 0x46a   : > { %7440 = vmatpush1.bf16.msra.mxu1 %v12207_v35  ;;  %7400 = vmatprep.subr.bf16.mxu0 %v12212_v29 }
 0x46b   : > { %7441 = vmatprep.subr.bf16.mxu1 %v12215_v49 }
 0x46d   : > { %7401 = vmatpush1.bf16.msra.mxu0 %v12210_v51  ;;  %v429_v51 = vld [vmem:[#allocation2 + $0x28] sm:$0xff] }
 0x46e   : > { %7442 = vmatpush1.bf16.msra.mxu1 %v12213_v34  ;;  %7402 = vmatprep.subr.bf16.mxu0 %v12218_v10 }
 0x46f   : > { %7443 = vmatprep.subr.bf16.mxu1 %v12221_v40 }
 0x471   : > { %7403 = vmatpush1.bf16.msra.mxu0 %v12216_v63 }
 0x472   : > { %7444 = vmatpush1.bf16.msra.mxu1 %v12219_v1  ;;  %7404 = vmatprep.subr.bf16.mxu0 %v12224_v31  ;;  %v12240_v31 = vld [vmem:[#allocation7 + $0x4] ss:$16 sps:$4 sm:$0xff] (!%p10325_p9)  }
 0x473   : > { %7445 = vmatprep.subr.bf16.mxu1 %v12227_v38  ;;  %v12242_v38 = vld [vmem:[#allocation7 + $0xc] ss:$16 sps:$4 sm:$0xff] (!%p10325_p9)  }
 0x475   : > { %7405 = vmatpush1.bf16.msra.mxu0 %v12222_v41  ;;  %v12244_v41 = vld [vmem:[#allocation7] ss:$16 sps:$4 sm:$0xff] (!%p10325_p9)  }
 0x476   : > { %7446 = vmatpush1.bf16.msra.mxu1 %v12225_v32  ;;  %7406 = vmatprep.subr.bf16.mxu0 %v12230_v36  ;;  %v12245_v32 = vld [vmem:[#allocation7 + $0x8] ss:$16 sps:$4 sm:$0xff] (!%p10325_p9)   ;;  %v12246_v36 = vld [vmem:[#allocation7 + $0x24] ss:$16 sps:$4 sm:$0xff] (!%p10325_p9)  }
 0x477   : > { %7447 = vmatprep.subr.bf16.mxu1 %v12233_v37  ;;  %v12248_v37 = vld [vmem:[#allocation7 + $0x2c] ss:$16 sps:$4 sm:$0xff] (!%p10325_p9)  }
 0x479   : > { %7407 = vmatpush1.bf16.msra.mxu0 %v12228_v45  ;;  %v12250_v45 = vld [vmem:[#allocation7 + $0x20] ss:$16 sps:$4 sm:$0xff] (!%p10325_p9)  }
 0x47a   : > { %7448 = vmatpush1.bf16.msra.mxu1 %v12231_v39  ;;  %7408 = vmatprep.subr.bf16.mxu0 %v12236_v48  ;;  %v12251_v39 = vld [vmem:[#allocation7 + $0x28] ss:$16 sps:$4 sm:$0xff] (!%p10325_p9)   ;;  %v12252_v48 = vld [vmem:[#allocation7 + $0x44] ss:$16 sps:$4 sm:$0xff] (!%p10325_p9)  }
 0x47b   : > { %7449 = vmatprep.subr.bf16.mxu1 %v12239_v42  ;;  %v12254_v42 = vld [vmem:[#allocation7 + $0x4c] ss:$16 sps:$4 sm:$0xff] (!%p10325_p9)  }
 0x47d   : > { %7409 = vmatpush1.bf16.msra.mxu0 %v12234_v3  ;;  %v12256_v3 = vld [vmem:[#allocation7 + $0x40] ss:$16 sps:$4 sm:$0xff] (!%p10325_p9)  }
 0x47e   : > { %7450 = vmatpush1.bf16.msra.mxu1 %v12237_v4  ;;  %8736 = vmatprep.subr.bf16.mxu0 (!%p10325_p9), %v12240_v31  ;;  %v12257_v4 = vld [vmem:[#allocation7 + $0x48] ss:$16 sps:$4 sm:$0xff] (!%p10325_p9)   ;;  %v12316_v31 = vld [vmem:[#allocation7 + $0x180] ss:$16 sps:$4 sm:$0xff] (!%p10325_p9)  }
 0x47f   : > { %8859 = vmatprep.subr.bf16.mxu1 (!%p10325_p9), %v12242_v38  ;;  %v12317_v38 = vld [vmem:[#allocation7 + $0x188] ss:$16 sps:$4 sm:$0xff] (!%p10325_p9)  }
 0x480   : > { %7411 = vmatmul.mubr.bf16.vlgmr.msra.gmra.mrb[56].mxu0 %v13494_v55 }
 0x481   : > { %7452 = vmatmul.mubr.bf16.vlgmr.msra.gmra.mrb[56].mxu1 %v13496_v56  ;;  %8737 = vmatpush1.bf16.msra.mxu0 (!%p10325_p9), %v12244_v41 }
 0x482   : > { %8860 = vmatpush1.bf16.msra.mxu1 (!%p10325_p9), %v12245_v32  ;;  %8738 = vmatprep.subr.bf16.mxu0 (!%p10325_p9), %v12246_v36  ;;  %v12318_v32 = vld [vmem:[#allocation7 + $0x1a4] ss:$16 sps:$4 sm:$0xff] (!%p10325_p9)  }
 0x483   : > { %8861 = vmatprep.subr.bf16.mxu1 (!%p10325_p9), %v12248_v37  ;;  %v12320_v37 = vld [vmem:[#allocation7 + $0x1ac] ss:$16 sps:$4 sm:$0xff] (!%p10325_p9)  }
 0x485   : > { %8739 = vmatpush1.bf16.msra.mxu0 (!%p10325_p9), %v12250_v45 }
 0x486   : > { %8862 = vmatpush1.bf16.msra.mxu1 (!%p10325_p9), %v12251_v39  ;;  %8740 = vmatprep.subr.bf16.mxu0 (!%p10325_p9), %v12252_v48  ;;  %v12322_v39 = vld [vmem:[#allocation7 + $0x1a0] ss:$16 sps:$4 sm:$0xff] (!%p10325_p9)   ;;  %v12323_v48 = vld [vmem:[#allocation7 + $0x1a8] ss:$16 sps:$4 sm:$0xff] (!%p10325_p9)  }
 0x487   : > { %8863 = vmatprep.subr.bf16.mxu1 (!%p10325_p9), %v12254_v42  ;;  %v12324_v42 = vld [vmem:[#allocation7 + $0x1c4] ss:$16 sps:$4 sm:$0xff] (!%p10325_p9)  }
 0x489   : > { %8741 = vmatpush1.bf16.msra.mxu0 (!%p10325_p9), %v12256_v3  ;;  %v12326_v3 = vld [vmem:[#allocation7 + $0x1cc] ss:$16 sps:$4 sm:$0xff] (!%p10325_p9)  }
 0x48a   : > { %8864 = vmatpush1.bf16.msra.mxu1 (!%p10325_p9), %v12257_v4  ;;  %v12328_v4 = vld [vmem:[#allocation7 + $0x1c0] ss:$16 sps:$4 sm:$0xff] (!%p10325_p9)  }
 0x493   : > { %v7166_v46 = vpop.f32.mrb[44].mxu0 }
 0x494   : > { %v7207_v47 = vpop.f32.mrb[44].mxu1  ;;  %v7167_v52 = vadd.f32 %v7166_v46, %v14180_v21  ;;  %v7168_v11 = vpop.f32.mrb[45].mxu0  ;;  %v12258_v46 = vld [vmem:[#allocation7 + $0x64] ss:$16 sps:$4 sm:$0xff] (!%p10325_p9)  }
 0x495   : > { %v7209_v12 = vpop.f32.mrb[45].mxu1  ;;  %v7169_v54 = vadd.f32 %v7168_v11, %v14182_v7  ;;  %v7170_v57 = vpop.f32.mrb[46].mxu0  ;;  %v12263_v11 = vld [vmem:[#allocation7 + $0x68] ss:$16 sps:$4 sm:$0xff] (!%p10325_p9)   ;;  %8742 = vmatprep.subr.bf16.mxu0 (!%p10325_p9), %v12258_v46 }
 0x496   : > { %v7211_v58 = vpop.f32.mrb[46].mxu1  ;;  %v7208_v59 = vadd.f32 %v7207_v47, %v7167_v52  ;;  %v7171_v60 = vpop.f32.mrb[47].mxu0  ;;  %v12260_v47 = vld [vmem:[#allocation7 + $0x6c] ss:$16 sps:$4 sm:$0xff] (!%p10325_p9)   ;;  %v12262_v52 = vld [vmem:[#allocation7 + $0x60] ss:$16 sps:$4 sm:$0xff] (!%p10325_p9)  }
 0x497   : > { %v7212_v9 = vpop.f32.mrb[47].mxu1  ;;  %v7210_v61 = vadd.f32 %v7209_v12, %v7169_v54  ;;  %v12264_v12 = vld [vmem:[#allocation7 + $0x84] ss:$16 sps:$4 sm:$0xff] (!%p10325_p9)   ;;  %8865 = vmatprep.subr.bf16.mxu1 (!%p10325_p9), %v12260_v47  ;;  %v12266_v54 = vld [vmem:[#allocation7 + $0x8c] ss:$16 sps:$4 sm:$0xff] (!%p10325_p9)   ;;  %8743 = vmatpush1.bf16.msra.mxu0 (!%p10325_p9), %v12262_v52 }
 0x498   : > { %v12268_v57 = vld [vmem:[#allocation7 + $0x80] ss:$16 sps:$4 sm:$0xff] (!%p10325_p9)   ;;  %v12269_v58 = vld [vmem:[#allocation7 + $0x88] ss:$16 sps:$4 sm:$0xff] (!%p10325_p9)   ;;  %8866 = vmatpush1.bf16.msra.mxu1 (!%p10325_p9), %v12263_v11  ;;  %8744 = vmatprep.subr.bf16.mxu0 (!%p10325_p9), %v12264_v12  ;;  %v12272_v60 = vld [vmem:[#allocation7 + $0xac] ss:$16 sps:$4 sm:$0xff] (!%p10325_p9)  }
 0x499   : > { %8867 = vmatprep.subr.bf16.mxu1 (!%p10325_p9), %v12266_v54  ;;  %v12274_v9 = vld [vmem:[#allocation7 + $0xa0] ss:$16 sps:$4 sm:$0xff] (!%p10325_p9)   ;;  %v12329_v46 = vld [vmem:[#allocation7 + $0x1c8] ss:$16 sps:$4 sm:$0xff] (!%p10325_p9)   ;;  %v12330_v47 = vld [vmem:[#allocation7 + $0x1e4] ss:$16 sps:$4 sm:$0xff] (!%p10325_p9)  }
 0x49a   : > { %v12332_v52 = vld [vmem:[#allocation7 + $0x1ec] ss:$16 sps:$4 sm:$0xff] (!%p10325_p9)   ;;  %v12334_v11 = vld [vmem:[#allocation7 + $0x1e0] ss:$16 sps:$4 sm:$0xff] (!%p10325_p9)   ;;  %v12335_v54 = vld [vmem:[#allocation7 + $0x1e8] ss:$16 sps:$4 sm:$0xff] (!%p10325_p9)  }
 0x49b   : > { %8745 = vmatpush1.bf16.msra.mxu0 (!%p10325_p9), %v12268_v57  ;;  %v12338_v57 = vld [vmem:[#allocation7 + $0x204] ss:$16 sps:$4 sm:$0xff] (!%p10325_p9)  }
 0x49c   : > { %8868 = vmatpush1.bf16.msra.mxu1 (!%p10325_p9), %v12269_v58 }
 0x49d   : > { %8869 = vmatprep.subr.bf16.mxu1 (!%p10325_p9), %v12272_v60  ;;  %v12341_v60 = vld [vmem:[#allocation7 + $0x20c] ss:$16 sps:$4 sm:$0xff] (!%p10325_p9)  }
 0x4d3   : > { %v7248_v50 = vpop.f32.mrb[48].mxu0 }
 0x4d4   : > { %v7289_v53 = vpop.f32.mrb[48].mxu1  ;;  %v7249_v28 = vadd.f32 %v7248_v50, %v7208_v59  ;;  %v7250_v55 = vpop.f32.mrb[49].mxu0  ;;  %v12270_v59 = vld [vmem:[#allocation7 + $0xa4] ss:$16 sps:$4 sm:$0xff] (!%p10325_p9)  }
 0x4d5   : > { %v7291_v62 = vpop.f32.mrb[49].mxu1  ;;  %v7251_v56 = vadd.f32 %v7250_v55, %v7210_v61  ;;  %v7252_v22 = vpop.f32.mrb[50].mxu0  ;;  %v12275_v61 = vld [vmem:[#allocation7 + $0xa8] ss:$16 sps:$4 sm:$0xff] (!%p10325_p9)   ;;  %v12276_v50 = vld [vmem:[#allocation7 + $0xc4] ss:$16 sps:$4 sm:$0xff] (!%p10325_p9)   ;;  %8746 = vmatprep.subr.bf16.mxu0 (!%p10325_p9), %v12270_v59 }
 0x4d6   : > { %v7293_v0 = vpop.f32.mrb[50].mxu1  ;;  %v7290_v24 = vadd.f32 %v7289_v53, %v7249_v28  ;;  %v7253_v21 = vpop.f32.mrb[51].mxu0  ;;  %v12278_v53 = vld [vmem:[#allocation7 + $0xcc] ss:$16 sps:$4 sm:$0xff] (!%p10325_p9)   ;;  %v12280_v28 = vld [vmem:[#allocation7 + $0xc0] ss:$16 sps:$4 sm:$0xff] (!%p10325_p9)   ;;  %8747 = vmatpush1.bf16.msra.mxu0 (!%p10325_p9), %v12274_v9  ;;  %8870 = vmatpush1.bf16.msra.mxu1 (!%p10325_p9), %v12275_v61 }
 0x4d7   : > { %v7294_v30 = vpop.f32.mrb[51].mxu1  ;;  %v7292_v33 = vadd.f32 %v7291_v62, %v7251_v56  ;;  %v12281_v55 = vld [vmem:[#allocation7 + $0xc8] ss:$16 sps:$4 sm:$0xff] (!%p10325_p9)   ;;  %v12282_v62 = vld [vmem:[#allocation7 + $0xe4] ss:$16 sps:$4 sm:$0xff] (!%p10325_p9)   ;;  %8748 = vmatprep.subr.bf16.mxu0 (!%p10325_p9), %v12276_v50  ;;  %8871 = vmatprep.subr.bf16.mxu1 (!%p10325_p9), %v12278_v53 }
 0x4d8   : > { %v12284_v56 = vld [vmem:[#allocation7 + $0xec] ss:$16 sps:$4 sm:$0xff] (!%p10325_p9)   ;;  %v12286_v22 = vld [vmem:[#allocation7 + $0xe0] ss:$16 sps:$4 sm:$0xff] (!%p10325_p9)   ;;  %v12287_v0 = vld [vmem:[#allocation7 + $0xe8] ss:$16 sps:$4 sm:$0xff] (!%p10325_p9)  }
 0x4d9   : > { %v12290_v21 = vld [vmem:[#allocation7 + $0x10c] ss:$16 sps:$4 sm:$0xff] (!%p10325_p9)   ;;  %v12292_v30 = vld [vmem:[#allocation7 + $0x100] ss:$16 sps:$4 sm:$0xff] (!%p10325_p9)  }
 0x4da   : > { %8749 = vmatpush1.bf16.msra.mxu0 (!%p10325_p9), %v12280_v28  ;;  %8872 = vmatpush1.bf16.msra.mxu1 (!%p10325_p9), %v12281_v55  ;;  %v12336_v50 = vld [vmem:[#allocation7 + $0x200] ss:$16 sps:$4 sm:$0xff] (!%p10325_p9)   ;;  %v12339_v55 = vld [vmem:[#allocation7 + $0x208] ss:$16 sps:$4 sm:$0xff] (!%p10325_p9)  }
 0x4db   : > { %8750 = vmatprep.subr.bf16.mxu0 (!%p10325_p9), %v12282_v62  ;;  %8873 = vmatprep.subr.bf16.mxu1 (!%p10325_p9), %v12284_v56  ;;  %v12344_v56 = vld [vmem:[#allocation7 + $0x224] ss:$16 sps:$4 sm:$0xff] (!%p10325_p9)  }
 0x4de   : > { %8751 = vmatpush1.bf16.msra.mxu0 (!%p10325_p9), %v12286_v22  ;;  %8874 = vmatpush1.bf16.msra.mxu1 (!%p10325_p9), %v12287_v0  ;;  %v12347_v22 = vld [vmem:[#allocation7 + $0x22c] ss:$16 sps:$4 sm:$0xff] (!%p10325_p9)   ;;  %v12342_v0 = vld [vmem:[#allocation7 + $0x220] ss:$16 sps:$4 sm:$0xff] (!%p10325_p9)  }
 0x4df   : > { %8875 = vmatprep.subr.bf16.mxu1 (!%p10325_p9), %v12290_v21  ;;  %v12350_v21 = vld [vmem:[#allocation7 + $0x244] ss:$16 sps:$4 sm:$0xff] (!%p10325_p9)  }
 0x513   : > { %v7330_v26 = vpop.f32.mrb[52].mxu0 }
 0x514   : > { %v7371_v7 = vpop.f32.mrb[52].mxu1  ;;  %v7331_v2 = vadd.f32 %v7330_v26, %v7290_v24  ;;  %v7332_v15 = vpop.f32.mrb[53].mxu0  ;;  %v12288_v24 = vld [vmem:[#allocation7 + $0x104] ss:$16 sps:$4 sm:$0xff] (!%p10325_p9)  }
 0x515   : > { %v7373_v5 = vpop.f32.mrb[53].mxu1  ;;  %v7333_v6 = vadd.f32 %v7332_v15, %v7292_v33  ;;  %v7334_v8 = vpop.f32.mrb[54].mxu0  ;;  %v12293_v33 = vld [vmem:[#allocation7 + $0x108] ss:$16 sps:$4 sm:$0xff] (!%p10325_p9)   ;;  %v12294_v26 = vld [vmem:[#allocation7 + $0x124] ss:$16 sps:$4 sm:$0xff] (!%p10325_p9)   ;;  %8752 = vmatprep.subr.bf16.mxu0 (!%p10325_p9), %v12288_v24 }
 0x516   : > { %v7375_v13 = vpop.f32.mrb[54].mxu1  ;;  %v7372_v23 = vadd.f32 %v7371_v7, %v7331_v2  ;;  %v7335_v14 = vpop.f32.mrb[55].mxu0  ;;  %v7484_v7 = vlaneseq (!%p10325_p9)  ;;  %v12296_v2 = vld [vmem:[#allocation7 + $0x12c] ss:$16 sps:$4 sm:$0xff] (!%p10325_p9)   ;;  %v12298_v15 = vld [vmem:[#allocation7 + $0x120] ss:$16 sps:$4 sm:$0xff] (!%p10325_p9)   ;;  %8753 = vmatpush1.bf16.msra.mxu0 (!%p10325_p9), %v12292_v30  ;;  %8876 = vmatpush1.bf16.msra.mxu1 (!%p10325_p9), %v12293_v33 }
 0x517   : > { %v7376_v27 = vpop.f32.mrb[55].mxu1  ;;  %v7374_v16 = vadd.f32 %v7373_v5, %v7333_v6  ;;  %v12299_v5 = vld [vmem:[#allocation7 + $0x128] ss:$16 sps:$4 sm:$0xff] (!%p10325_p9)   ;;  %v12300_v6 = vld [vmem:[#allocation7 + $0x144] ss:$16 sps:$4 sm:$0xff] (!%p10325_p9)   ;;  %8754 = vmatprep.subr.bf16.mxu0 (!%p10325_p9), %v12294_v26  ;;  %8877 = vmatprep.subr.bf16.mxu1 (!%p10325_p9), %v12296_v2 }
 0x518   : > { %v14227_v8 = vshrl.u32 (!%p10325_p9), %v7484_v7, 7  ;;  %v12302_v13 = vld [vmem:[#allocation7 + $0x14c] ss:$16 sps:$4 sm:$0xff] (!%p10325_p9)   ;;  %v12305_v14 = vld [vmem:[#allocation7 + $0x148] ss:$16 sps:$4 sm:$0xff] (!%p10325_p9)  }
 0x519   : > { %v12306_v27 = vld [vmem:[#allocation7 + $0x164] ss:$16 sps:$4 sm:$0xff] (!%p10325_p9)   ;;  %v12345_v24 = vld [vmem:[#allocation7 + $0x228] ss:$16 sps:$4 sm:$0xff] (!%p10325_p9)   ;;  %v12353_v30 = vld [vmem:[#allocation7 + $0x24c] ss:$16 sps:$4 sm:$0xff] (!%p10325_p9)  }
 0x51a   : > { %8755 = vmatpush1.bf16.msra.mxu0 (!%p10325_p9), %v12298_v15  ;;  %8878 = vmatpush1.bf16.msra.mxu1 (!%p10325_p9), %v12299_v5  ;;  %v7498_v33 = vsub.s32 (!%p10325_p9), 3, %v14227_v8  ;;  %v12348_v26 = vld [vmem:[#allocation7 + $0x240] ss:$16 sps:$4 sm:$0xff] (!%p10325_p9)   ;;  %v12351_v7 = vld [vmem:[#allocation7 + $0x248] ss:$16 sps:$4 sm:$0xff] (!%p10325_p9)  }
 0x51b   : > { %8756 = vmatprep.subr.bf16.mxu0 (!%p10325_p9), %v12300_v6  ;;  %8879 = vmatprep.subr.bf16.mxu1 (!%p10325_p9), %v12302_v13  ;;  %v12356_v2 = vld [vmem:[#allocation7 + $0x264] ss:$16 sps:$4 sm:$0xff] (!%p10325_p9)   ;;  %v12359_v15 = vld [vmem:[#allocation7 + $0x26c] ss:$16 sps:$4 sm:$0xff] (!%p10325_p9)   ;;  %v12354_v6 = vld [vmem:[#allocation7 + $0x260] ss:$16 sps:$4 sm:$0xff] (!%p10325_p9)  }
 0x51c   : > { %v12357_v13 = vld [vmem:[#allocation7 + $0x268] ss:$16 sps:$4 sm:$0xff] (!%p10325_p9)  }
 0x51e   : > { %8880 = vmatpush1.bf16.msra.mxu1 (!%p10325_p9), %v12305_v14  ;;  %v12362_v14 = vld [vmem:[#allocation7 + $0x284] ss:$16 sps:$4 sm:$0xff] (!%p10325_p9)  }
 0x553   : > { %v7412_v17 = vpop.f32.mrb[56].mxu0 }
 0x554   : > { %v7453_v18 = vpop.f32.mrb[56].mxu1  ;;  %v7413_v19 = vadd.f32 %v7412_v17, %v7372_v23  ;;  %v7414_v20 = vpop.f32.mrb[57].mxu0  ;;  %v12304_v23 = vld [vmem:[#allocation7 + $0x140] ss:$16 sps:$4 sm:$0xff] (!%p10325_p9)   ;;  %v7486_v17 = vsub.s32 (!%p10325_p9), 0, %v14227_v8 }
 0x555   : > { %v7455_v43 = vpop.f32.mrb[57].mxu1  ;;  %v7415_v25 = vadd.f32 %v7414_v20, %v7374_v16  ;;  %v7416_v35 = vpop.f32.mrb[58].mxu0  ;;  %7475 = sbr.rel (%p10325_p9) target bundleno = 1995 (0x7cb), region = 80  ;;  %v7490_v16 = vsub.s32 (!%p10325_p9), 1, %v14227_v8  ;;  %v7506_v20 = vsub.s32 (!%p10325_p9), 5, %v14227_v8  ;;  %8757 = vmatpush1.bf16.msra.mxu0 (!%p10325_p9), %v12304_v23  ;;  %v7479_v23 = vld [vmem:[#allocation2 + $0x18] sm:$0xff] (!%p10325_p9) }
 0x556   : > { %v7457_v29 = vpop.f32.mrb[58].mxu1  ;;  %v7454_v49 = vadd.f32 %v7453_v18, %v7413_v19  ;;  %v7417_v34 = vpop.f32.mrb[59].mxu0  ;;  %v12308_v18 = vld [vmem:[#allocation7 + $0x16c] ss:$16 sps:$4 sm:$0xff] (!%p10325_p9)   ;;  %v7477_v19 = vld [vmem:[#allocation2 + $0x8] sm:$0xff] (!%p10325_p9)  ;;  %8758 = vmatprep.subr.bf16.mxu0 (!%p10325_p9), %v12306_v27 }
 0x557   : > { %v7458_v10 = vpop.f32.mrb[59].mxu1  ;;  %v7456_v40 = vadd.f32 %v7455_v43, %v7415_v25  ;;  %v14232_v43 = vld [vmem:[#allocation5] sm:$0x3f] (!%p10325_p9)  ;;  %v12310_v25 = vld [vmem:[#allocation7 + $0x160] ss:$16 sps:$4 sm:$0xff] (!%p10325_p9)   ;;  %8881 = vmatprep.subr.bf16.mxu1 (!%p10325_p9), %v12308_v18 }
 0x558   : > { %v7464_v63 = vadd.f32 %v7454_v49, %v428_v44  ;;  %v7502_v44 = vsub.s32 (!%p10325_p9), 4, %v14227_v8  ;;  %v12311_v35 = vld [vmem:[#allocation7 + $0x168] ss:$16 sps:$4 sm:$0xff] (!%p10325_p9)   ;;  %v7491_v29 = vrot.slane (!%p10325_p9), %v14232_v43, %v7490_v16  ;;  %v7487_v49 = vrot.slane (!%p10325_p9), %v14232_v43, %v7486_v17  ;;  %v12314_v34 = vld [vmem:[#allocation7 + $0x18c] ss:$16 sps:$4 sm:$0xff] (!%p10325_p9)  }
 0x559   : > { %v7465_v1 = vadd.f32 %v7456_v40, %v429_v51  ;;  %v12312_v51 = vld [vmem:[#allocation7 + $0x184] ss:$16 sps:$4 sm:$0xff] (!%p10325_p9)   ;;  %v14242_v10 = vrot.slane (!%p10325_p9), %v14232_v43, %v7506_v20  ;;  %8759 = vmatpush1.bf16.msra.mxu0 (!%p10325_p9), %v12310_v25  ;;  %8882 = vmatpush1.bf16.msra.mxu1 (!%p10325_p9), %v12311_v35  ;;  %v7499_v5 = vrot.slane (!%p10325_p9), %v14232_v43, %v7498_v33  ;;  %v12365_v27 = vld [vmem:[#allocation7 + $0x28c] ss:$16 sps:$4 sm:$0xff] (!%p10325_p9)  }
 0x55a   : > { %7470 = vst [vmem:[#allocation2 + $0x20] sm:$0xff] %v7464_v63  ;;  %v14245_v40 = vrot.slane (!%p10325_p9), %v14232_v43, %v7502_v44  ;;  %v7515_v63 = vadd.f32 (!%p10325_p9), %v7491_v29, %v7477_v19  ;;  %8760 = vmatprep.subr.bf16.mxu0 (!%p10325_p9), %v12312_v51  ;;  %8883 = vmatprep.subr.bf16.mxu1 (!%p10325_p9), %v12314_v34  ;;  %v12360_v19 = vld [vmem:[#allocation7 + $0x280] ss:$16 sps:$4 sm:$0xff] (!%p10325_p9)   ;;  %v12363_v44 = vld [vmem:[#allocation7 + $0x288] ss:$16 sps:$4 sm:$0xff] (!%p10325_p9)   ;;  %v7494_v29 = vsub.s32 (!%p10325_p9), 2, %v14227_v8 }
 0x55b   : > { %7471 = vst [vmem:[#allocation2 + $0x28] sm:$0xff] %v7465_v1  ;;  %v7476_v1 = vld [vmem:[#allocation2] sm:$0xff] (!%p10325_p9)  ;;  %v7517_v18 = vadd.f32 (!%p10325_p9), %v7499_v5, %v7479_v23  ;;  %v12368_v25 = vld [vmem:[#allocation7 + $0x2a4] ss:$16 sps:$4 sm:$0xff] (!%p10325_p9)  }
 0x55c   : > { %v7514_v41 = vadd.f32 %v7487_v49, %v7476_v1  ;;  %v10327_v36 = vmul.f32 -1.442695, %v7515_v63  ;;  %v12371_v35 = vld [vmem:[#allocation7 + $0x2ac] ss:$16 sps:$4 sm:$0xff]   ;;  %v12366_v49 = vld [vmem:[#allocation7 + $0x2a0] ss:$16 sps:$4 sm:$0xff]   ;;  %v7495_v1 = vrot.slane %v14232_v43, %v7494_v29 }
 0x55d   : > { %8761 = vmatpush1.bf16.msra.mxu0 %v12316_v31  ;;  %8884 = vmatpush1.bf16.msra.mxu1 %v12317_v38  ;;  %v10329_v20 = vmul.f32 -1.442695, %v7517_v18  ;;  %v12369_v51 = vld [vmem:[#allocation7 + $0x2a8] ss:$16 sps:$4 sm:$0xff]   ;;  %v12374_v34 = vld [vmem:[#allocation7 + $0x2c4] ss:$16 sps:$4 sm:$0xff]  }
 0x55e   : > { %v10326_v45 = vmul.f32 -1.442695, %v7514_v41  ;;  %12528 = vpow2.f32 %v10327_v36  ;;  %8762 = vmatprep.subr.bf16.mxu0 %v12318_v32  ;;  %8885 = vmatprep.subr.bf16.mxu1 %v12320_v37  ;;  %v12377_v63 = vld [vmem:[#allocation7 + $0x2cc] ss:$16 sps:$4 sm:$0xff]   ;;  %v12372_v38 = vld [vmem:[#allocation7 + $0x2c0] ss:$16 sps:$4 sm:$0xff]  }
 0x55f   : > { %v7478_v31 = vld [vmem:[#allocation2 + $0x10] sm:$0xff]  ;;  %v12380_v32 = vld [vmem:[#allocation7 + $0x2e4] ss:$16 sps:$4 sm:$0xff]  }
 0x560   : > { %12530 = vpow2.f32 %v10326_v45  ;;  %v12375_v41 = vld [vmem:[#allocation7 + $0x2c8] ss:$16 sps:$4 sm:$0xff]   ;;  %v12383_v36 = vld [vmem:[#allocation7 + $0x2ec] ss:$16 sps:$4 sm:$0xff]   ;;  %v7516_v37 = vadd.f32 %v7495_v1, %v7478_v31  ;;  %v12438_v31 = vld [vmem:[#allocation7 + $0x420] ss:$16 sps:$4 sm:$0xff]  }
 0x561   : > { %8763 = vmatpush1.bf16.msra.mxu0 %v12322_v39  ;;  %8886 = vmatpush1.bf16.msra.mxu1 %v12323_v48  ;;  %v12378_v39 = vld [vmem:[#allocation7 + $0x2e0] ss:$16 sps:$4 sm:$0xff]   ;;  %v12381_v48 = vld [vmem:[#allocation7 + $0x2e8] ss:$16 sps:$4 sm:$0xff]   ;;  %v12389_v43 = vld [vmem:[#allocation7 + $0x30c] ss:$16 sps:$4 sm:$0xff]  }
 0x562   : > { %8764 = vmatprep.subr.bf16.mxu0 %v12324_v42  ;;  %8887 = vmatprep.subr.bf16.mxu1 %v12326_v3  ;;  %v12386_v42 = vld [vmem:[#allocation7 + $0x304] ss:$16 sps:$4 sm:$0xff]   ;;  %v12425_v5 = vld [vmem:[#allocation7 + $0x3cc] ss:$16 sps:$4 sm:$0xff]   ;;  %v12423_v23 = vld [vmem:[#allocation7 + $0x3c8] ss:$16 sps:$4 sm:$0xff]  }
 0x563   : > { %v12431_v18 = vld [vmem:[#allocation7 + $0x3ec] ss:$16 sps:$4 sm:$0xff]  }
 0x564   : > { %v12443_v1 = vld [vmem:[#allocation7 + $0x42c] ss:$16 sps:$4 sm:$0xff]  }
 0x565   : > { %8765 = vmatpush1.bf16.msra.mxu0 %v12328_v4  ;;  %8888 = vmatpush1.bf16.msra.mxu1 %v12329_v46  ;;  %v10328_v4 = vmul.f32 -1.442695, %v7516_v37  ;;  %v12384_v46 = vld [vmem:[#allocation7 + $0x300] ss:$16 sps:$4 sm:$0xff]  }
 0x566   : > { %8766 = vmatprep.subr.bf16.mxu0 %v12330_v47  ;;  %8889 = vmatprep.subr.bf16.mxu1 %v12332_v52  ;;  %v12387_v47 = vld [vmem:[#allocation7 + $0x308] ss:$16 sps:$4 sm:$0xff]   ;;  %v12392_v52 = vld [vmem:[#allocation7 + $0x324] ss:$16 sps:$4 sm:$0xff]  }
 0x568   : > { %v12529_v12 = vpop.eup %12528 }
 0x569   : > { %v7539_v59 = vadd.f32 1.0, %v12529_v12  ;;  %8767 = vmatpush1.bf16.msra.mxu0 %v12334_v11  ;;  %8890 = vmatpush1.bf16.msra.mxu1 %v12335_v54  ;;  %v12395_v11 = vld [vmem:[#allocation7 + $0x32c] ss:$16 sps:$4 sm:$0xff]   ;;  %v12390_v12 = vld [vmem:[#allocation7 + $0x320] ss:$16 sps:$4 sm:$0xff]  }
 0x56a   : > { %v12531_v58 = vpop.eup %12530  ;;  %8777 = vmatprep.subr.bf16.mxu0 %v12338_v57  ;;  %8900 = vmatprep.subr.bf16.mxu1 %v12341_v60  ;;  %v12393_v54 = vld [vmem:[#allocation7 + $0x328] ss:$16 sps:$4 sm:$0xff]   ;;  %v12398_v57 = vld [vmem:[#allocation7 + $0x344] ss:$16 sps:$4 sm:$0xff]  }
 0x56b   : > { %v7538_v9 = vadd.f32 1.0, %v12531_v58  ;;  %12532 = vrcp.f32 %v7539_v59  ;;  %v12401_v58 = vld [vmem:[#allocation7 + $0x34c] ss:$16 sps:$4 sm:$0xff]   ;;  %v12396_v59 = vld [vmem:[#allocation7 + $0x340] ss:$16 sps:$4 sm:$0xff]  }
 0x56d   : > { %12534 = vrcp.f32 %v7538_v9  ;;  %v12399_v9 = vld [vmem:[#allocation7 + $0x348] ss:$16 sps:$4 sm:$0xff]  }
 0x56e   : > { %12536 = vpow2.f32 %v10329_v20 }
 0x575   : > { %v12533_v61 = vpop.eup %12532 }
 0x576   : > { %v7557_v28 = vpack.c.bf16 %v12533_v61, %v12533_v61  ;;  %v12404_v61 = vld [vmem:[#allocation7 + $0x364] ss:$16 sps:$4 sm:$0xff]  }
 0x577   : > { %v12535_v53 = vpop.eup %12534 }
 0x578   : > { %v7556_v62 = vpack.c.bf16 %v12535_v53, %v12535_v53  ;;  %8768 = vmatprep.mubr.bf16.mxu0 %v7557_v28  ;;  %8891 = vmatprep.mubr.bf16.mxu1 %v7557_v28  ;;  %v12537_v45 = vpop.eup %12536 }
 0x579   : > { %v7541_v3 = vadd.f32 1.0, %v12537_v45  ;;  %v12444_v45 = vld [vmem:[#allocation7 + $0x440] ss:$16 sps:$4 sm:$0xff]  }
 0x57a   : > { %8769 = vmatmul.mubr.bf16.vlgmr.msra.gmra.mrb[0].mxu0 %v7556_v62  ;;  %8892 = vmatmul.mubr.bf16.vlgmr.msra.gmra.mrb[0].mxu1 %v7556_v62  ;;  %v12405_v62 = vld [vmem:[#allocation7 + $0x368] ss:$16 sps:$4 sm:$0xff]  }
 0x57b   : > { %8778 = vmatpush1.bf16.msra.mxu0 %v12336_v50  ;;  %8901 = vmatpush1.bf16.msra.mxu1 %v12339_v55  ;;  %12538 = vrcp.f32 %v7541_v3  ;;  %v12407_v50 = vld [vmem:[#allocation7 + $0x36c] ss:$16 sps:$4 sm:$0xff]   ;;  %v12402_v55 = vld [vmem:[#allocation7 + $0x360] ss:$16 sps:$4 sm:$0xff]  }
 0x57c   : > { %8779 = vmatprep.subr.bf16.mxu0 %v12344_v56  ;;  %8902 = vmatprep.subr.bf16.mxu1 %v12347_v22  ;;  %12540 = vpow2.f32 %v10328_v4  ;;  %v12410_v56 = vld [vmem:[#allocation7 + $0x384] ss:$16 sps:$4 sm:$0xff]   ;;  %v12413_v22 = vld [vmem:[#allocation7 + $0x38c] ss:$16 sps:$4 sm:$0xff]   ;;  %v12450_v3 = vld [vmem:[#allocation7 + $0x460] ss:$16 sps:$4 sm:$0xff]  }
 0x57d   : > { %v12458_v4 = vld [vmem:[#allocation7 + $0x484] ss:$16 sps:$4 sm:$0xff]  }
 0x57f   : > { %8780 = vmatpush1.bf16.msra.mxu0 %v12342_v0  ;;  %8903 = vmatpush1.bf16.msra.mxu1 %v12345_v24  ;;  %v12408_v24 = vld [vmem:[#allocation7 + $0x380] ss:$16 sps:$4 sm:$0xff]  }
 0x580   : > { %8781 = vmatprep.subr.bf16.mxu0 %v12350_v21  ;;  %8904 = vmatprep.subr.bf16.mxu1 %v12353_v30  ;;  %v12411_v21 = vld [vmem:[#allocation7 + $0x388] ss:$16 sps:$4 sm:$0xff]   ;;  %v12416_v30 = vld [vmem:[#allocation7 + $0x3a4] ss:$16 sps:$4 sm:$0xff]  }
 0x583   : > { %8782 = vmatpush1.bf16.msra.mxu0 %v12348_v26  ;;  %8905 = vmatpush1.bf16.msra.mxu1 %v12351_v7  ;;  %v12419_v26 = vld [vmem:[#allocation7 + $0x3ac] ss:$16 sps:$4 sm:$0xff]   ;;  %v12414_v7 = vld [vmem:[#allocation7 + $0x3a0] ss:$16 sps:$4 sm:$0xff]  }
 0x584   : > { %8783 = vmatprep.subr.bf16.mxu0 %v12356_v2  ;;  %8906 = vmatprep.subr.bf16.mxu1 %v12359_v15  ;;  %v12417_v2 = vld [vmem:[#allocation7 + $0x3a8] ss:$16 sps:$4 sm:$0xff]   ;;  %v12422_v15 = vld [vmem:[#allocation7 + $0x3c4] ss:$16 sps:$4 sm:$0xff]  }
 0x585   : > { %v12539_v60 = vpop.eup %12538 }
 0x586   : > { %v7559_v53 = vpack.c.bf16 %v12539_v60, %v12539_v60  ;;  %v12541_v28 = vpop.eup %12540  ;;  %v12470_v60 = vld [vmem:[#allocation7 + $0x4c4] ss:$16 sps:$4 sm:$0xff]  }
 0x587   : > { %8784 = vmatpush1.bf16.msra.mxu0 %v12354_v6  ;;  %8907 = vmatpush1.bf16.msra.mxu1 %v12357_v13  ;;  %v7540_v0 = vadd.f32 1.0, %v12541_v28  ;;  %v7481_v6 = vld [vmem:[#allocation2 + $0x28] sm:$0xff] }
 0x588   : > { %8785 = vmatprep.subr.bf16.mxu0 %v12362_v14  ;;  %8908 = vmatprep.subr.bf16.mxu1 %v12365_v27  ;;  %v12420_v13 = vld [vmem:[#allocation7 + $0x3c0] ss:$16 sps:$4 sm:$0xff]   ;;  %v7519_v14 = vadd.f32 %v14242_v10, %v7481_v6  ;;  %v12428_v27 = vld [vmem:[#allocation7 + $0x3e4] ss:$16 sps:$4 sm:$0xff]   ;;  %v12435_v10 = vld [vmem:[#allocation7 + $0x408] ss:$16 sps:$4 sm:$0xff]  }
 0x589   : > { %8809 = vmatprep.mubr.bf16.mxu0 %v7559_v53  ;;  %8932 = vmatprep.mubr.bf16.mxu1 %v7559_v53  ;;  %12542 = vrcp.f32 %v7540_v0  ;;  %v12471_v53 = vld [vmem:[#allocation7 + $0x4c8] ss:$16 sps:$4 sm:$0xff]   ;;  %v12476_v28 = vld [vmem:[#allocation7 + $0x4e4] ss:$16 sps:$4 sm:$0xff]   ;;  %v12497_v6 = vld [vmem:[#allocation7 + $0x54c] ss:$16 sps:$4 sm:$0xff]  }
 0x58a   : > { %v12482_v0 = vld [vmem:[#allocation7 + $0x504] ss:$16 sps:$4 sm:$0xff]  }
 0x58b   : > { %8786 = vmatpush1.bf16.msra.mxu0 %v12360_v19  ;;  %8909 = vmatpush1.bf16.msra.mxu1 %v12363_v44  ;;  %v10331_v19 = vmul.f32 -1.442695, %v7519_v14  ;;  %v12426_v44 = vld [vmem:[#allocation7 + $0x3e0] ss:$16 sps:$4 sm:$0xff]   ;;  %v12500_v14 = vld [vmem:[#allocation7 + $0x564] ss:$16 sps:$4 sm:$0xff]  }
 0x58c   : > { %8787 = vmatprep.subr.bf16.mxu0 %v12368_v25  ;;  %8910 = vmatprep.subr.bf16.mxu1 %v12371_v35  ;;  %v12429_v25 = vld [vmem:[#allocation7 + $0x3e8] ss:$16 sps:$4 sm:$0xff]   ;;  %v12434_v35 = vld [vmem:[#allocation7 + $0x404] ss:$16 sps:$4 sm:$0xff]  }
 0x58d   : > { %12544 = vpow2.f32 %v10331_v19  ;;  %v12498_v19 = vld [vmem:[#allocation7 + $0x560] ss:$16 sps:$4 sm:$0xff]  }
 0x58f   : > { %8788 = vmatpush1.bf16.msra.mxu0 %v12366_v49  ;;  %8911 = vmatpush1.bf16.msra.mxu1 %v12369_v51  ;;  %v12437_v49 = vld [vmem:[#allocation7 + $0x40c] ss:$16 sps:$4 sm:$0xff]  }
 0x590   : > { %8789 = vmatprep.subr.bf16.mxu0 %v12374_v34  ;;  %8912 = vmatprep.subr.bf16.mxu1 %v12377_v63  ;;  %v12432_v34 = vld [vmem:[#allocation7 + $0x400] ss:$16 sps:$4 sm:$0xff]   ;;  %v12440_v63 = vld [vmem:[#allocation7 + $0x424] ss:$16 sps:$4 sm:$0xff]  }
 0x593   : > { %8790 = vmatpush1.bf16.msra.mxu0 %v12372_v38  ;;  %8913 = vmatpush1.bf16.msra.mxu1 %v12375_v41  ;;  %v12543_v20 = vpop.eup %12542  ;;  %v12441_v38 = vld [vmem:[#allocation7 + $0x428] ss:$16 sps:$4 sm:$0xff]   ;;  %v12446_v41 = vld [vmem:[#allocation7 + $0x444] ss:$16 sps:$4 sm:$0xff]  }
 0x594   : > { %8791 = vmatprep.subr.bf16.mxu0 %v12380_v32  ;;  %8914 = vmatprep.subr.bf16.mxu1 %v12383_v36  ;;  %v7558_v51 = vpack.c.bf16 %v12543_v20, %v12543_v20  ;;  %v12449_v32 = vld [vmem:[#allocation7 + $0x44c] ss:$16 sps:$4 sm:$0xff]   ;;  %v12501_v20 = vld [vmem:[#allocation7 + $0x568] ss:$16 sps:$4 sm:$0xff]  }
 0x597   : > { %8792 = vmatpush1.bf16.msra.mxu0 %v12378_v39  ;;  %8915 = vmatpush1.bf16.msra.mxu1 %v12381_v48  ;;  %v12545_v36 = vpop.eup %12544  ;;  %v12447_v39 = vld [vmem:[#allocation7 + $0x448] ss:$16 sps:$4 sm:$0xff]   ;;  %v12452_v48 = vld [vmem:[#allocation7 + $0x464] ss:$16 sps:$4 sm:$0xff]  }
 0x598   : > { %8793 = vmatprep.subr.bf16.mxu0 %v12386_v42  ;;  %8916 = vmatprep.subr.bf16.mxu1 %v12389_v43  ;;  %v7543_v37 = vadd.f32 1.0, %v12545_v36  ;;  %v12455_v42 = vld [vmem:[#allocation7 + $0x46c] ss:$16 sps:$4 sm:$0xff]   ;;  %v12453_v43 = vld [vmem:[#allocation7 + $0x468] ss:$16 sps:$4 sm:$0xff]  }
 0x599   : > { %v12524_v36 = vld [vmem:[#allocation7 + $0x5e4] ss:$16 sps:$4 sm:$0xff]  }
 0x59a   : > { %12546 = vrcp.f32 %v7543_v37  ;;  %v12527_v37 = vld [vmem:[#allocation7 + $0x5ec] ss:$16 sps:$4 sm:$0xff]  }
 0x59b   : > { %8794 = vmatpush1.bf16.msra.mxu0 %v12384_v46  ;;  %8917 = vmatpush1.bf16.msra.mxu1 %v12387_v47  ;;  %v12461_v46 = vld [vmem:[#allocation7 + $0x48c] ss:$16 sps:$4 sm:$0xff]   ;;  %v12456_v47 = vld [vmem:[#allocation7 + $0x480] ss:$16 sps:$4 sm:$0xff]  }
 0x59c   : > { %8795 = vmatprep.subr.bf16.mxu0 %v12392_v52  ;;  %8918 = vmatprep.subr.bf16.mxu1 %v12395_v11  ;;  %v12459_v52 = vld [vmem:[#allocation7 + $0x488] ss:$16 sps:$4 sm:$0xff]   ;;  %v12464_v11 = vld [vmem:[#allocation7 + $0x4a4] ss:$16 sps:$4 sm:$0xff]  }
 0x59f   : > { %8796 = vmatpush1.bf16.msra.mxu0 %v12390_v12  ;;  %8919 = vmatpush1.bf16.msra.mxu1 %v12393_v54  ;;  %v12467_v12 = vld [vmem:[#allocation7 + $0x4ac] ss:$16 sps:$4 sm:$0xff]  }
 0x5a0   : > { %8797 = vmatprep.subr.bf16.mxu0 %v12398_v57  ;;  %8920 = vmatprep.subr.bf16.mxu1 %v12401_v58  ;;  %v12462_v57 = vld [vmem:[#allocation7 + $0x4a0] ss:$16 sps:$4 sm:$0xff]   ;;  %v12465_v58 = vld [vmem:[#allocation7 + $0x4a8] ss:$16 sps:$4 sm:$0xff]  }
 0x5a3   : > { %8798 = vmatpush1.bf16.msra.mxu0 %v12396_v59  ;;  %8921 = vmatpush1.bf16.msra.mxu1 %v12399_v9  ;;  %v12473_v9 = vld [vmem:[#allocation7 + $0x4cc] ss:$16 sps:$4 sm:$0xff]  }
 0x5a4   : > { %8799 = vmatprep.subr.bf16.mxu0 %v12404_v61  ;;  %8922 = vmatprep.subr.bf16.mxu1 %v12407_v50  ;;  %v12547_v54 = vpop.eup %12546  ;;  %v7480_v61 = vld [vmem:[#allocation2 + $0x20] sm:$0xff] }
 0x5a5   : > { %v7561_v59 = vpack.c.bf16 %v12547_v54, %v12547_v54  ;;  %v12468_v50 = vld [vmem:[#allocation7 + $0x4c0] ss:$16 sps:$4 sm:$0xff]  }
 0x5a6   : > { %v9027_v54 = vld [vmem:[#allocation10 + $0x108] sm:$0xff] }
 0x5a7   : > { %8800 = vmatpush1.bf16.msra.mxu0 %v12402_v55  ;;  %8923 = vmatpush1.bf16.msra.mxu1 %v12405_v62  ;;  %v12479_v55 = vld [vmem:[#allocation7 + $0x4ec] ss:$16 sps:$4 sm:$0xff]   ;;  %v7518_v62 = vadd.f32 %v14245_v40, %v7480_v61  ;;  %v12486_v40 = vld [vmem:[#allocation7 + $0x520] ss:$16 sps:$4 sm:$0xff]  }
 0x5a8   : > { %8801 = vmatprep.subr.bf16.mxu0 %v12410_v56  ;;  %8924 = vmatprep.subr.bf16.mxu1 %v12413_v22  ;;  %v12474_v56 = vld [vmem:[#allocation7 + $0x4e0] ss:$16 sps:$4 sm:$0xff]   ;;  %v12477_v22 = vld [vmem:[#allocation7 + $0x4e8] ss:$16 sps:$4 sm:$0xff]  }
 0x5ab   : > { %8802 = vmatpush1.bf16.msra.mxu0 %v12408_v24  ;;  %8925 = vmatpush1.bf16.msra.mxu1 %v12411_v21  ;;  %v12485_v24 = vld [vmem:[#allocation7 + $0x50c] ss:$16 sps:$4 sm:$0xff]   ;;  %v10330_v21 = vmul.f32 -1.442695, %v7518_v62 }
 0x5ac   : > { %8803 = vmatprep.subr.bf16.mxu0 %v12416_v30  ;;  %8926 = vmatprep.subr.bf16.mxu1 %v12419_v26  ;;  %v12480_v30 = vld [vmem:[#allocation7 + $0x500] ss:$16 sps:$4 sm:$0xff]   ;;  %v12483_v26 = vld [vmem:[#allocation7 + $0x508] ss:$16 sps:$4 sm:$0xff]  }
 0x5ad   : > { %12548 = vpow2.f32 %v10330_v21  ;;  %v9046_v21 = vld [vmem:[#allocation10 + $0x1a0] sm:$0xff] }
 0x5af   : > { %8804 = vmatpush1.bf16.msra.mxu0 %v12414_v7  ;;  %8927 = vmatpush1.bf16.msra.mxu1 %v12417_v2  ;;  %v12488_v7 = vld [vmem:[#allocation7 + $0x524] ss:$16 sps:$4 sm:$0xff]   ;;  %v12491_v2 = vld [vmem:[#allocation7 + $0x52c] ss:$16 sps:$4 sm:$0xff]  }
 0x5b0   : > { %8805 = vmatprep.subr.bf16.mxu0 %v12422_v15  ;;  %8928 = vmatprep.subr.bf16.mxu1 %v12425_v5  ;;  %v12489_v15 = vld [vmem:[#allocation7 + $0x528] ss:$16 sps:$4 sm:$0xff]   ;;  %v12494_v5 = vld [vmem:[#allocation7 + $0x544] ss:$16 sps:$4 sm:$0xff]  }
 0x5b3   : > { %8806 = vmatpush1.bf16.msra.mxu0 %v12420_v13  ;;  %8929 = vmatpush1.bf16.msra.mxu1 %v12423_v23  ;;  %v12492_v13 = vld [vmem:[#allocation7 + $0x540] ss:$16 sps:$4 sm:$0xff]   ;;  %v12495_v23 = vld [vmem:[#allocation7 + $0x548] ss:$16 sps:$4 sm:$0xff]  }
 0x5b4   : > { %8807 = vmatprep.subr.bf16.mxu0 %v12428_v27  ;;  %8930 = vmatprep.subr.bf16.mxu1 %v12431_v18  ;;  %v12503_v27 = vld [vmem:[#allocation7 + $0x56c] ss:$16 sps:$4 sm:$0xff]  }
 0x5b7   : > { %8808 = vmatpush1.bf16.msra.mxu0 %v12426_v44  ;;  %8931 = vmatpush1.bf16.msra.mxu1 %v12429_v25  ;;  %v12549_v18 = vpop.eup %12548  ;;  %v12506_v44 = vld [vmem:[#allocation7 + $0x584] ss:$16 sps:$4 sm:$0xff]   ;;  %v12509_v25 = vld [vmem:[#allocation7 + $0x58c] ss:$16 sps:$4 sm:$0xff]  }
 0x5b8   : > { %8818 = vmatprep.subr.bf16.mxu0 %v12434_v35  ;;  %8941 = vmatprep.subr.bf16.mxu1 %v12437_v49  ;;  %v7542_v35 = vadd.f32 1.0, %v12549_v18  ;;  %v12504_v49 = vld [vmem:[#allocation7 + $0x580] ss:$16 sps:$4 sm:$0xff]  }
 0x5b9   : > { %v9049_v18 = vld [vmem:[#allocation10 + $0x1b8] sm:$0xff] }
 0x5ba   : > { %8810 = vmatmul.mubr.bf16.vlgmr.msra.gmra.mrb[0].mxu0 %v7558_v51  ;;  %8933 = vmatmul.mubr.bf16.vlgmr.msra.gmra.mrb[0].mxu1 %v7558_v51  ;;  %v12507_v51 = vld [vmem:[#allocation7 + $0x588] ss:$16 sps:$4 sm:$0xff]   ;;  %12550 = vrcp.f32 %v7542_v35 }
 0x5bb   : > { %8819 = vmatpush1.bf16.msra.mxu0 %v12432_v34  ;;  %8942 = vmatpush1.bf16.msra.mxu1 %v12435_v10  ;;  %v12512_v34 = vld [vmem:[#allocation7 + $0x5a4] ss:$16 sps:$4 sm:$0xff]   ;;  %v12515_v10 = vld [vmem:[#allocation7 + $0x5ac] ss:$16 sps:$4 sm:$0xff]  }
 0x5bc   : > { %8820 = vmatprep.subr.bf16.mxu0 %v12440_v63  ;;  %8943 = vmatprep.subr.bf16.mxu1 %v12443_v1  ;;  %v12510_v63 = vld [vmem:[#allocation7 + $0x5a0] ss:$16 sps:$4 sm:$0xff]   ;;  %v12513_v1 = vld [vmem:[#allocation7 + $0x5a8] ss:$16 sps:$4 sm:$0xff]  }
 0x5bd   : > { %8850 = vmatprep.mubr.bf16.mxu0 %v7561_v59  ;;  %8973 = vmatprep.mubr.bf16.mxu1 %v7561_v59  ;;  %v9044_v59 = vld [vmem:[#allocation10 + $0x190] sm:$0xff] }
 0x5bf   : > { %8821 = vmatpush1.bf16.msra.mxu0 %v12438_v31  ;;  %8944 = vmatpush1.bf16.msra.mxu1 %v12441_v38  ;;  %v12518_v31 = vld [vmem:[#allocation7 + $0x5c4] ss:$16 sps:$4 sm:$0xff]   ;;  %v12521_v38 = vld [vmem:[#allocation7 + $0x5cc] ss:$16 sps:$4 sm:$0xff]  }
 0x5c0   : > { %8822 = vmatprep.subr.bf16.mxu0 %v12446_v41  ;;  %8945 = vmatprep.subr.bf16.mxu1 %v12449_v32  ;;  %v12516_v41 = vld [vmem:[#allocation7 + $0x5c0] ss:$16 sps:$4 sm:$0xff]   ;;  %v12519_v32 = vld [vmem:[#allocation7 + $0x5c8] ss:$16 sps:$4 sm:$0xff]  }
 0x5c3   : > { %8823 = vmatpush1.bf16.msra.mxu0 %v12444_v45  ;;  %8946 = vmatpush1.bf16.msra.mxu1 %v12447_v39  ;;  %v9010_v45 = vld [vmem:[#allocation10 + $0x80] sm:$0xff]  ;;  %v9011_v39 = vld [vmem:[#allocation10 + $0x88] sm:$0xff] }
 0x5c4   : > { %8824 = vmatprep.subr.bf16.mxu0 %v12452_v48  ;;  %8947 = vmatprep.subr.bf16.mxu1 %v12455_v42  ;;  %v9042_v48 = vld [vmem:[#allocation10 + $0x180] sm:$0xff]  ;;  %v9043_v42 = vld [vmem:[#allocation10 + $0x188] sm:$0xff] }
 0x5c7   : > { %8825 = vmatpush1.bf16.msra.mxu0 %v12450_v3  ;;  %8948 = vmatpush1.bf16.msra.mxu1 %v12453_v43  ;;  %v12522_v3 = vld [vmem:[#allocation7 + $0x5e0] ss:$16 sps:$4 sm:$0xff]   ;;  %v12551_v43 = vpop.eup %12550 }
 0x5c8   : > { %8826 = vmatprep.subr.bf16.mxu0 %v12458_v4  ;;  %8949 = vmatprep.subr.bf16.mxu1 %v12461_v46  ;;  %v12525_v4 = vld [vmem:[#allocation7 + $0x5e8] ss:$16 sps:$4 sm:$0xff]  }
 0x5c9   : > { %v8994_v46 = vld [vmem:[#allocation10] sm:$0xff] }
 0x5cb   : > { %8827 = vmatpush1.bf16.msra.mxu0 %v12456_v47  ;;  %8950 = vmatpush1.bf16.msra.mxu1 %v12459_v52  ;;  %v8995_v47 = vld [vmem:[#allocation10 + $0x8] sm:$0xff]  ;;  %v10599_v52 = vpack.c.bf16 %v9011_v39, %v9010_v45  ;;  %v9034_v39 = vld [vmem:[#allocation10 + $0x140] sm:$0xff] }
 0x5cc   : > { %8828 = vmatprep.subr.bf16.mxu0 %v12464_v11  ;;  %8951 = vmatprep.subr.bf16.mxu1 %v12467_v12  ;;  %v10631_v11 = vpack.c.bf16 %v9043_v42, %v9042_v48  ;;  %v9026_v12 = vld [vmem:[#allocation10 + $0x100] sm:$0xff]  ;;  %v10601_v61 = vpack.c.bf16 %v8995_v47, %v8994_v46  ;;  %v9035_v48 = vld [vmem:[#allocation10 + $0x148] sm:$0xff]  ;;  %v9020_v42 = vld [vmem:[#allocation10 + $0xd0] sm:$0xff] }
 0x5cd   : > { %v10649_v47 = vpack.c.bf16 %v9035_v48, %v9034_v39 }
 0x5cf   : > { %8829 = vmatpush1.bf16.msra.mxu0 %v12462_v57  ;;  %8952 = vmatpush1.bf16.msra.mxu1 %v12465_v58  ;;  %v9012_v57 = vld [vmem:[#allocation10 + $0x90] sm:$0xff]  ;;  %v9013_v58 = vld [vmem:[#allocation10 + $0x98] sm:$0xff] }
 0x5d0   : > { %8830 = vmatprep.subr.bf16.mxu0 %v12470_v60  ;;  %8953 = vmatprep.subr.bf16.mxu1 %v12473_v9  ;;  %v9045_v60 = vld [vmem:[#allocation10 + $0x198] sm:$0xff]  ;;  %v7560_v9 = vpack.c.bf16 %v12551_v43, %v12551_v43  ;;  %v9052_v43 = vld [vmem:[#allocation10 + $0x1d0] sm:$0xff] }
 0x5d1   : > { %v10635_v62 = vpack.c.bf16 %v9045_v60, %v9044_v59 }
 0x5d3   : > { %8831 = vmatpush1.bf16.msra.mxu0 %v12468_v50  ;;  %8954 = vmatpush1.bf16.msra.mxu1 %v12471_v53  ;;  %v10633_v50 = vpack.c.bf16 %v9027_v54, %v9026_v12  ;;  %v8996_v53 = vld [vmem:[#allocation10 + $0x10] sm:$0xff]  ;;  %v9005_v54 = vld [vmem:[#allocation10 + $0x58] sm:$0xff] }
 0x5d4   : > { %8832 = vmatprep.subr.bf16.mxu0 %v12476_v28  ;;  %8955 = vmatprep.subr.bf16.mxu1 %v12479_v55  ;;  %v8997_v28 = vld [vmem:[#allocation10 + $0x18] sm:$0xff]  ;;  %v10603_v55 = vpack.c.bf16 %v9013_v58, %v9012_v57  ;;  %v9036_v57 = vld [vmem:[#allocation10 + $0x150] sm:$0xff] }
 0x5d5   : > { %v9037_v58 = vld [vmem:[#allocation10 + $0x158] sm:$0xff] }
 0x5d6   : > { %v10653_v60 = vpack.c.bf16 %v9037_v58, %v9036_v57 }
 0x5d7   : > { %8833 = vmatpush1.bf16.msra.mxu0 %v12474_v56  ;;  %8956 = vmatpush1.bf16.msra.mxu1 %v12477_v22  ;;  %v9028_v56 = vld [vmem:[#allocation10 + $0x110] sm:$0xff]  ;;  %v9029_v22 = vld [vmem:[#allocation10 + $0x118] sm:$0xff] }
 0x5d8   : > { %8834 = vmatprep.subr.bf16.mxu0 %v12482_v0  ;;  %8957 = vmatprep.subr.bf16.mxu1 %v12485_v24  ;;  %v9014_v0 = vld [vmem:[#allocation10 + $0xa0] sm:$0xff]  ;;  %v9015_v24 = vld [vmem:[#allocation10 + $0xa8] sm:$0xff] }
 0x5db   : > { %8835 = vmatpush1.bf16.msra.mxu0 %v12480_v30  ;;  %8958 = vmatpush1.bf16.msra.mxu1 %v12483_v26  ;;  %v9047_v30 = vld [vmem:[#allocation10 + $0x1a8] sm:$0xff]  ;;  %v10605_v26 = vpack.c.bf16 %v8997_v28, %v8996_v53 }
 0x5dc   : > { %8836 = vmatprep.subr.bf16.mxu0 %v12488_v7  ;;  %8959 = vmatprep.subr.bf16.mxu1 %v12491_v2  ;;  %v10637_v7 = vpack.c.bf16 %v9029_v22, %v9028_v56  ;;  %v8998_v2 = vld [vmem:[#allocation10 + $0x20] sm:$0xff]  ;;  %v9055_v28 = vld [vmem:[#allocation10 + $0x1e8] sm:$0xff] }
 0x5df   : > { %8837 = vmatpush1.bf16.msra.mxu0 %v12486_v40  ;;  %8960 = vmatpush1.bf16.msra.mxu1 %v12489_v15  ;;  %v8999_v40 = vld [vmem:[#allocation10 + $0x28] sm:$0xff]  ;;  %v10607_v15 = vpack.c.bf16 %v9015_v24, %v9014_v0  ;;  %v9038_v0 = vld [vmem:[#allocation10 + $0x160] sm:$0xff] }
 0x5e0   : > { %8838 = vmatprep.subr.bf16.mxu0 %v12494_v5  ;;  %8961 = vmatprep.subr.bf16.mxu1 %v12497_v6  ;;  %v10639_v5 = vpack.c.bf16 %v9047_v30, %v9046_v21  ;;  %v9030_v6 = vld [vmem:[#allocation10 + $0x120] sm:$0xff]  ;;  %v9039_v24 = vld [vmem:[#allocation10 + $0x168] sm:$0xff]  ;;  %v9024_v30 = vld [vmem:[#allocation10 + $0xf0] sm:$0xff] }
 0x5e1   : > { %v10657_v21 = vpack.c.bf16 %v9039_v24, %v9038_v0 }
 0x5e3   : > { %8839 = vmatpush1.bf16.msra.mxu0 %v12492_v13  ;;  %8962 = vmatpush1.bf16.msra.mxu1 %v12495_v23  ;;  %v9031_v13 = vld [vmem:[#allocation10 + $0x128] sm:$0xff]  ;;  %v9016_v23 = vld [vmem:[#allocation10 + $0xb0] sm:$0xff] }
 0x5e4   : > { %8840 = vmatprep.subr.bf16.mxu0 %v12500_v14  ;;  %8963 = vmatprep.subr.bf16.mxu1 %v12503_v27  ;;  %v9017_v14 = vld [vmem:[#allocation10 + $0xb8] sm:$0xff]  ;;  %v9048_v27 = vld [vmem:[#allocation10 + $0x1b0] sm:$0xff] }
 0x5e5   : > { %v10611_v35 = vpack.c.bf16 %v9017_v14, %v9016_v23  ;;  %v9040_v23 = vld [vmem:[#allocation10 + $0x170] sm:$0xff]  ;;  %v9041_v14 = vld [vmem:[#allocation10 + $0x178] sm:$0xff] }
 0x5e7   : > { %8841 = vmatpush1.bf16.msra.mxu0 %v12498_v19  ;;  %8964 = vmatpush1.bf16.msra.mxu1 %v12501_v20  ;;  %v10609_v19 = vpack.c.bf16 %v8999_v40, %v8998_v2  ;;  %v10641_v20 = vpack.c.bf16 %v9031_v13, %v9030_v6  ;;  %v9057_v40 = vld [vmem:[#allocation10 + $0x1f8] sm:$0xff] }
 0x5e8   : > { %8842 = vmatprep.subr.bf16.mxu0 %v12506_v44  ;;  %8965 = vmatprep.subr.bf16.mxu1 %v12509_v25  ;;  %v9000_v44 = vld [vmem:[#allocation10 + $0x30] sm:$0xff]  ;;  %v9001_v25 = vld [vmem:[#allocation10 + $0x38] sm:$0xff] }
 0x5eb   : > { %8843 = vmatpush1.bf16.msra.mxu0 %v12504_v49  ;;  %8966 = vmatpush1.bf16.msra.mxu1 %v12507_v51  ;;  %v10643_v49 = vpack.c.bf16 %v9049_v18, %v9048_v27  ;;  %v9032_v51 = vld [vmem:[#allocation10 + $0x130] sm:$0xff]  ;;  %v10661_v27 = vpack.c.bf16 %v9041_v14, %v9040_v23  ;;  %v7754_v18 = vld [vmem:[#allocation8] sm:$0xf] }
 0x5ec   : > { %8844 = vmatprep.subr.bf16.mxu0 %v12512_v34  ;;  %8967 = vmatprep.subr.bf16.mxu1 %v12515_v10  ;;  %v9033_v34 = vld [vmem:[#allocation10 + $0x138] sm:$0xff]  ;;  %v9018_v10 = vld [vmem:[#allocation10 + $0xc0] sm:$0xff] }
 0x5ef   : > { %8845 = vmatpush1.bf16.msra.mxu0 %v12510_v63  ;;  %8968 = vmatpush1.bf16.msra.mxu1 %v12513_v1  ;;  %v9019_v63 = vld [vmem:[#allocation10 + $0xc8] sm:$0xff]  ;;  %v9050_v1 = vld [vmem:[#allocation10 + $0x1c0] sm:$0xff] }
 0x5f0   : > { %8846 = vmatprep.subr.bf16.mxu0 %v12518_v31  ;;  %8969 = vmatprep.subr.bf16.mxu1 %v12521_v38  ;;  %v9051_v31 = vld [vmem:[#allocation10 + $0x1c8] sm:$0xff]  ;;  %v10613_v38 = vpack.c.bf16 %v9001_v25, %v9000_v44  ;;  %v7763_v44 = vrot.slane %v7754_v18, %v7490_v16  ;;  %v7771_v25 = vrot.slane %v7754_v18, %v7498_v33 }
 0x5f1   : > { %v10647_v45 = vpack.c.bf16 %v9051_v31, %v9050_v1 }
 0x5f3   : > { %8847 = vmatpush1.bf16.msra.mxu0 %v12516_v41  ;;  %8970 = vmatpush1.bf16.msra.mxu1 %v12519_v32  ;;  %v10645_v41 = vpack.c.bf16 %v9033_v34, %v9032_v51  ;;  %v9002_v32 = vld [vmem:[#allocation10 + $0x40] sm:$0xff] }
 0x5f4   : > { %8848 = vmatprep.subr.bf16.mxu0 %v12524_v36  ;;  %8971 = vmatprep.subr.bf16.mxu1 %v12527_v37  ;;  %v9003_v36 = vld [vmem:[#allocation10 + $0x48] sm:$0xff]  ;;  %v10615_v37 = vpack.c.bf16 %v9019_v63, %v9018_v10 }
 0x5f5   : > { %v10617_v46 = vpack.c.bf16 %v9003_v36, %v9002_v32 }
 0x5f7   : > { %8849 = vmatpush1.bf16.msra.mxu0 %v12522_v3  ;;  %8972 = vmatpush1.bf16.msra.mxu1 %v12525_v4  ;;  %v9021_v3 = vld [vmem:[#allocation10 + $0xd8] sm:$0xff] }
 0x5f8   : > { %10600 = vmatprep.subr.bf16.mxu0 %v10599_v52  ;;  %10632 = vmatprep.subr.bf16.mxu1 %v10631_v11  ;;  %v9053_v4 = vld [vmem:[#allocation10 + $0x1d8] sm:$0xff]  ;;  %v9004_v52 = vld [vmem:[#allocation10 + $0x50] sm:$0xff]  ;;  %v10619_v11 = vpack.c.bf16 %v9021_v3, %v9020_v42  ;;  %v10524_v3 = vld [vmem:[#allocation11] ss:$0 sm:$0xff] }
 0x5f9   : > { %v10651_v12 = vpack.c.bf16 %v9053_v4, %v9052_v43  ;;  %v10621_v59 = vpack.c.bf16 %v9005_v54, %v9004_v52 }
 0x5fa   : > { %8851 = vmatmul.mubr.bf16.vlgmr.msra.gmra.mrb[0].mxu0 %v7560_v9  ;;  %8974 = vmatmul.mubr.bf16.vlgmr.msra.gmra.mrb[0].mxu1 %v7560_v9  ;;  %v9022_v9 = vld [vmem:[#allocation10 + $0xe0] sm:$0xff] }
 0x5fb   : > { %10602 = vmatpush3.bf16.msra.mxu0 %v10601_v61  ;;  %10634 = vmatpush3.bf16.msra.mxu1 %v10633_v50  ;;  %v9023_v61 = vld [vmem:[#allocation10 + $0xe8] sm:$0xff]  ;;  %v9054_v50 = vld [vmem:[#allocation10 + $0x1e0] sm:$0xff] }
 0x5fc   : > { %10604 = vmatprep.subr.bf16.mxu0 %v10603_v55  ;;  %10636 = vmatprep.subr.bf16.mxu1 %v10635_v62  ;;  %v10623_v53 = vpack.c.bf16 %v9023_v61, %v9022_v9  ;;  %v9006_v55 = vld [vmem:[#allocation10 + $0x60] sm:$0xff]  ;;  %v9007_v62 = vld [vmem:[#allocation10 + $0x68] sm:$0xff]  ;;  %v10655_v56 = vpack.c.bf16 %v9055_v28, %v9054_v50 }
 0x5fd   : > { %v10625_v22 = vpack.c.bf16 %v9007_v62, %v9006_v55 }
 0x5ff   : > { %10606 = vmatpush3.bf16.msra.mxu0 %v10605_v26  ;;  %10638 = vmatpush3.bf16.msra.mxu1 %v10637_v7  ;;  %v9025_v26 = vld [vmem:[#allocation10 + $0xf8] sm:$0xff]  ;;  %v9056_v7 = vld [vmem:[#allocation10 + $0x1f0] sm:$0xff] }
 0x600   : > { %10608 = vmatprep.subr.bf16.mxu0 %v10607_v15  ;;  %10640 = vmatprep.subr.bf16.mxu1 %v10639_v5  ;;  %v10627_v2 = vpack.c.bf16 %v9025_v26, %v9024_v30  ;;  %v9008_v15 = vld [vmem:[#allocation10 + $0x70] sm:$0xff]  ;;  %v9009_v5 = vld [vmem:[#allocation10 + $0x78] sm:$0xff]  ;;  %v10659_v6 = vpack.c.bf16 %v9057_v40, %v9056_v7 }
 0x601   : > { %v10629_v13 = vpack.c.bf16 %v9009_v5, %v9008_v15 }
 0x603   : > { %10610 = vmatpush3.bf16.msra.mxu0 %v10609_v19  ;;  %10642 = vmatpush3.bf16.msra.mxu1 %v10641_v20  ;;  %v7759_v19 = vrot.slane %v7754_v18, %v7486_v17  ;;  %v7767_v20 = vrot.slane %v7754_v18, %v7494_v29 }
 0x604   : > { %10612 = vmatprep.subr.bf16.mxu0 %v10611_v35  ;;  %10644 = vmatprep.subr.bf16.mxu1 %v10643_v49 }
 0x607   : > { %10614 = vmatpush3.bf16.msra.mxu0 %v10613_v38  ;;  %10646 = vmatpush3.bf16.msra.mxu1 %v10645_v41 }
 0x608   : > { %10616 = vmatprep.subr.bf16.mxu0 %v10615_v37  ;;  %10648 = vmatprep.subr.bf16.mxu1 %v10647_v45 }
 0x60b   : > { %10618 = vmatpush3.bf16.msra.mxu0 %v10617_v46  ;;  %10650 = vmatpush3.bf16.msra.mxu1 %v10649_v47 }
 0x60c   : > { %10620 = vmatprep.subr.bf16.mxu0 %v10619_v11  ;;  %10652 = vmatprep.subr.bf16.mxu1 %v10651_v12 }
 0x60f   : > { %10622 = vmatpush3.bf16.msra.mxu0 %v10621_v59  ;;  %10654 = vmatpush3.bf16.msra.mxu1 %v10653_v60 }
 0x610   : > { %10624 = vmatprep.subr.bf16.mxu0 %v10623_v53  ;;  %10656 = vmatprep.subr.bf16.mxu1 %v10655_v56 }
 0x613   : > { %10626 = vmatpush3.bf16.msra.mxu0 %v10625_v22  ;;  %10658 = vmatpush3.bf16.msra.mxu1 %v10657_v21 }
 0x614   : > { %10628 = vmatprep.subr.bf16.mxu0 %v10627_v2  ;;  %10660 = vmatprep.subr.bf16.mxu1 %v10659_v6 }
 0x617   : > { %10630 = vmatpush3.bf16.msra.mxu0 %v10629_v13  ;;  %10662 = vmatpush3.bf16.msra.mxu1 %v10661_v27 }
 0x6cd   : > { %v8852_v35 = vpop.f32.mrb[0].mxu0  ;;  %v8975_v49 = vpop.f32.mrb[0].mxu1 }
 0x6ce   : > { %v10663_v51 = vadd.f32 %v8852_v35, %v7759_v19  ;;  %v10665_v34 = vadd.f32 %v8975_v49, %v7767_v20  ;;  %v8854_v10 = vpop.f32.mrb[1].mxu0  ;;  %v8977_v63 = vpop.f32.mrb[1].mxu1 }
 0x6cf   : > { %v10664_v1 = vadd.f32 %v8854_v10, %v7763_v44  ;;  %v10666_v31 = vadd.f32 %v8977_v63, %v7771_v25  ;;  %v8856_v38 = vpop.f32.mrb[2].mxu0  ;;  %v8979_v41 = vpop.f32.mrb[2].mxu1 }
 0x6d0   : > { %vm8982_vm0 = vcmp.gt.f32.partialorder %v10663_v51, 0.0  ;;  %v8986_v17 = vmul.f32 0.01, %v10663_v51  ;;  %vm8984_vm1 = vcmp.gt.f32.partialorder %v10665_v34, 0.0  ;;  %v8988_v29 = vmul.f32 0.01, %v10665_v34 }
 0x6d1   : > { %v8987_v32 = vmul.f32 0.01, %v10664_v1  ;;  %v8989_v36 = vmul.f32 0.01, %v10666_v31  ;;  %v8857_v16 = vpop.f32.mrb[3].mxu0  ;;  %v8980_v37 = vpop.f32.mrb[3].mxu1 }
 0x6d2   : > { %vm8983_vm2 = vcmp.gt.f32.partialorder %v10664_v1, 0.0  ;;  %vm8985_vm3 = vcmp.gt.f32.partialorder %v10666_v31, 0.0  ;;  %v8990_v45 = vsel %vm8982_vm0, %v10663_v51, %v8986_v17  ;;  %v8992_v39 = vsel %vm8984_vm1, %v10665_v34, %v8988_v29 }
 0x6d3   : > { %v8991_v8 = vsel %vm8983_vm2, %v10664_v1, %v8987_v32  ;;  %v8993_v33 = vsel %vm8985_vm3, %v10666_v31, %v8989_v36 }
 0x6d4   : > { %9129 = vmatprep.mubr.f32.mxu0 %v8991_v8  ;;  %9199 = vmatprep.mubr.f32.mxu1 %v8993_v33 }
 0x6d5   : > { %9130 = vmatmul.mubr.f32.vlgmr.msra.gmra.mrb[4].mxu0 %v8990_v45  ;;  %9200 = vmatmul.mubr.f32.vlgmr.msra.gmra.mrb[4].mxu1 %v8992_v39 }
 0x7a8   : > { %v10561_v48 = vpop.f32.mrb[4].mxu0  ;;  %v10596_v42 = vpop.f32.mrb[4].mxu1 }
 0x7a9   : > { %v10562_v43 = vpop.f32.mrb[5].mxu0  ;;  %v10597_v4 = vpop.f32.mrb[5].mxu1 }
 0x7aa   : > { %v10563_v46 = vadd.f32 %v10562_v43, %v10561_v48  ;;  %v10598_v47 = vadd.f32 %v10597_v4, %v10596_v42 }
 0x7ac   : > { %v9132_v52 = vadd.f32 %v10563_v46, %v10524_v3 }
 0x7ae   : > { %v9202_v11 = vadd.f32 %v10598_v47, %v9132_v52 }
 0x7b0   : > { %v10525_v12 = vmul.f32 -1.442695, %v9202_v11 }
 0x7b2   : > { %12552 = vpow2.f32 %v10525_v12 }
 0x7bc   : > { %v12553_v54 = vpop.eup %12552 }
 0x7bd   : > { %v9208_v57 = vadd.f32 1.0, %v12553_v54 }
 0x7bf   : > { %12554 = vrcp.f32 %v9208_v57 }
 0x7c9   : > { %v12555_v58 = vpop.eup %12554 }
 0x7ca   : > { %9211 = vst [vmem:[%s14293_s7] sm:$0xff] %v12555_v58 }
 0x7cb PF: > { %s23_s29 = sadd.s32 1, %s12788_s29   ;;  %s14308_s24 = smov %s12772_s25 }
 0x7cc   : > { %p20_p1 = scmp.ge.s32.totalorder %s23_s29, 4   ;;  %s14309_s25 = smov %s12776_s26 }
 0x7cd   : > { %s14310_s26 = smov %s13022_s18  ;;  %s14311_s27 = smov %s12784_s28 }
 0x7ce   : > { %s14312_s28 = smov %s14314_s22  ;;  %22 = sbr.rel (!%p20_p1) target bundleno = 9 (0x9), region = 119 }
 0x7d5   :  { %9231 = vsyncpa [#allocation4], 1 }
 0x7d6   :  { %9233 = vsyncpa [#allocation4 + $0x1], 1 }
 0x7d7   :  { %9234 = vsyncpa [#allocation6], 1 }
 0x7d8   :  { %9235 = vsyncpa [#allocation9], 1 }
 0x7d9   :  { %9236 = vsyncpa [#allocation12], 1 }

</bundles_post_ra>
